<compile_context>
chip_gen: v7x
topology: tpu7x:2x2x1
jax: 0.10.0
libtpu: 0.0.40
codegen_flags: <defaults>
</compile_context>

<pallas_src>
import jax
import jax.numpy as jnp
from jax.experimental import pallas as pl
from jax.experimental.pallas import tpu as pltpu

C_PAD = 128      # channel padding (lane width) for conv activations / weights
OUT_PAD = 128    # lane-padded output width of the fused MLP heads
VMEM_LIMIT = 32 * 1024 * 1024


# ---------------------------------------------------------------------------
# Pallas kernels
# ---------------------------------------------------------------------------
def _conv3x3_relu_pool_kernel(x_ref, w_ref, b_ref, o_ref, xp_ref):
    """Row-tiled fused 3x3 conv (stride 1, pad 1) + bias + ReLU + 2x2 max-pool.

    x_ref:  (H, W, Cin)        bf16, whole UNPADDED image (resident across rows)
    w_ref:  (9, Cin, Cout)     bf16, taps ordered tap = 3*dy + dx
    b_ref:  (1, Cout)          f32
    o_ref:  (ROWS, Wh, Cout)   bf16, ROWS pooled output rows of this grid step
    xp_ref: (H+2, W+2, Cin)    bf16 VMEM scratch: spatially padded image
    """
    ROWS, Wh, Cout = o_ref.shape
    H, W, Cin = x_ref.shape
    Hb = 2 * ROWS                      # un-pooled rows computed per grid step

    r = pl.program_id(1)               # top level only (interpret-safe)

    # Build the spatially padded image once per image in VMEM (removes the
    # inter-layer jnp.pad HBM round trip).  Row axis is "arbitrary", so every
    # core that processes an image also runs its r == 0 step.
    @pl.when(r == 0)
    def _pad_into_vmem():
        xp_ref[...] = jnp.zeros_like(xp_ref)
        xp_ref[1:H + 1, 1:W + 1, :] = x_ref[...]

    row0 = r * Hb                      # first padded-input row of this block

    # Hoist the 3 dx-shifted slabs once and reuse across the 3 dy values
    # (9 -> 3 slice copies; dy windows below are cheap leading-dim slices).
    slabs = [xp_ref[pl.ds(row0, Hb + 2), pl.ds(dx, W), :] for dx in range(3)]

    # 9-tap reduction as a value chain in registers (tap 0 peeled, no VMEM
    # accumulator read-modify-write).  Each tap: (Hb*W, Cin) @ (Cin, Cout).
    acc = None
    for dy in range(3):
        for dx in range(3):
            win = slabs[dx][dy:dy + Hb].reshape(Hb * W, Cin)
            part = jnp.dot(win, w_ref[3 * dy + dx],
                           preferred_element_type=jnp.float32)
            acc = part if acc is None else acc + part

    # Fused epilogue: bias + ReLU, pool H via cheap plane max, pool W, store.
    y = jnp.maximum(acc + b_ref[...], 0.0)          # (Hb*W, Cout) f32
    y = y.reshape(ROWS, 2, W, Cout)
    y = jnp.maximum(y[:, 0], y[:, 1])               # pool along H -> (ROWS, W, C)
    y = y.reshape(ROWS, Wh, 2, Cout)
    y = jnp.max(y, axis=2)                          # pool along W -> (ROWS, Wh, C)
    o_ref[...] = y.astype(o_ref.dtype)


def _fused_heads_kernel(x_ref, cmd_ref, w1_ref, b1_ref, w2_ref, b2_ref,
                        w3_ref, b3_ref, w4_ref, b4_ref, o_ref, acc_ref):
    """All 4 affordance heads in one kernel; layer 1 folded along N.

    grid = (nk,)  - K tiles of the (folded) first Linear layer.
    x_ref:   (B, tk)  bf16 feature K-tile     cmd_ref: (B, 1) int32 command
    w1_ref:  (tk, 4*H1) bf16                  b1_ref:  (1, 4*H1) f32
    w2..w4:  (4, Hi, Hj) bf16 per-head        b2..b4:  (4, 1, Hj) f32
    o_ref:   (4, B, OUT_PAD) f32              acc_ref: (B, 4*H1) f32 scratch
    """
    k = pl.program_id(0)               # top level only (interpret-safe)
    nk = pl.num_programs(0)

    @pl.when(k == 0)
    def _init():
        acc_ref[...] = jnp.zeros_like(acc_ref)

    # Layer 1 for all heads at once: N = 4*H1, K streamed over the grid.
    acc_ref[...] += jnp.dot(x_ref[...], w1_ref[...],
                            preferred_element_type=jnp.float32)

    @pl.when(k == nk - 1)
    def _finalize():
        n_heads, H1, _ = w2_ref.shape
        B = acc_ref.shape[0]
        OUT = o_ref.shape[-1]

        h_all = jnp.maximum(acc_ref[...] + b1_ref[...], 0.0).astype(jnp.bfloat16)

        lanes = jax.lax.broadcasted_iota(jnp.int32, (B, OUT), 1)
        onehot = (lanes == cmd_ref[...]).astype(jnp.float32)

        outs = []
        for h in range(n_heads):
            a = h_all[:, h * H1:(h + 1) * H1]
            a = jnp.maximum(
                jnp.dot(a, w2_ref[h], preferred_element_type=jnp.float32)
                + b2_ref[h], 0.0).astype(jnp.bfloat16)
            a = jnp.maximum(
                jnp.dot(a, w3_ref[h], preferred_element_type=jnp.float32)
                + b3_ref[h], 0.0).astype(jnp.bfloat16)
            out = (jnp.dot(a, w4_ref[h], preferred_element_type=jnp.float32)
                   + b4_ref[h])                                   # (B, OUT) f32
            if h < 2:
                # Command-conditioned gather (lane_dist / route_angle):
                # one-hot select over lanes, result broadcast over lanes.
                sel = jnp.sum(out * onehot, axis=-1, keepdims=True)
                out = jnp.broadcast_to(sel, (B, OUT))
            outs.append(out)
        o_ref[...] = jnp.stack(outs, axis=0)


# ---------------------------------------------------------------------------
# pallas_call wrappers
# ---------------------------------------------------------------------------
def conv3x3_relu_maxpool(x_nhwc, w_taps, bias):
    """x_nhwc: (B, H, W, C_PAD) bf16 (UNPADDED spatially); w_taps: (9, C, C) bf16."""
    B, H, W, C = x_nhwc.shape
    assert H % 2 == 0 and W % 2 == 0, "MaxPool2d(2,2) requires even spatial dims"
    Cout = w_taps.shape[-1]
    Hh, Wh = H // 2, W // 2
    rows = max(rr for rr in (4, 2, 1) if Hh % rr == 0)   # pooled rows per step
    R = Hh // rows
    return pl.pallas_call(
        _conv3x3_relu_pool_kernel,
        out_shape=jax.ShapeDtypeStruct((B, Hh, Wh, Cout), x_nhwc.dtype),
        grid=(B, R),
        in_specs=[
            pl.BlockSpec((None, H, W, C), lambda b, r: (b, 0, 0, 0)),
            pl.BlockSpec((9, C, Cout), lambda b, r: (0, 0, 0)),
            pl.BlockSpec((1, Cout), lambda b, r: (0, 0)),
        ],
        out_specs=pl.BlockSpec((None, rows, Wh, Cout), lambda b, r: (b, r, 0, 0)),
        scratch_shapes=[pltpu.VMEM((H + 2, W + 2, C), x_nhwc.dtype)],
        compiler_params=pltpu.CompilerParams(
            dimension_semantics=("parallel", "arbitrary"),
            vmem_limit_bytes=VMEM_LIMIT),
    )(x_nhwc, w_taps, bias)


def fused_mlp_heads(features, command, head_params, *, tk=2048):
    """features: (B, F) bf16 (NHWC/C_PAD flattening); command: (B,) int32 in [0,4)."""
    B, F = features.shape
    W1, B1, W2, B2, W3, B3, W4, B4 = head_params
    NH1 = W1.shape[1]
    n_heads, H1, H2 = W2.shape
    H3 = W3.shape[-1]
    OUT = W4.shape[-1]
    assert W1.shape[0] == F and NH1 == n_heads * H1
    tk = min(tk, F)
    assert F % tk == 0
    nk = F // tk
    cmd = command.reshape(B, 1).astype(jnp.int32)
    return pl.pallas_call(
        _fused_heads_kernel,
        out_shape=jax.ShapeDtypeStruct((n_heads, B, OUT), jnp.float32),
        grid=(nk,),
        in_specs=[
            pl.BlockSpec((B, tk), lambda k: (0, k)),              # features (K tiled)
            pl.BlockSpec((B, 1), lambda k: (0, 0)),               # command
            pl.BlockSpec((tk, NH1), lambda k: (k, 0)),            # W1 folded over heads
            pl.BlockSpec((1, NH1), lambda k: (0, 0)),             # b1 folded
            pl.BlockSpec((n_heads, H1, H2), lambda k: (0, 0, 0)),  # W2
            pl.BlockSpec((n_heads, 1, H2), lambda k: (0, 0, 0)),   # b2
            pl.BlockSpec((n_heads, H2, H3), lambda k: (0, 0, 0)),  # W3
            pl.BlockSpec((n_heads, 1, H3), lambda k: (0, 0, 0)),   # b3
            pl.BlockSpec((n_heads, H3, OUT), lambda k: (0, 0, 0)),  # W4 (lane-padded)
            pl.BlockSpec((n_heads, 1, OUT), lambda k: (0, 0, 0)),   # b4
        ],
        out_specs=pl.BlockSpec((n_heads, B, OUT), lambda k: (0, 0, 0)),
        scratch_shapes=[pltpu.VMEM((B, NH1), jnp.float32)],
        compiler_params=pltpu.CompilerParams(
            dimension_semantics=("arbitrary",),
            vmem_limit_bytes=VMEM_LIMIT),
    )(features, cmd, W1, B1, W2, B2, W3, B3, W4, B4)


# ---------------------------------------------------------------------------
# AffordancePredictor forward
# ---------------------------------------------------------------------------
def affordance_predictor_forward(img_nchw, command, conv_params, head_params):
    """img_nchw: (B, 3, H, W) f32; command: (B,) int32 in [0, 4)."""
    B = img_nchw.shape[0]
    # NCHW -> NHWC (channels on the lane axis), bf16, channel-pad to 128 lanes.
    x = jnp.transpose(img_nchw, (0, 2, 3, 1)).astype(jnp.bfloat16)
    x = jnp.pad(x, ((0, 0), (0, 0), (0, 0), (0, C_PAD - x.shape[-1])))

    # Frozen feature extractor: conv3x3 + ReLU + maxpool blocks (scaled down).
    # TODO(synk): the real module loads pretrained torchvision VGG16 weights
    # (13 convs / 5 blocks); reproduced structurally with frozen random weights.
    for w_taps, bias, _real_cout in conv_params:
        x = conv3x3_relu_maxpool(x, w_taps, bias)

    # AdaptiveAvgPool2d is the identity when the post-conv spatial size equals
    # the pool target (as for 224x224 -> 7x7 in real VGG16); the demo resolution
    # is chosen so that holds here too.
    # TODO(synk): general input resolutions need a real adaptive average pool.
    _, Hf, Wf, C = x.shape
    # No transpose before the heads: W1's rows were permuted at prep time to the
    # NHWC / C_PAD flattening, so this reshape is free.
    features = x.reshape(B, Hf * Wf * C)

    heads = fused_mlp_heads(features, command, head_params)   # (4, B, 128) f32

    pred_lane_dist = heads[0, :, 0]     # command gather already done in-kernel
    pred_route_angle = heads[1, :, 0]
    pred_tl_dist = heads[2, :, 0]       # torch.squeeze(dim=1)
    pred_tl_state = heads[3, :, :2]     # classification logits
    return pred_lane_dist, pred_route_angle, pred_tl_dist, pred_tl_state


# ---------------------------------------------------------------------------
# Deterministic parameter construction (frozen random stand-ins)
# ---------------------------------------------------------------------------
def _init_linear(key, in_dim, out_dim):
    kw, kb = jax.random.split(key)
    w = jax.random.normal(kw, (in_dim, out_dim), jnp.float32) / jnp.sqrt(1.0 * in_dim)
    b = 0.01 * jax.random.normal(kb, (out_dim,), jnp.float32)
    return w, b


def _init_conv_layer(key, cin, cout):
    kw, kb = jax.random.split(key)
    w = jax.random.normal(kw, (3, 3, cin, cout), jnp.float32) / jnp.sqrt(9.0 * cin)
    b = 0.01 * jax.random.normal(kb, (cout,), jnp.float32)
    # TODO(synk): low-channel layers waste MXU K / DMA on the 128-channel pad;
    # packing taps x real channels into K would remove it (review item 5).
    w_taps = jnp.zeros((9, C_PAD, C_PAD), jnp.float32)
    w_taps = w_taps.at[:, :cin, :cout].set(w.reshape(9, cin, cout))
    bias = jnp.zeros((1, C_PAD), jnp.float32).at[0, :cout].set(b)
    return w_taps.astype(jnp.bfloat16), bias, cout


def _init_head_params(key, real_cout, hh, wh, h1, h2, h3, out_dims):
    """Returns (kernel_params, ref_params).

    Kernel W1 rows are permuted from torch's (c, h, w) flattening to the
    kernel's (h, w, c_pad) flattening and folded over heads along N.
    """
    in_dim = real_cout * hh * wh
    n_heads = len(out_dims)
    keys = jax.random.split(key, n_heads)
    w1k_cols, b1_cols = [], []
    W2s, B2s, W3s, B3s, W4s, B4s = [], [], [], [], [], []
    ref_heads = []
    for kh, od in zip(keys, out_dims):
        k1, k2, k3, k4 = jax.random.split(kh, 4)
        w1, b1 = _init_linear(k1, in_dim, h1)
        w2, b2 = _init_linear(k2, h1, h2)
        w3, b3 = _init_linear(k3, h2, h3)
        w4, b4 = _init_linear(k4, h3, od)
        ref_heads.append((w1, b1, w2, b2, w3, b3, w4, b4))
        # (c*hh*wh + h*wh + w) rows -> (h*wh*C_PAD + w*C_PAD + c) rows.
        w1_nhwc = jnp.transpose(w1.reshape(real_cout, hh, wh, h1), (1, 2, 0, 3))
        w1_nhwc = jnp.pad(w1_nhwc, ((0, 0), (0, 0), (0, C_PAD - real_cout), (0, 0)))
        w1k_cols.append(w1_nhwc.reshape(hh * wh * C_PAD, h1))
        b1_cols.append(b1)
        W2s.append(w2); B2s.append(b2)
        W3s.append(w3); B3s.append(b3)
        W4s.append(jnp.zeros((h3, OUT_PAD), jnp.float32).at[:, :od].set(w4))
        B4s.append(jnp.zeros((OUT_PAD,), jnp.float32).at[:od].set(b4))
    W1 = jnp.concatenate(w1k_cols, axis=1).astype(jnp.bfloat16)   # (F, 4*h1)
    B1 = jnp.concatenate(b1_cols, axis=0)[None, :]                # (1, 4*h1) f32
    W2 = jnp.stack(W2s).astype(jnp.bfloat16); B2 = jnp.stack(B2s)[:, None, :]
    W3 = jnp.stack(W3s).astype(jnp.bfloat16); B3 = jnp.stack(B3s)[:, None, :]
    W4 = jnp.stack(W4s).astype(jnp.bfloat16); B4 = jnp.stack(B4s)[:, None, :]
    kernel_params = (W1, B1, W2, B2, W3, B3, W4, B4)
    return kernel_params, ref_heads


# ---------------------------------------------------------------------------
# Pure-JAX reference (torch-layout weights, same cast points)
# ---------------------------------------------------------------------------
def _reference_forward(img_nchw, command, conv_params, ref_heads):
    x = jnp.transpose(img_nchw, (0, 2, 3, 1)).astype(jnp.bfloat16)
    x = jnp.pad(x, ((0, 0), (0, 0), (0, 0), (0, C_PAD - x.shape[-1])))
    for w_taps, bias, _ in conv_params:
        Bv, H, W, C = x.shape
        Cout = w_taps.shape[-1]
        xp = jnp.pad(x, ((0, 0), (1, 1), (1, 1), (0, 0)))
        acc = jnp.zeros((Bv, H, W, Cout), jnp.float32)
        for tap in range(9):
            dy, dx = tap // 3, tap % 3
            win = xp[:, dy:dy + H, dx:dx + W, :]
            acc = acc + jnp.einsum('bhwc,co->bhwo', win, w_taps[tap],
                                   preferred_element_type=jnp.float32)
        y = jnp.maximum(acc + bias.reshape(1, 1, 1, Cout), 0.0)
        y = y.reshape(Bv, H // 2, 2, W // 2, 2, Cout).max(axis=(2, 4))
        x = y.astype(jnp.bfloat16)
    real_cout = conv_params[-1][2]
    Bv = x.shape[0]
    # torch: features = NCHW activations .view(B, -1)
    features = jnp.transpose(x, (0, 3, 1, 2))[:, :real_cout].reshape(Bv, -1)
    outs = []
    for (w1, b1, w2, b2, w3, b3, w4, b4) in ref_heads:
        a = jnp.maximum(jnp.dot(features, w1.astype(jnp.bfloat16),
                                preferred_element_type=jnp.float32) + b1, 0.0)
        a = a.astype(jnp.bfloat16)
        a = jnp.maximum(jnp.dot(a, w2.astype(jnp.bfloat16),
                                preferred_element_type=jnp.float32) + b2, 0.0)
        a = a.astype(jnp.bfloat16)
        a = jnp.maximum(jnp.dot(a, w3.astype(jnp.bfloat16),
                                preferred_element_type=jnp.float32) + b3, 0.0)
        a = a.astype(jnp.bfloat16)
        outs.append(jnp.dot(a, w4.astype(jnp.bfloat16),
                            preferred_element_type=jnp.float32) + b4)
    cmd = command[:, None].astype(jnp.int32)
    lane = jnp.take_along_axis(outs[0], cmd, axis=1)[:, 0]
    route = jnp.take_along_axis(outs[1], cmd, axis=1)[:, 0]
    tld = outs[2][:, 0]
    tls = outs[3]
    return lane, route, tld, tls


# ---------------------------------------------------------------------------
if __name__ == "__main__":
    key = jax.random.PRNGKey(0)
    k_img, k_conv, k_head = jax.random.split(key, 3)

    B, H, W = 2, 32, 32
    img = jax.random.normal(k_img, (B, 3, H, W), jnp.float32)   # NCHW like PyTorch
    command = jnp.array([0, 2], dtype=jnp.int32)

    # Scaled-down frozen feature extractor: 2 conv+ReLU+pool blocks, 3 -> 32 -> 64.
    kc = jax.random.split(k_conv, 2)
    conv_params = [
        _init_conv_layer(kc[0], 3, 32),
        _init_conv_layer(kc[1], 32, 64),
    ]
    Hf, Wf = H // 4, W // 4                  # 8x8 spatial after two 2x2 pools
    real_cout = conv_params[-1][2]           # 64 real feature channels

    # Head hidden widths scaled from 4096->2048->1024 (kept 128-aligned).
    head_params, ref_heads = _init_head_params(
        k_head, real_cout, Hf, Wf, 256, 128, 128, (4, 4, 1, 2))

    outs = affordance_predictor_forward(img, command, conv_params, head_params)
    outs = jax.block_until_ready(outs)
    refs = jax.block_until_ready(
        _reference_forward(img, command, conv_params, ref_heads))

    pred_lane_dist, pred_route_angle, pred_tl_dist, pred_tl_state = outs
    assert pred_lane_dist.shape == (B,)
    assert pred_route_angle.shape == (B,)
    assert pred_tl_dist.shape == (B,)
    assert pred_tl_state.shape == (B, 2)
    for got, want in zip(outs, refs):
        assert bool(jnp.all(jnp.isfinite(got)))
        assert bool(jnp.allclose(got, want, rtol=5e-2, atol=5e-2))

    print("KERNEL_OK")
</pallas_src>

<mosaic_0001>
module attributes {stable_mosaic.version = 11 : i64} {
  func.func @_conv3x3_relu_pool_kernel(%arg0: i32, %arg1: i32, %arg2: memref<1x32x32x128xbf16, #tpu.memory_space<vmem>>, %arg3: memref<9x128x128xbf16, #tpu.memory_space<vmem>>, %arg4: memref<1x128xf32, #tpu.memory_space<vmem>>, %arg5: memref<1x4x16x128xbf16, #tpu.memory_space<vmem>>, %arg6: memref<34x34x128xbf16, #tpu.memory_space<vmem>>) attributes {dimension_semantics = [#tpu.dimension_semantics<parallel>, #tpu.dimension_semantics<arbitrary>], iteration_bounds = array<i64: 2, 4>, scalar_prefetch = 0 : i64, scratch_operands = 1 : i64, tpu.core_type = #tpu.core_type<tc>, window_params = [{transform_indices = @transform_0, window_bounds = array<i64: 1, 32, 32, 128>}, {pipeline_mode = #tpu.pipeline_mode<synchronous>, transform_indices = @transform_1, window_bounds = array<i64: 9, 128, 128>}, {pipeline_mode = #tpu.pipeline_mode<synchronous>, transform_indices = @transform_2, window_bounds = array<i64: 1, 128>}, {transform_indices = @transform_3, window_bounds = array<i64: 1, 4, 16, 128>}]} {
    %c0_i32 = arith.constant 0 : i32
    %0 = arith.cmpi eq, %arg1, %c0_i32 : i32
    %1 = arith.extui %0 : i1 to i32
    %c0_i32_0 = arith.constant 0 : i32
    %2 = arith.cmpi ne, %1, %c0_i32_0 : i32
    scf.if %2 {
      %cst_41 = arith.constant 0.000000e+00 : bf16
      %80 = vector.broadcast %cst_41 : bf16 to vector<34x34x128xbf16>
      %c0_42 = arith.constant 0 : index
      %c0_43 = arith.constant 0 : index
      %c0_44 = arith.constant 0 : index
      %81 = vector.load %arg6[%c0_42, %c0_43, %c0_44] : memref<34x34x128xbf16, #tpu.memory_space<vmem>>, vector<34x34x128xbf16>
      tpu.vector_store %arg6[%c0_42, %c0_43, %c0_44], %80 {strides = array<i32>} : memref<34x34x128xbf16, #tpu.memory_space<vmem>>, vector<34x34x128xbf16>,
      %c0_45 = arith.constant 0 : index
      %c0_46 = arith.constant 0 : index
      %c0_47 = arith.constant 0 : index
      %c0_48 = arith.constant 0 : index
      %82 = vector.load %arg2[%c0_45, %c0_46, %c0_47, %c0_48] : memref<1x32x32x128xbf16, #tpu.memory_space<vmem>>, vector<1x32x32x128xbf16>
      %83 = vector.shape_cast %82 : vector<1x32x32x128xbf16> to vector<32x32x128xbf16>
      %c1_49 = arith.constant 1 : index
      %c1_50 = arith.constant 1 : index
      %c0_51 = arith.constant 0 : index
      %84 = vector.load %arg6[%c1_49, %c1_50, %c0_51] : memref<34x34x128xbf16, #tpu.memory_space<vmem>>, vector<32x32x128xbf16>
      tpu.vector_store %arg6[%c1_49, %c1_50, %c0_51], %83 {strides = array<i32>} : memref<34x34x128xbf16, #tpu.memory_space<vmem>>, vector<32x32x128xbf16>,
    } else {
    }
    %c8_i32 = arith.constant 8 : i32
    %3 = arith.muli %arg1, %c8_i32 : i32
    %4 = arith.index_cast %3 : i32 to index
    %c0 = arith.constant 0 : index
    %c0_1 = arith.constant 0 : index
    %5 = vector.load %arg6[%4, %c0, %c0_1] : memref<34x34x128xbf16, #tpu.memory_space<vmem>>, vector<10x32x128xbf16>
    %6 = arith.index_cast %3 : i32 to index
    %c1 = arith.constant 1 : index
    %c0_2 = arith.constant 0 : index
    %7 = vector.load %arg6[%6, %c1, %c0_2] : memref<34x34x128xbf16, #tpu.memory_space<vmem>>, vector<10x32x128xbf16>
    %8 = arith.index_cast %3 : i32 to index
    %c2 = arith.constant 2 : index
    %c0_3 = arith.constant 0 : index
    %9 = vector.load %arg6[%8, %c2, %c0_3] : memref<34x34x128xbf16, #tpu.memory_space<vmem>>, vector<10x32x128xbf16>
    %10 = vector.extract_strided_slice %5 {offsets = [0, 0, 0], sizes = [8, 32, 128], strides = [1, 1, 1]} : vector<10x32x128xbf16> to vector<8x32x128xbf16>
    %11 = vector.shape_cast %10 : vector<8x32x128xbf16> to vector<256x128xbf16>
    %c0_4 = arith.constant 0 : index
    %c0_5 = arith.constant 0 : index
    %c0_6 = arith.constant 0 : index
    %12 = vector.load %arg3[%c0_4, %c0_5, %c0_6] : memref<9x128x128xbf16, #tpu.memory_space<vmem>>, vector<1x128x128xbf16>
    %13 = vector.shape_cast %12 : vector<1x128x128xbf16> to vector<128x128xbf16>
    %cst = arith.constant dense<0.000000e+00> : vector<256x128xf32>
    %14 = tpu.matmul %11, %13, %cst {dimension_numbers = #tpu.dot_dimension_numbers<[1], [0], [0], [1], [0, 0, 1, 1], [], []>} : vector<256x128xbf16>, vector<128x128xbf16>, vector<256x128xf32> -> vector<256x128xf32>
    %15 = vector.extract_strided_slice %7 {offsets = [0, 0, 0], sizes = [8, 32, 128], strides = [1, 1, 1]} : vector<10x32x128xbf16> to vector<8x32x128xbf16>
    %16 = vector.shape_cast %15 : vector<8x32x128xbf16> to vector<256x128xbf16>
    %c1_7 = arith.constant 1 : index
    %c0_8 = arith.constant 0 : index
    %c0_9 = arith.constant 0 : index
    %17 = vector.load %arg3[%c1_7, %c0_8, %c0_9] : memref<9x128x128xbf16, #tpu.memory_space<vmem>>, vector<1x128x128xbf16>
    %18 = vector.shape_cast %17 : vector<1x128x128xbf16> to vector<128x128xbf16>
    %cst_10 = arith.constant dense<0.000000e+00> : vector<256x128xf32>
    %19 = tpu.matmul %16, %18, %cst_10 {dimension_numbers = #tpu.dot_dimension_numbers<[1], [0], [0], [1], [0, 0, 1, 1], [], []>} : vector<256x128xbf16>, vector<128x128xbf16>, vector<256x128xf32> -> vector<256x128xf32>
    %20 = arith.addf %14, %19 : vector<256x128xf32>
    %21 = vector.extract_strided_slice %9 {offsets = [0, 0, 0], sizes = [8, 32, 128], strides = [1, 1, 1]} : vector<10x32x128xbf16> to vector<8x32x128xbf16>
    %22 = vector.shape_cast %21 : vector<8x32x128xbf16> to vector<256x128xbf16>
    %c2_11 = arith.constant 2 : index
    %c0_12 = arith.constant 0 : index
    %c0_13 = arith.constant 0 : index
    %23 = vector.load %arg3[%c2_11, %c0_12, %c0_13] : memref<9x128x128xbf16, #tpu.memory_space<vmem>>, vector<1x128x128xbf16>
    %24 = vector.shape_cast %23 : vector<1x128x128xbf16> to vector<128x128xbf16>
    %cst_14 = arith.constant dense<0.000000e+00> : vector<256x128xf32>
    %25 = tpu.matmul %22, %24, %cst_14 {dimension_numbers = #tpu.dot_dimension_numbers<[1], [0], [0], [1], [0, 0, 1, 1], [], []>} : vector<256x128xbf16>, vector<128x128xbf16>, vector<256x128xf32> -> vector<256x128xf32>
    %26 = arith.addf %20, %25 : vector<256x128xf32>
    %27 = vector.extract_strided_slice %5 {offsets = [1, 0, 0], sizes = [8, 32, 128], strides = [1, 1, 1]} : vector<10x32x128xbf16> to vector<8x32x128xbf16>
    %28 = vector.shape_cast %27 : vector<8x32x128xbf16> to vector<256x128xbf16>
    %c3 = arith.constant 3 : index
    %c0_15 = arith.constant 0 : index
    %c0_16 = arith.constant 0 : index
    %29 = vector.load %arg3[%c3, %c0_15, %c0_16] : memref<9x128x128xbf16, #tpu.memory_space<vmem>>, vector<1x128x128xbf16>
    %30 = vector.shape_cast %29 : vector<1x128x128xbf16> to vector<128x128xbf16>
    %cst_17 = arith.constant dense<0.000000e+00> : vector<256x128xf32>
    %31 = tpu.matmul %28, %30, %cst_17 {dimension_numbers = #tpu.dot_dimension_numbers<[1], [0], [0], [1], [0, 0, 1, 1], [], []>} : vector<256x128xbf16>, vector<128x128xbf16>, vector<256x128xf32> -> vector<256x128xf32>
    %32 = arith.addf %26, %31 : vector<256x128xf32>
    %33 = vector.extract_strided_slice %7 {offsets = [1, 0, 0], sizes = [8, 32, 128], strides = [1, 1, 1]} : vector<10x32x128xbf16> to vector<8x32x128xbf16>
    %34 = vector.shape_cast %33 : vector<8x32x128xbf16> to vector<256x128xbf16>
    %c4 = arith.constant 4 : index
    %c0_18 = arith.constant 0 : index
    %c0_19 = arith.constant 0 : index
    %35 = vector.load %arg3[%c4, %c0_18, %c0_19] : memref<9x128x128xbf16, #tpu.memory_space<vmem>>, vector<1x128x128xbf16>
    %36 = vector.shape_cast %35 : vector<1x128x128xbf16> to vector<128x128xbf16>
    %cst_20 = arith.constant dense<0.000000e+00> : vector<256x128xf32>
    %37 = tpu.matmul %34, %36, %cst_20 {dimension_numbers = #tpu.dot_dimension_numbers<[1], [0], [0], [1], [0, 0, 1, 1], [], []>} : vector<256x128xbf16>, vector<128x128xbf16>, vector<256x128xf32> -> vector<256x128xf32>
    %38 = arith.addf %32, %37 : vector<256x128xf32>
    %39 = vector.extract_strided_slice %9 {offsets = [1, 0, 0], sizes = [8, 32, 128], strides = [1, 1, 1]} : vector<10x32x128xbf16> to vector<8x32x128xbf16>
    %40 = vector.shape_cast %39 : vector<8x32x128xbf16> to vector<256x128xbf16>
    %c5 = arith.constant 5 : index
    %c0_21 = arith.constant 0 : index
    %c0_22 = arith.constant 0 : index
    %41 = vector.load %arg3[%c5, %c0_21, %c0_22] : memref<9x128x128xbf16, #tpu.memory_space<vmem>>, vector<1x128x128xbf16>
    %42 = vector.shape_cast %41 : vector<1x128x128xbf16> to vector<128x128xbf16>
    %cst_23 = arith.constant dense<0.000000e+00> : vector<256x128xf32>
    %43 = tpu.matmul %40, %42, %cst_23 {dimension_numbers = #tpu.dot_dimension_numbers<[1], [0], [0], [1], [0, 0, 1, 1], [], []>} : vector<256x128xbf16>, vector<128x128xbf16>, vector<256x128xf32> -> vector<256x128xf32>
    %44 = arith.addf %38, %43 : vector<256x128xf32>
    %45 = vector.extract_strided_slice %5 {offsets = [2, 0, 0], sizes = [8, 32, 128], strides = [1, 1, 1]} : vector<10x32x128xbf16> to vector<8x32x128xbf16>
    %46 = vector.shape_cast %45 : vector<8x32x128xbf16> to vector<256x128xbf16>
    %c6 = arith.constant 6 : index
    %c0_24 = arith.constant 0 : index
    %c0_25 = arith.constant 0 : index
    %47 = vector.load %arg3[%c6, %c0_24, %c0_25] : memref<9x128x128xbf16, #tpu.memory_space<vmem>>, vector<1x128x128xbf16>
    %48 = vector.shape_cast %47 : vector<1x128x128xbf16> to vector<128x128xbf16>
    %cst_26 = arith.constant dense<0.000000e+00> : vector<256x128xf32>
    %49 = tpu.matmul %46, %48, %cst_26 {dimension_numbers = #tpu.dot_dimension_numbers<[1], [0], [0], [1], [0, 0, 1, 1], [], []>} : vector<256x128xbf16>, vector<128x128xbf16>, vector<256x128xf32> -> vector<256x128xf32>
    %50 = arith.addf %44, %49 : vector<256x128xf32>
    %51 = vector.extract_strided_slice %7 {offsets = [2, 0, 0], sizes = [8, 32, 128], strides = [1, 1, 1]} : vector<10x32x128xbf16> to vector<8x32x128xbf16>
    %52 = vector.shape_cast %51 : vector<8x32x128xbf16> to vector<256x128xbf16>
    %c7 = arith.constant 7 : index
    %c0_27 = arith.constant 0 : index
    %c0_28 = arith.constant 0 : index
    %53 = vector.load %arg3[%c7, %c0_27, %c0_28] : memref<9x128x128xbf16, #tpu.memory_space<vmem>>, vector<1x128x128xbf16>
    %54 = vector.shape_cast %53 : vector<1x128x128xbf16> to vector<128x128xbf16>
    %cst_29 = arith.constant dense<0.000000e+00> : vector<256x128xf32>
    %55 = tpu.matmul %52, %54, %cst_29 {dimension_numbers = #tpu.dot_dimension_numbers<[1], [0], [0], [1], [0, 0, 1, 1], [], []>} : vector<256x128xbf16>, vector<128x128xbf16>, vector<256x128xf32> -> vector<256x128xf32>
    %56 = arith.addf %50, %55 : vector<256x128xf32>
    %57 = vector.extract_strided_slice %9 {offsets = [2, 0, 0], sizes = [8, 32, 128], strides = [1, 1, 1]} : vector<10x32x128xbf16> to vector<8x32x128xbf16>
    %58 = vector.shape_cast %57 : vector<8x32x128xbf16> to vector<256x128xbf16>
    %c8 = arith.constant 8 : index
    %c0_30 = arith.constant 0 : index
    %c0_31 = arith.constant 0 : index
    %59 = vector.load %arg3[%c8, %c0_30, %c0_31] : memref<9x128x128xbf16, #tpu.memory_space<vmem>>, vector<1x128x128xbf16>
    %60 = vector.shape_cast %59 : vector<1x128x128xbf16> to vector<128x128xbf16>
    %cst_32 = arith.constant dense<0.000000e+00> : vector<256x128xf32>
    %61 = tpu.matmul %58, %60, %cst_32 {dimension_numbers = #tpu.dot_dimension_numbers<[1], [0], [0], [1], [0, 0, 1, 1], [], []>} : vector<256x128xbf16>, vector<128x128xbf16>, vector<256x128xf32> -> vector<256x128xf32>
    %62 = arith.addf %56, %61 : vector<256x128xf32>
    %c0_33 = arith.constant 0 : index
    %c0_34 = arith.constant 0 : index
    %63 = vector.load %arg4[%c0_33, %c0_34] : memref<1x128xf32, #tpu.memory_space<vmem>>, vector<1x128xf32>
    %64 = vector.broadcast %63 : vector<1x128xf32> to vector<256x128xf32>
    %65 = arith.addf %62, %64 : vector<256x128xf32>
    %cst_35 = arith.constant 0.000000e+00 : f32
    %66 = vector.broadcast %cst_35 : f32 to vector<256x128xf32>
    %67 = arith.maximumf %65, %66 : vector<256x128xf32>
    %68 = vector.shape_cast %67 : vector<256x128xf32> to vector<4x2x32x128xf32>
    %69 = vector.extract_strided_slice %68 {offsets = [0, 0, 0, 0], sizes = [4, 1, 32, 128], strides = [1, 1, 1, 1]} : vector<4x2x32x128xf32> to vector<4x1x32x128xf32>
    %70 = vector.shape_cast %69 : vector<4x1x32x128xf32> to vector<4x32x128xf32>
    %71 = vector.extract_strided_slice %68 {offsets = [0, 1, 0, 0], sizes = [4, 1, 32, 128], strides = [1, 1, 1, 1]} : vector<4x2x32x128xf32> to vector<4x1x32x128xf32>
    %72 = vector.shape_cast %71 : vector<4x1x32x128xf32> to vector<4x32x128xf32>
    %73 = arith.maximumf %70, %72 : vector<4x32x128xf32>
    %74 = vector.shape_cast %73 : vector<4x32x128xf32> to vector<4x16x2x128xf32>
    %cst_36 = arith.constant dense<0xFF800000> : vector<4x16x128xf32>
    %75 = vector.multi_reduction <maximumf>, %74, %cst_36 [2] : vector<4x16x2x128xf32> to vector<4x16x128xf32>
    %76 = arith.truncf %75 : vector<4x16x128xf32> to vector<4x16x128xbf16>
    %c0_37 = arith.constant 0 : index
    %c0_38 = arith.constant 0 : index
    %c0_39 = arith.constant 0 : index
    %c0_40 = arith.constant 0 : index
    %77 = vector.load %arg5[%c0_37, %c0_38, %c0_39, %c0_40] : memref<1x4x16x128xbf16, #tpu.memory_space<vmem>>, vector<1x4x16x128xbf16>
    %78 = vector.shape_cast %77 : vector<1x4x16x128xbf16> to vector<4x16x128xbf16>
    %79 = vector.shape_cast %76 : vector<4x16x128xbf16> to vector<1x4x16x128xbf16>
    tpu.vector_store %arg5[%c0_37, %c0_38, %c0_39, %c0_40], %79 {strides = array<i32>} : memref<1x4x16x128xbf16, #tpu.memory_space<vmem>>, vector<1x4x16x128xbf16>,
    return
  }
  func.func @transform_0(%arg0: i32, %arg1: i32) -> (i32, i32, i32, i32) {
    %c0_i32 = arith.constant 0 : i32
    %c0_i32_0 = arith.constant 0 : i32
    %c0_i32_1 = arith.constant 0 : i32
    %c0_i32_2 = arith.constant 0 : i32
    return %arg0, %c0_i32, %c0_i32_0, %c0_i32_1 : i32, i32, i32, i32
  }
  func.func @transform_1(%arg0: i32, %arg1: i32) -> (i32, i32, i32) {
    %c0_i32 = arith.constant 0 : i32
    %c0_i32_0 = arith.constant 0 : i32
    %c0_i32_1 = arith.constant 0 : i32
    %c0_i32_2 = arith.constant 0 : i32
    return %c0_i32, %c0_i32_0, %c0_i32_1 : i32, i32, i32
  }
  func.func @transform_2(%arg0: i32, %arg1: i32) -> (i32, i32) {
    %c0_i32 = arith.constant 0 : i32
    %c0_i32_0 = arith.constant 0 : i32
    %c0_i32_1 = arith.constant 0 : i32
    return %c0_i32, %c0_i32_0 : i32, i32
  }
  func.func @transform_3(%arg0: i32, %arg1: i32) -> (i32, i32, i32, i32) {
    %c0_i32 = arith.constant 0 : i32
    %c0_i32_0 = arith.constant 0 : i32
    %c0_i32_1 = arith.constant 0 : i32
    return %arg0, %arg1, %c0_i32, %c0_i32_0 : i32, i32, i32, i32
  }
}

</mosaic_0001>

<bundles_post_ra>
// kernel: tpu_custom_call.1
= control target key start
LH: loop header
LB: loop body
LE: loop exit
PB: predicated region body
PF: predicated region fallthrough
CT: control target
= control target key end

     0   :  { %s10439_s0 = inlined_call_operand.hbm [shape: bf16[2,32,32,128], index: 0, kind: input, shape index: {}]   ;;  %s10440_s1 = inlined_call_operand.hbm [shape: bf16[9,128,128], index: 1, kind: input, shape index: {}]   ;;  %s10441_s2 = inlined_call_operand.vmem [shape: f32[1,128], index: 2, kind: input, shape index: {}]   ;;  %s10442_s3 = inlined_call_operand.hbm [shape: bf16[2,16,16,128], index: 3, kind: output, shape index: {}]  }
   0x1   :  { %10476 = sst [smem:[#allocation29_spill]] %s10440_s1 }
   0x2   :  { %8 = vsyncpa [#allocation4], 0 }
   0x3   :  { %10 = vsyncpa [#allocation4 + $0x1], 0 }
   0x4   :  { %11 = vsyncpa [#allocation7], 0 }
   0x5   :  { %12 = vsyncpa [#allocation5], 0 }
   0x6   :  { %14 = vsyncpa [#allocation5 + $0x1], 0  ;;  %s8375_s12 = smov 0   ;;  %s8377_s13 = smov 0  }
   0x7   :  { %s8379_s14 = smov 0   ;;  %s8381_s15 = smov 0  }
   0x8   :  { %s8383_s16 = smov 0   ;;  %s8385_s17 = smov 0  }
   0x9   :  { %s8387_s18 = smov 0   ;;  %s8389_s19 = smov 0  }
   0xa   :  { %s8391_s20 = smov 0   ;;  %s8393_s21 = smov 0  }
   0xb   :  { %s8395_s22 = smov 0  }
   0xc LB: > { %10477 = sst [smem:[#allocation12_spill]] %s8304_s12  ;;  %s6707_s23 = sadd.s32 4294967295, %s8344_s22   ;;  %s8344_s22 = sphi %s8395_s22, %s20_s22   ;;  %s8340_s21 = sphi %s8393_s21, %s10561_s21   ;;  %s8336_s20 = sphi %s8391_s20, %s10552_s20   ;;  %s8332_s19 = sphi %s8389_s19, %s10560_s19   ;;  %s8328_s18 = sphi %s8387_s18, %s10551_s18   ;;  %s8324_s17 = sphi %s8385_s17, %s10559_s17   ;;  %s8320_s16 = sphi %s8383_s16, %s10558_s16   ;;  %s8316_s15 = sphi %s8381_s15, %s10557_s15   ;;  %s8312_s14 = sphi %s8379_s14, %s10556_s14   ;;  %s8308_s13 = sphi %s8377_s13, %s10555_s13   ;;  %s8304_s12 = sphi %s8375_s12, %s10554_s12  }
   0xd   : > { %10478 = sst [smem:[#allocation13_spill]] %s8336_s20  ;;  %s6708_s24 = sadd.s32 4294967294, %s8344_s22  }
   0xe   : > { %p52_p0 = scmp.ne.s32.totalorder %s8320_s16, %s8316_s15  ;;  %p8431_p1 = scmp.eq.s32.totalorder %s6707_s23, 0 }
   0xf   : > { %s109_s26 = sadd.s32 1, %s8312_s14  ;;  %p119_p2 = scmp.ne.s32.totalorder %s8312_s14, %s8308_s13 }
  0x10   : > { %s10479_s25 = scalar_select %p8431_p1, 1, 0 }
  0x11   : > { %p8440_p3 = por %p8431_p1, %p52_p0  ;;  %p120_p4 = scmp.eq.s32.totalorder %s6707_s23, 7 }
  0x12   : > { %p125_p5 = scmp.ne.s32.totalorder %s8308_s13, %s8304_s12  ;;  %p126_p6 = scmp.eq.s32.totalorder %s6708_s24, 7 }
  0x13   : > { %s10480_s27 = scalar_select %p8440_p3, 1, 0 }
  0x14   : > { %p8446_p7 = por %p120_p4, %p119_p2  ;;  %p6709_p8 = scmp.ge.s32.totalorder %s8344_s22, 1 }
  0x15   : > { %p8451_p9 = por %p126_p6, %p125_p5  ;;  %p133_p10 = scmp.lt.s32.totalorder %s8344_s22, 9 }
  0x16   : > { %s10481_s28 = scalar_select %p8446_p7, 1, 0 }
  0x17   : > { %s10482_s29 = scalar_select %p8451_p9, 1, 0 }
  0x18   : > { %p8456_p11 = pnand %p6709_p8, %p133_p10  ;;  %s8346_s4 = smov [#allocation6]  }
  0x19   : > { %10483 = sst [smem:[#allocation14_spill]] %s10482_s29  ;;  %s145_s5 = sshll.u32 %s8346_s4, 4  ;;  %s146_s5 = int_to_ptr.vmem [resolvable:$true] %s145_s5 }
  0x1a   : > { %s10484_s30 = scalar_select %p8456_p11, 1, 0 }
  0x1b   : > { %p7932_p12 = pneg %p8456_p11  ;;  %s10486_s1 = sld [smem:[#allocation29_spill]] }
  0x1d   : > { %p8464_p13 = pnand %p7932_p12, %p8431_p1 }
  0x1f   : > { %p8162_p2 = pneg %p8464_p13 }
  0x21   : > { %s8160_s9 = scalar_lea.hbm %s10486_s1, 9216 }
  0x22   : > { %p8161_p0 = scmp.ne.s32.totalorder %s10486_s1, %s8160_s9  ;;  %p8167_p6 = scmp.lt.u32.totalorder %s8160_s9, %s10486_s1 }
  0x24   : > { %p8163_p4 = pnand %p8162_p2, %p8161_p0 }
  0x26   : > { %p8164_p5 = pneg %p8163_p4 }
  0x28   : > { %p8169_p8 = pnand %p8167_p6, %p8164_p5 }
  0x2a   : > { %8172 = shalt.err (!%p8169_p8)
}
  0x2b   : > { %s8173_s24 = scalar_lea.vmem %s146_s5, 9216  ;;  %p8181_p7 = scmp.lt.s32.totalorder %s146_s5, %s146_s5 }
  0x2c   : > { %p8174_p10 = scmp.ne.s32.totalorder %s146_s5, %s8173_s24  ;;  %p8182_p1 = scmp.lt.s32.totalorder %s8173_s24, %s8173_s24 }
  0x2e   : > { %p8176_p12 = pnand %p8174_p10, %p8162_p2  ;;  %p8183_p3 = por %p8182_p1, %p8181_p7 }
  0x30   : > { %p8177_p9 = pneg %p8176_p12 }
  0x32   : > { %p8184_p11 = pnand %p8183_p3, %p8177_p9 }
  0x34   : > { %8187 = shalt.err (!%p8184_p11)
}
  0x35   : > { %s10448_s4 = smov 64   ;;  %s10449_s7 = smov 4  }
  0x36   : > { %7935 = dma.hbm_to_vmem [thread:$0]  (!%p8464_p13), %s10486_s1, 9216, %s146_s5, [#allocation7], %s10448_s4, %s10448_s4, %s10449_s7  }
  0x37   : > { %s29_s10 = sadd.s32 1, %s8336_s20  ;;  %s32_s11 = sadd.s32 1, %s8340_s21 }
  0x38   : > { %p30_p1 = scmp.ge.s32.totalorder %s29_s10, 4  ;;  %s39_s15 = sadd.s32 1, %s8324_s17 }
  0x39   : > { %p46_p3 = scmp.ne.s32.totalorder %s8324_s17, %s8320_s16  ;;  %p47_p7 = scmp.eq.s32.totalorder %s8344_s22, 0 }
  0x3a   : > { %s10563_s10 = smov (%p30_p1, %s29_s10), 0  ;;  %s10565_s11 = smov (!%p30_p1, %s32_s11), %s8340_s21 }
  0x3b   : > { %10487 = sst [smem:[#allocation15_spill]] %s10563_s10  ;;  %s105_s6 = ssub.s32 %s8336_s20, %s10563_s10 }
  0x3c   : > { %p34_p9 = scmp.ge.s32.totalorder %s10565_s11, 2  ;;  %p7945_p11 = scmp.lt.s32.totalorder %s8344_s22, 8 }
  0x3d   : > { %p8499_p13 = por %p47_p7, %p46_p3  ;;  %s162_s23 = sand.u32 1, %s8324_s17  }
  0x3e   : > { %s10567_s11 = smov (%p34_p9, %s10565_s11), 0  ;;  %s6712_s24 = sshll.u32 %s162_s23, 9 }
  0x3f   : > { %10489 = sst [smem:[#allocation16_spill]] %s10567_s11  ;;  %s36_s8 = ssub.s32 %s8340_s21, %s10567_s11 }
  0x40   : > { %p37_p0 = scmp.eq.s32.totalorder %s36_s8, 0  ;;  %s106_s9 = sor.u32 %s105_s6, %s36_s8 }
  0x41   : > { %p107_p2 = scmp.eq.s32.totalorder %s106_s9, 0  ;;  %s6937_s4 = sshll.u32 %s8340_s21, 13 }
  0x42   : > { %s8510_s7 = scalar_select %p37_p0, %s8324_s17, %s39_s15  }
  0x43   : > { %s8515_s1 = scalar_select %p107_p2, %s8312_s14, %s109_s26  }
  0x44   : > { %s8520_s29 = scalar_lea.hbm %s10439_s0, %s6937_s4  ;;  %s166_s12 = scalar_lea.vmem [#allocation3], %s6712_s24 }
  0x45   : > { %s173_s11 = sshll.u32 %s166_s12, 4  ;;  %p8528_p4 = pnand %p7945_p11, %p8499_p13  ;;  %s8522_s11 = int_to_ptr.vmem [resolvable:$true] %s173_s11 }
  0x46   : > { %s8532_s26 = scalar_lea.sflag [#allocation4], %s162_s23  ;;  %s8188_s20 = scalar_lea.hbm %s8520_s29, 8192 }
  0x47   : > { %p8189_p5 = scmp.ne.s32.totalorder %s8520_s29, %s8188_s20  ;;  %p8190_p6 = pneg %p8528_p4 }
  0x48   : > { %s8193_s10 = scalar_lea.hbm %s10439_s0, 16384  ;;  %p8194_p12 = scmp.lt.u32.totalorder %s8520_s29, %s10439_s0 }
  0x49   : > { %p8191_p8 = pnand %p8190_p6, %p8189_p5  ;;  %p8195_p1 = scmp.lt.u32.totalorder %s8193_s10, %s8188_s20 }
  0x4a   : > { %p8197_p7 = scmp.lt.u32.totalorder %s8188_s20, %s8520_s29 }
  0x4b   : > { %p8192_p10 = pneg %p8191_p8  ;;  %p8196_p3 = por %p8195_p1, %p8194_p12 }
  0x4d   : > { %p8198_p9 = por %p8197_p7, %p8196_p3 }
  0x4f   : > { %p8199_p11 = pnand %p8198_p9, %p8192_p10 }
  0x51   : > { %8202 = shalt.err (!%p8199_p11)
}
  0x52   : > { %s8203_s23 = scalar_lea.vmem %s8522_s11, 8192  ;;  %s8349_s24 = smov [#allocation3]  }
  0x53   : > { %p8204_p13 = scmp.ne.s32.totalorder %s8522_s11, %s8203_s23  ;;  %s8208_s8 = sshll.u32 %s8349_s24, 4  ;;  %s8209_s8 = int_to_ptr.vmem [resolvable:$false] %s8208_s8 }
  0x54   : > { %s8210_s9 = scalar_lea.vmem %s8209_s8, 16384  ;;  %p8211_p5 = scmp.lt.s32.totalorder %s8522_s11, %s8209_s8 }
  0x55   : > { %p8206_p0 = pnand %p8204_p13, %p8190_p6  ;;  %p8212_p8 = scmp.lt.s32.totalorder %s8210_s9, %s8203_s23 }
  0x57   : > { %p8207_p2 = pneg %p8206_p0  ;;  %p8213_p12 = por %p8212_p8, %p8211_p5 }
  0x59   : > { %p8214_p1 = pnand %p8213_p12, %p8207_p2 }
  0x5b   : > { %8217 = shalt.err (!%p8214_p1)
}
  0x5c   : > { %s10491_s20 = smov 4   ;;  %s10492_s12 = smov 64  }
  0x5d   : > { %7939 = dma.hbm_to_vmem [thread:$0]  (!%p8528_p4), %s8520_s29, 8192, %s8522_s11, %s8532_s26, %s10492_s12, %s10492_s12, %s10491_s20  }
  0x5e   : > { %p10493_p6 = scmp.ne.s32.totalorder %s10484_s30, 0 }
  0x60   : > { %185 = sbr.rel (%p10493_p6) target bundleno = 1115 (0x45b), region = 32 }
  0x67   : > { %s187_s4 = sand.u32 1, %s8320_s16   ;;  %p10494_p10 = scmp.ne.s32.totalorder %s10480_s27, 0 }
  0x68   : > { %s6716_s10 = sshll.u32 %s187_s4, 9  ;;  %s188_s6 = scalar_lea.sflag [#allocation4], %s187_s4 }
  0x69   : > { %s8566_s5 = scalar_lea.vmem [#allocation3], %s6716_s10 }
  0x6a   : > { %8291 = dma.done.wait (%p10494_p10), %s188_s6, 8192  }
  0x6b   : > { %8293 = vsyncadd (%p10494_p10), %s188_s6, 4294959104  ;;  %p10495_p3 = scmp.ne.s32.totalorder %s10479_s25, 0 }
  0x6d   : > { %8295 = dma.done.wait (%p10495_p3), [#allocation7], 9216  }
  0x6e   : > { %8297 = vsyncadd (%p10495_p3), [#allocation7], 4294958080  ;;  %s215_s29 = sand.u32 1, %s8308_s13   ;;  %p6719_p4 = scmp.ne.s32.totalorder %s8328_s18, 0 }
  0x6f   : > { %s6718_s30 = sshll.u32 %s215_s29, 5  ;;  %v8583_v0 = vld [vmem:[%s8566_s5] sm:$0xf] (!%p6719_p4)  ;;  %vm1807_vm0 = vsmask.f32 (!%p6719_p4), 7938  ;;  %v8350_v1 = vmov (!%p6719_p4), 0  }
  0x70   : > { %s8579_s11 = scalar_lea.vmem [#allocation8], %s6718_s30  ;;  %223 = sbr.rel (%p6719_p4) target bundleno = 403 (0x193), region = 44  ;;  %229 = vst [vmem:[#allocation2 + $0x14] sm:$0xf] (!%p6719_p4), %v8350_v1  ;;  %224 = vst [vmem:[#allocation2] sm:$0xf] (!%p6719_p4), %v8350_v1 }
  0x71   : > { %225 = vst [vmem:[#allocation2 + $0x4] sm:$0xf] (!%p6719_p4), %v8350_v1  ;;  %226 = vst [vmem:[#allocation2 + $0x8] sm:$0xf] (!%p6719_p4), %v8350_v1  ;;  %v526_v2 = vshrl.u32 (!%p6719_p4), %v8583_v0, 16  ;;  %v529_v3 = vshll.u32 (!%p6719_p4), %v8583_v0, 16 }
  0x72   : > { %227 = vst [vmem:[#allocation2 + $0xc] sm:$0xf] (!%p6719_p4), %v8350_v1  ;;  %228 = vst [vmem:[#allocation2 + $0x10] sm:$0x1] (!%p6719_p4), %v8350_v1  ;;  %v395_v4 = vld [vmem:[%s8566_s5 + $0x4] sm:$0xf] (!%p6719_p4) }
  0x73   : > { %230 = vst [vmem:[#allocation2 + $0x18] sm:$0xf] (!%p6719_p4), %v8350_v1  ;;  %231 = vst [vmem:[#allocation2 + $0x1c] sm:$0xf] (!%p6719_p4), %v8350_v1  ;;  %vm522_vm1 = vsmask.f32 (!%p6719_p4), 256 }
  0x74   : > { %232 = vst [vmem:[#allocation2 + $0x20] sm:$0xf] (!%p6719_p4), %v8350_v1  ;;  %233 = vst [vmem:[#allocation2 + $0x24] sm:$0x1] (!%p6719_p4), %v8350_v1  ;;  %vm523_vm2 = vsmask.f32 (!%p6719_p4), 4368 }
  0x75   : > { %234 = vst [vmem:[#allocation2 + $0x28] sm:$0xf] (!%p6719_p4), %v8350_v1  ;;  %235 = vst [vmem:[#allocation2 + $0x2c] sm:$0xf] (!%p6719_p4), %v8350_v1  ;;  %v534_v5 = vshrl.u32 (!%p6719_p4), %v395_v4, 16  ;;  %v537_v6 = vshll.u32 (!%p6719_p4), %v395_v4, 16 }
  0x76   : > { %236 = vst [vmem:[#allocation2 + $0x30] sm:$0xf] (!%p6719_p4), %v8350_v1  ;;  %237 = vst [vmem:[#allocation2 + $0x34] sm:$0xf] (!%p6719_p4), %v8350_v1  ;;  %v396_v7 = vld [vmem:[%s8566_s5 + $0x8] sm:$0xf] (!%p6719_p4) }
  0x77   : > { %238 = vst [vmem:[#allocation2 + $0x38] sm:$0x1] %v8350_v1  ;;  %239 = vst [vmem:[#allocation2 + $0x3c] sm:$0xf] %v8350_v1  ;;  %v528_v8 = vrot.slane %v526_v2, 7  ;;  %vm1806_vm3 = vcmask 1043456  }
  0x78   : > { %240 = vst [vmem:[#allocation2 + $0x40] sm:$0xf] %v8350_v1  ;;  %241 = vst [vmem:[#allocation2 + $0x44] sm:$0xf] %v8350_v1  ;;  %v543_v9 = vshrl.u32 %v396_v7, 16  ;;  %v546_v10 = vshll.u32 %v396_v7, 16 }
  0x79   : > { %242 = vst [vmem:[#allocation2 + $0x48] sm:$0xf] %v8350_v1  ;;  %243 = vst [vmem:[#allocation2 + $0x4c] sm:$0x1] %v8350_v1  ;;  %v397_v11 = vld [vmem:[%s8566_s5 + $0xc] sm:$0xf]  ;;  %v531_v16 = vor.u32 %v529_v3, %v528_v8 }
  0x7a   : > { %244 = vst [vmem:[#allocation2 + $0x50] sm:$0xf] %v8350_v1  ;;  %245 = vst [vmem:[#allocation2 + $0x54] sm:$0xf] %v8350_v1  ;;  %v536_v12 = vrot.slane %v534_v5, 7  ;;  %v552_v13 = vshrl.u32 %v397_v11, 16 }
  0x7b   : > { %246 = vst [vmem:[#allocation2 + $0x58] sm:$0xf] %v8350_v1  ;;  %247 = vst [vmem:[#allocation2 + $0x5c] sm:$0xf] %v8350_v1  ;;  %v555_v14 = vshll.u32 %v397_v11, 16  ;;  %vm1815_vm4 = vcmask 1040384  }
  0x7c   : > { %248 = vst [vmem:[#allocation2 + $0x60] sm:$0x1] %v8350_v1  ;;  %249 = vst [vmem:[#allocation2 + $0x64] sm:$0xf] %v8350_v1  ;;  %v398_v15 = vld [vmem:[%s8566_s5 + $0x10] sm:$0xf]  ;;  %v539_v23 = vor.u32 %v537_v6, %v536_v12 }
  0x7d   : > { %250 = vst [vmem:[#allocation2 + $0x68] sm:$0xf] %v8350_v1  ;;  %251 = vst [vmem:[#allocation2 + $0x6c] sm:$0xf] %v8350_v1  ;;  %v532_v18 = vrot.slane %v528_v8, 4  ;;  %v545_v19 = vrot.slane %v543_v9, 7 }
  0x7e   : > { %252 = vst [vmem:[#allocation2 + $0x70] sm:$0xf] %v8350_v1  ;;  %253 = vst [vmem:[#allocation2 + $0x74] sm:$0x1] %v8350_v1  ;;  %v561_v20 = vshrl.u32 %v398_v15, 16  ;;  %v541_v24 = vrot.slane %v536_v12, 4 }
  0x7f   : > { %254 = vst [vmem:[#allocation2 + $0x78] sm:$0xf] %v8350_v1  ;;  %255 = vst [vmem:[#allocation2 + $0x7c] sm:$0xf] %v8350_v1  ;;  %v399_v21 = vld [vmem:[%s8566_s5 + $0x14] sm:$0xf]  ;;  %v548_v28 = vor.u32 %v546_v10, %v545_v19 }
  0x80   : > { %256 = vst [vmem:[#allocation2 + $0x80] sm:$0xf] %v8350_v1  ;;  %257 = vst [vmem:[#allocation2 + $0x84] sm:$0xf] %v8350_v1  ;;  %v554_v25 = vrot.slane %v552_v13, 7  ;;  %v564_v26 = vshll.u32 %v398_v15, 16 }
  0x81   : > { %258 = vst [vmem:[#allocation2 + $0x88] sm:$0x1] %v8350_v1  ;;  %259 = vst [vmem:[#allocation2 + $0x8c] sm:$0xf] %v8350_v1  ;;  %v400_v27 = vld [vmem:[%s8566_s5 + $0x18] sm:$0xf] }
  0x82   : > { %260 = vst [vmem:[#allocation2 + $0x90] sm:$0xf] %v8350_v1  ;;  %261 = vst [vmem:[#allocation2 + $0x94] sm:$0xf] %v8350_v1  ;;  %v550_v29 = vrot.slane %v545_v19, 4  ;;  %v563_v31 = vrot.slane %v561_v20, 7  ;;  %v557_v36 = vor.u32 %v555_v14, %v554_v25 }
  0x83   : > { %262 = vst [vmem:[#allocation2 + $0x98] sm:$0xf] %v8350_v1  ;;  %263 = vst [vmem:[#allocation2 + $0x9c] sm:$0x1] %v8350_v1  ;;  %v569_v32 = vshrl.u32 %v399_v21, 16  ;;  %v559_v37 = vrot.slane %v554_v25, 4 }
  0x84   : > { %264 = vst [vmem:[#allocation2 + $0xa0] sm:$0xf] %v8350_v1  ;;  %265 = vst [vmem:[#allocation2 + $0xa4] sm:$0xf] %v8350_v1  ;;  %v401_v33 = vld [vmem:[%s8566_s5 + $0x1c] sm:$0xf]  ;;  %v566_v42 = vor.u32 %v564_v26, %v563_v31 }
  0x85   : > { %266 = vst [vmem:[#allocation2 + $0xa8] sm:$0xf] %v8350_v1  ;;  %267 = vst [vmem:[#allocation2 + $0xac] sm:$0xf] %v8350_v1  ;;  %v1809_v34 = vld [vmem:[#allocation2 + $0x14] sm:$0xf] }
  0x86   : > { %268 = vst [vmem:[#allocation2 + $0xb0] sm:$0x1] %v8350_v1  ;;  %269 = vst [vmem:[#allocation2 + $0xb4] sm:$0xf] %v8350_v1  ;;  %v1817_v38 = vld [vmem:[#allocation2 + $0x24] sm:$0x1] }
  0x87   : > { %270 = vst [vmem:[#allocation2 + $0xb8] sm:$0xf] %v8350_v1  ;;  %271 = vst [vmem:[#allocation2 + $0xbc] sm:$0xf] %v8350_v1  ;;  %v572_v39 = vshll.u32 %v399_v21, 16  ;;  %v567_v44 = vrot.slane %v563_v31, 4 }
  0x88   : > { %272 = vst [vmem:[#allocation2 + $0xc0] sm:$0xf] %v8350_v1  ;;  %273 = vst [vmem:[#allocation2 + $0xc4] sm:$0x1] %v8350_v1  ;;  %v1820_v43 = vld [vmem:[#allocation2 + $0x28] sm:$0xf] }
  0x89   : > { %274 = vst [vmem:[#allocation2 + $0xc8] sm:$0xf] %v8350_v1  ;;  %275 = vst [vmem:[#allocation2 + $0xcc] sm:$0xf] %v8350_v1  ;;  %v571_v47 = vrot.slane %v569_v32, 7  ;;  %v578_v48 = vshrl.u32 %v400_v27, 16 }
  0x8a   : > { %276 = vst [vmem:[#allocation2 + $0xd0] sm:$0xf] %v8350_v1  ;;  %277 = vst [vmem:[#allocation2 + $0xd4] sm:$0xf] %v8350_v1  ;;  %v402_v49 = vld [vmem:[%s8566_s5 + $0x20] sm:$0xf] }
  0x8b   : > { %278 = vst [vmem:[#allocation2 + $0xd8] sm:$0x1] %v8350_v1  ;;  %279 = vst [vmem:[#allocation2 + $0xdc] sm:$0xf] %v8350_v1  ;;  %v581_v51 = vshll.u32 %v400_v27, 16  ;;  %v587_v52 = vshrl.u32 %v401_v33, 16  ;;  %v574_v55 = vor.u32 %v572_v39, %v571_v47 }
  0x8c   : > { %280 = vst [vmem:[#allocation2 + $0xe0] sm:$0xf] %v8350_v1  ;;  %281 = vst [vmem:[#allocation2 + $0xe4] sm:$0xf] %v8350_v1  ;;  %v590_v53 = vshll.u32 %v401_v33, 16  ;;  %v576_v56 = vrot.slane %v571_v47, 4 }
  0x8d   : > { %282 = vst [vmem:[#allocation2 + $0xe8] sm:$0xf] %v8350_v1  ;;  %283 = vst [vmem:[#allocation2 + $0xec] sm:$0x1] %v8350_v1  ;;  %v403_v54 = vld [vmem:[%s8566_s5 + $0x24] sm:$0xf] }
  0x8e   : > { %284 = vst [vmem:[#allocation2 + $0xf0] sm:$0xf] %v8350_v1  ;;  %285 = vst [vmem:[#allocation2 + $0xf4] sm:$0xf] %v8350_v1  ;;  %v580_v57 = vrot.slane %v578_v48, 7  ;;  %v596_v58 = vshrl.u32 %v402_v49, 16 }
  0x8f   : > { %286 = vst [vmem:[#allocation2 + $0xf8] sm:$0xf] %v8350_v1  ;;  %287 = vst [vmem:[#allocation2 + $0xfc] sm:$0xf] %v8350_v1  ;;  %v404_v59 = vld [vmem:[%s8566_s5 + $0x28] sm:$0xf] }
  0x90   : > { %288 = vst [vmem:[#allocation2 + $0x100] sm:$0x1] %v8350_v1  ;;  %289 = vst [vmem:[#allocation2 + $0x104] sm:$0xf] %v8350_v1  ;;  %v589_v60 = vrot.slane %v587_v52, 7  ;;  %v599_v61 = vshll.u32 %v402_v49, 16 }
  0x91   : > { %290 = vst [vmem:[#allocation2 + $0x108] sm:$0xf] %v8350_v1  ;;  %291 = vst [vmem:[#allocation2 + $0x10c] sm:$0xf] %v8350_v1  ;;  %v604_v62 = vshrl.u32 %v403_v54, 16  ;;  %v607_v63 = vshll.u32 %v403_v54, 16 }
  0x92   : > { %292 = vst [vmem:[#allocation2 + $0x110] sm:$0xf] %v8350_v1  ;;  %293 = vst [vmem:[#allocation2 + $0x114] sm:$0x1] %v8350_v1  ;;  %v585_v2 = vrot.slane %v580_v57, 4  ;;  %v598_v4 = vrot.slane %v596_v58, 7  ;;  %v592_v6 = vor.u32 %v590_v53, %v589_v60 }
  0x93   : > { %294 = vst [vmem:[#allocation2 + $0x118] sm:$0xf] %v8350_v1  ;;  %295 = vst [vmem:[#allocation2 + $0x11c] sm:$0xf] %v8350_v1  ;;  %v1826_v3 = vld [vmem:[#allocation2 + $0x38] sm:$0x1] }
  0x94   : > { %296 = vst [vmem:[#allocation2 + $0x120] sm:$0xf] %v8350_v1  ;;  %297 = vst [vmem:[#allocation2 + $0x124] sm:$0xf] %v8350_v1  ;;  %v1829_v5 = vld [vmem:[#allocation2 + $0x3c] sm:$0xf]  ;;  %v601_v12 = vor.u32 %v599_v61, %v598_v4 }
  0x95   : > { %298 = vst [vmem:[#allocation2 + $0x128] sm:$0x1] %v8350_v1  ;;  %299 = vst [vmem:[#allocation2 + $0x12c] sm:$0xf] %v8350_v1  ;;  %v594_v7 = vrot.slane %v589_v60, 4  ;;  %v606_v8 = vrot.slane %v604_v62, 7 }
  0x96   : > { %300 = vst [vmem:[#allocation2 + $0x130] sm:$0xf] %v8350_v1  ;;  %301 = vst [vmem:[#allocation2 + $0x134] sm:$0xf] %v8350_v1  ;;  %v613_v9 = vshrl.u32 %v404_v59, 16  ;;  %v602_v13 = vrot.slane %v598_v4, 4 }
  0x97   : > { %302 = vst [vmem:[#allocation2 + $0x138] sm:$0xf] %v8350_v1  ;;  %303 = vst [vmem:[#allocation2 + $0x13c] sm:$0x1] %v8350_v1  ;;  %v405_v10 = vld [vmem:[%s8566_s5 + $0x2c] sm:$0xf]  ;;  %v609_v20 = vor.u32 %v607_v63, %v606_v8 }
  0x98   : > { %304 = vst [vmem:[#allocation2 + $0x140] sm:$0xf] %v8350_v1  ;;  %305 = vst [vmem:[#allocation2 + $0x144] sm:$0xf] %v8350_v1  ;;  %v616_v14 = vshll.u32 %v404_v59, 16  ;;  %v611_v21 = vrot.slane %v606_v8, 4 }
  0x99   : > { %306 = vst [vmem:[#allocation2 + $0x148] sm:$0xf] %v8350_v1  ;;  %307 = vst [vmem:[#allocation2 + $0x14c] sm:$0xf] %v8350_v1  ;;  %v406_v15 = vld [vmem:[%s8566_s5 + $0x30] sm:$0xf] }
  0x9a   : > { %308 = vst [vmem:[#allocation2 + $0x150] sm:$0x1] %v8350_v1  ;;  %309 = vst [vmem:[#allocation2 + $0x154] sm:$0xf] %v8350_v1  ;;  %v622_v25 = vshrl.u32 %v405_v10, 16  ;;  %v625_v26 = vshll.u32 %v405_v10, 16 }
  0x9b   : > { %310 = vst [vmem:[#allocation2 + $0x158] sm:$0xf] %v8350_v1  ;;  %311 = vst [vmem:[#allocation2 + $0x15c] sm:$0xf] %v8350_v1  ;;  %v408_v27 = vld [vmem:[%s8566_s5 + $0x38] sm:$0xf] }
  0x9c   : > { %312 = vst [vmem:[#allocation2 + $0x160] sm:$0xf] %v8350_v1  ;;  %313 = vst [vmem:[#allocation2 + $0x164] sm:$0x1] %v8350_v1  ;;  %v634_v31 = vshll.u32 %v406_v15, 16 }
  0x9d   : > { %314 = vst [vmem:[#allocation2 + $0x168] sm:$0xf] %v8350_v1  ;;  %315 = vst [vmem:[#allocation2 + $0x16c] sm:$0xf] %v8350_v1  ;;  %v409_v33 = vld [vmem:[%s8566_s5 + $0x3c] sm:$0xf] }
  0x9e   : > { %316 = vst [vmem:[#allocation2 + $0x170] sm:$0xf] %v8350_v1  ;;  %317 = vst [vmem:[#allocation2 + $0x174] sm:$0xf] %v8350_v1  ;;  %v657_v47 = vshrl.u32 %v409_v33, 16  ;;  %v660_v60 = vshll.u32 %v409_v33, 16 }
  0x9f   : > { %318 = vst [vmem:[#allocation2 + $0x178] sm:$0x1] %v8350_v1  ;;  %319 = vst [vmem:[#allocation2 + $0x17c] sm:$0xf] %v8350_v1  ;;  %v410_v48 = vld [vmem:[%s8566_s5 + $0x40] sm:$0xf] }
  0xa0   : > { %320 = vst [vmem:[#allocation2 + $0x180] sm:$0xf] %v8350_v1  ;;  %321 = vst [vmem:[#allocation2 + $0x184] sm:$0xf] %v8350_v1  ;;  %v1844_v61 = vld [vmem:[#allocation2 + $0x60] sm:$0x1] }
  0xa1   : > { %322 = vst [vmem:[#allocation2 + $0x188] sm:$0xf] %v8350_v1  ;;  %323 = vst [vmem:[#allocation2 + $0x18c] sm:$0x1] %v8350_v1  ;;  %v666_v62 = vshrl.u32 %v410_v48, 16 }
  0xa2   : > { %324 = vst [vmem:[#allocation2 + $0x190] sm:$0xf] %v8350_v1  ;;  %325 = vst [vmem:[#allocation2 + $0x194] sm:$0xf] %v8350_v1  ;;  %v412_v63 = vld [vmem:[%s8566_s5 + $0x48] sm:$0xf] }
  0xa3   : > { %326 = vst [vmem:[#allocation2 + $0x198] sm:$0xf] %v8350_v1  ;;  %327 = vst [vmem:[#allocation2 + $0x19c] sm:$0xf] %v8350_v1  ;;  %v413_v4 = vld [vmem:[%s8566_s5 + $0x4c] sm:$0xf] }
  0xa4   : > { %328 = vst [vmem:[#allocation2 + $0x1a0] sm:$0x1] %v8350_v1  ;;  %329 = vst [vmem:[#allocation2 + $0x1a4] sm:$0xf] %v8350_v1 }
  0xa5   : > { %330 = vst [vmem:[#allocation2 + $0x1a8] sm:$0xf] %v8350_v1  ;;  %331 = vst [vmem:[#allocation2 + $0x1ac] sm:$0xf] %v8350_v1 }
  0xa6   : > { %332 = vst [vmem:[#allocation2 + $0x1b0] sm:$0xf] %v8350_v1  ;;  %333 = vst [vmem:[#allocation2 + $0x1b4] sm:$0x1] %v8350_v1 }
  0xa7   : > { %334 = vst [vmem:[#allocation2 + $0x1b8] sm:$0xf] %v8350_v1  ;;  %335 = vst [vmem:[#allocation2 + $0x1bc] sm:$0xf] %v8350_v1 }
  0xa8   : > { %336 = vst [vmem:[#allocation2 + $0x1c0] sm:$0xf] %v8350_v1  ;;  %337 = vst [vmem:[#allocation2 + $0x1c4] sm:$0xf] %v8350_v1 }
  0xa9   : > { %338 = vst [vmem:[#allocation2 + $0x1c8] sm:$0x1] %v8350_v1  ;;  %339 = vst [vmem:[#allocation2 + $0x1cc] sm:$0xf] %v8350_v1 }
  0xaa   : > { %340 = vst [vmem:[#allocation2 + $0x1d0] sm:$0xf] %v8350_v1  ;;  %341 = vst [vmem:[#allocation2 + $0x1d4] sm:$0xf] %v8350_v1 }
  0xab   : > { %342 = vst [vmem:[#allocation2 + $0x1d8] sm:$0xf] %v8350_v1  ;;  %343 = vst [vmem:[#allocation2 + $0x1dc] sm:$0x1] %v8350_v1 }
  0xac   : > { %344 = vst [vmem:[#allocation2 + $0x1e0] sm:$0xf] %v8350_v1  ;;  %345 = vst [vmem:[#allocation2 + $0x1e4] sm:$0xf] %v8350_v1 }
  0xad   : > { %346 = vst [vmem:[#allocation2 + $0x1e8] sm:$0xf] %v8350_v1  ;;  %347 = vst [vmem:[#allocation2 + $0x1ec] sm:$0xf] %v8350_v1 }
  0xae   : > { %348 = vst [vmem:[#allocation2 + $0x1f0] sm:$0x1] %v8350_v1  ;;  %349 = vst [vmem:[#allocation2 + $0x1f4] sm:$0xf] %v8350_v1 }
  0xaf   : > { %350 = vst [vmem:[#allocation2 + $0x1f8] sm:$0xf] %v8350_v1  ;;  %351 = vst [vmem:[#allocation2 + $0x1fc] sm:$0xf] %v8350_v1 }
  0xb0   : > { %352 = vst [vmem:[#allocation2 + $0x200] sm:$0xf] %v8350_v1  ;;  %353 = vst [vmem:[#allocation2 + $0x204] sm:$0x1] %v8350_v1 }
  0xb1   : > { %354 = vst [vmem:[#allocation2 + $0x208] sm:$0xf] %v8350_v1  ;;  %355 = vst [vmem:[#allocation2 + $0x20c] sm:$0xf] %v8350_v1 }
  0xb2   : > { %356 = vst [vmem:[#allocation2 + $0x210] sm:$0xf] %v8350_v1  ;;  %357 = vst [vmem:[#allocation2 + $0x214] sm:$0xf] %v8350_v1 }
  0xb3   : > { %358 = vst [vmem:[#allocation2 + $0x218] sm:$0x1] %v8350_v1  ;;  %359 = vst [vmem:[#allocation2 + $0x21c] sm:$0xf] %v8350_v1 }
  0xb4   : > { %360 = vst [vmem:[#allocation2 + $0x220] sm:$0xf] %v8350_v1  ;;  %361 = vst [vmem:[#allocation2 + $0x224] sm:$0xf] %v8350_v1 }
  0xb5   : > { %362 = vst [vmem:[#allocation2 + $0x228] sm:$0xf] %v8350_v1  ;;  %363 = vst [vmem:[#allocation2 + $0x22c] sm:$0x1] %v8350_v1 }
  0xb6   : > { %364 = vst [vmem:[#allocation2 + $0x230] sm:$0xf] %v8350_v1  ;;  %365 = vst [vmem:[#allocation2 + $0x234] sm:$0xf] %v8350_v1 }
  0xb7   : > { %366 = vst [vmem:[#allocation2 + $0x238] sm:$0xf] %v8350_v1  ;;  %367 = vst [vmem:[#allocation2 + $0x23c] sm:$0xf] %v8350_v1 }
  0xb8   : > { %368 = vst [vmem:[#allocation2 + $0x240] sm:$0x1] %v8350_v1  ;;  %369 = vst [vmem:[#allocation2 + $0x244] sm:$0xf] %v8350_v1 }
  0xb9   : > { %370 = vst [vmem:[#allocation2 + $0x248] sm:$0xf] %v8350_v1  ;;  %371 = vst [vmem:[#allocation2 + $0x24c] sm:$0xf] %v8350_v1 }
  0xba   : > { %372 = vst [vmem:[#allocation2 + $0x250] sm:$0xf] %v8350_v1  ;;  %373 = vst [vmem:[#allocation2 + $0x254] sm:$0x1] %v8350_v1 }
  0xbb   : > { %374 = vst [vmem:[#allocation2 + $0x258] sm:$0xf] %v8350_v1  ;;  %375 = vst [vmem:[#allocation2 + $0x25c] sm:$0xf] %v8350_v1 }
  0xbc   : > { %376 = vst [vmem:[#allocation2 + $0x260] sm:$0xf] %v8350_v1  ;;  %377 = vst [vmem:[#allocation2 + $0x264] sm:$0xf] %v8350_v1 }
  0xbd   : > { %378 = vst [vmem:[#allocation2 + $0x268] sm:$0x1] %v8350_v1  ;;  %379 = vst [vmem:[#allocation2 + $0x26c] sm:$0xf] %v8350_v1 }
  0xbe   : > { %380 = vst [vmem:[#allocation2 + $0x270] sm:$0xf] %v8350_v1  ;;  %381 = vst [vmem:[#allocation2 + $0x274] sm:$0xf] %v8350_v1 }
  0xbf   : > { %382 = vst [vmem:[#allocation2 + $0x278] sm:$0xf] %v8350_v1  ;;  %383 = vst [vmem:[#allocation2 + $0x27c] sm:$0x1] %v8350_v1 }
  0xc0   : > { %384 = vst [vmem:[#allocation2 + $0x280] sm:$0xf] %v8350_v1  ;;  %385 = vst [vmem:[#allocation2 + $0x284] sm:$0xf] %v8350_v1 }
  0xc1   : > { %386 = vst [vmem:[#allocation2 + $0x288] sm:$0xf] %v8350_v1  ;;  %387 = vst [vmem:[#allocation2 + $0x28c] sm:$0xf] %v8350_v1 }
  0xc2   : > { %388 = vst [vmem:[#allocation2 + $0x290] sm:$0x1] %v8350_v1  ;;  %389 = vst [vmem:[#allocation2 + $0x294] sm:$0xf] %v8350_v1 }
  0xc3   : > { %390 = vst [vmem:[#allocation2 + $0x298] sm:$0xf] %v8350_v1  ;;  %391 = vst [vmem:[#allocation2 + $0x29c] sm:$0xf] %v8350_v1 }
  0xc4   : > { %392 = vst [vmem:[#allocation2 + $0x2a0] sm:$0xf] %v8350_v1  ;;  %393 = vst [vmem:[#allocation2 + $0x2a4] sm:$0x1] %v8350_v1  ;;  %v583_v1 = vor.u32 %v581_v51, %v580_v57  ;;  %v411_v57 = vld [vmem:[%s8566_s5 + $0x44] sm:$0xf] }
  0xc5   : > { %vm8763_vm5 = vmor %vm522_vm1, %vm523_vm2  ;;  %v677_v8 = vshll.u32 %v411_v57, 16 }
  0xc6   : > { %vm8770_vm6 = vmand %vm1806_vm3, %vm1807_vm0  ;;  %v540_v35 = vsel %vm8763_vm5, %v532_v18, %v539_v23  ;;  %v549_v41 = vsel %vm8763_vm5, %v541_v24, %v548_v28  ;;  %v558_v45 = vsel %vm8763_vm5, %v550_v29, %v557_v36  ;;  %v575_v0 = vsel %vm8763_vm5, %v567_v44, %v574_v55 }
  0xc7   : > { %vm8777_vm7 = vmand %vm1815_vm4, %vm522_vm1  ;;  %v1810_v40 = vsel %vm8770_vm6, %v531_v16, %v1809_v34  ;;  %1812 = vst [vmem:[#allocation2 + $0x18] sm:$0xf] %v540_v35  ;;  %v1821_v50 = vsel %vm8770_vm6, %v566_v42, %v1820_v43  ;;  %v584_v11 = vsel %vm8763_vm5, %v576_v56, %v583_v1  ;;  %v407_v16 = vld [vmem:[%s8566_s5 + $0x34] sm:$0xf]  ;;  %v593_v18 = vsel %vm8763_vm5, %v585_v2, %v592_v6 }
  0xc8   : > { %1811 = vst [vmem:[#allocation2 + $0x14] sm:$0xf] %v1810_v40  ;;  %1813 = vst [vmem:[#allocation2 + $0x1c] sm:$0xf] %v549_v41  ;;  %v1818_v46 = vsel %vm8777_vm7, %v559_v37, %v1817_v38  ;;  %v1827_v19 = vsel %vm8777_vm7, %v594_v7, %v1826_v3  ;;  %v1830_v23 = vsel %vm8770_vm6, %v601_v12, %v1829_v5  ;;  %v615_v24 = vrot.slane %v613_v9, 7 }
  0xc9   : > { %1814 = vst [vmem:[#allocation2 + $0x20] sm:$0xf] %v558_v45  ;;  %1819 = vst [vmem:[#allocation2 + $0x24] sm:$0x1] %v1818_v46  ;;  %v610_v28 = vsel %vm8763_vm5, %v602_v13, %v609_v20  ;;  %v631_v29 = vshrl.u32 %v406_v15, 16  ;;  %v639_v32 = vshrl.u32 %v407_v16, 16 }
  0xca   : > { %1822 = vst [vmem:[#allocation2 + $0x28] sm:$0xf] %v1821_v50  ;;  %1823 = vst [vmem:[#allocation2 + $0x2c] sm:$0xf] %v575_v0  ;;  %v618_v34 = vor.u32 %v616_v14, %v615_v24  ;;  %v620_v35 = vrot.slane %v615_v24, 4  ;;  %v624_v36 = vrot.slane %v622_v25, 7 }
  0xcb   : > { %1824 = vst [vmem:[#allocation2 + $0x30] sm:$0xf] %v584_v11  ;;  %1825 = vst [vmem:[#allocation2 + $0x34] sm:$0xf] %v593_v18  ;;  %v642_v37 = vshll.u32 %v407_v16, 16  ;;  %v633_v39 = vrot.slane %v631_v29, 7 }
  0xcc   : > { %1828 = vst [vmem:[#allocation2 + $0x38] sm:$0x1] %v1827_v19  ;;  %1831 = vst [vmem:[#allocation2 + $0x3c] sm:$0xf] %v1830_v23  ;;  %v1835_v38 = vld [vmem:[#allocation2 + $0x4c] sm:$0x1]  ;;  %v619_v43 = vsel %vm8763_vm5, %v611_v21, %v618_v34  ;;  %v627_v44 = vor.u32 %v625_v26, %v624_v36 }
  0xcd   : > { %1832 = vst [vmem:[#allocation2 + $0x40] sm:$0xf] %v610_v28  ;;  %v641_v40 = vrot.slane %v639_v32, 7  ;;  %v648_v41 = vshrl.u32 %v408_v27, 16  ;;  %v651_v42 = vshll.u32 %v408_v27, 16  ;;  %v629_v45 = vrot.slane %v624_v36, 4 }
  0xce   : > { %v1838_v46 = vld [vmem:[#allocation2 + $0x50] sm:$0xf]  ;;  %1833 = vst [vmem:[#allocation2 + $0x44] sm:$0xf] %v619_v43  ;;  %v636_v49 = vor.u32 %v634_v31, %v633_v39  ;;  %v637_v50 = vrot.slane %v633_v39, 4  ;;  %v628_v53 = vsel %vm8763_vm5, %v620_v35, %v627_v44  ;;  %v659_v56 = vrot.slane %v657_v47, 7 }
  0xcf   : > { %v644_v51 = vor.u32 %v642_v37, %v641_v40  ;;  %v646_v52 = vrot.slane %v641_v40, 4  ;;  %v1836_v54 = vsel %vm8777_vm7, %v629_v45, %v1835_v38  ;;  %v650_v55 = vrot.slane %v648_v41, 7  ;;  %1834 = vst [vmem:[#allocation2 + $0x48] sm:$0xf] %v628_v53  ;;  %v414_v9 = vld [vmem:[%s8566_s5 + $0x50] sm:$0xf] }
  0xd0   : > { %1837 = vst [vmem:[#allocation2 + $0x4c] sm:$0x1] %v1836_v54  ;;  %v1839_v58 = vsel %vm8770_vm6, %v636_v49, %v1838_v46  ;;  %v664_v2 = vrot.slane %v659_v56, 4  ;;  %v669_v3 = vshll.u32 %v410_v48, 16  ;;  %v662_v5 = vor.u32 %v660_v60, %v659_v56  ;;  %v1847_v12 = vld [vmem:[#allocation2 + $0x64] sm:$0xf] }
  0xd1   : > { %v645_v59 = vsel %vm8763_vm5, %v637_v50, %v644_v51  ;;  %1840 = vst [vmem:[#allocation2 + $0x50] sm:$0xf] %v1839_v58  ;;  %v653_v0 = vor.u32 %v651_v42, %v650_v55  ;;  %v655_v1 = vrot.slane %v650_v55, 4  ;;  %v668_v6 = vrot.slane %v666_v62, 7  ;;  %v415_v20 = vld [vmem:[%s8566_s5 + $0x54] sm:$0xf] }
  0xd2   : > { %1841 = vst [vmem:[#allocation2 + $0x54] sm:$0xf] %v645_v59  ;;  %v674_v7 = vshrl.u32 %v411_v57, 16  ;;  %v1845_v11 = vsel %vm8777_vm7, %v664_v2, %v1844_v61  ;;  %v683_v13 = vshrl.u32 %v412_v63, 16  ;;  %v686_v14 = vshll.u32 %v412_v63, 16 }
  0xd3   : > { %v654_v10 = vsel %vm8763_vm5, %v646_v52, %v653_v0  ;;  %v663_v15 = vsel %vm8763_vm5, %v655_v1, %v662_v5  ;;  %1846 = vst [vmem:[#allocation2 + $0x60] sm:$0x1] %v1845_v11  ;;  %v671_v16 = vor.u32 %v669_v3, %v668_v6  ;;  %v672_v18 = vrot.slane %v668_v6, 4  ;;  %v416_v26 = vld [vmem:[%s8566_s5 + $0x58] sm:$0xf] }
  0xd4   : > { %1842 = vst [vmem:[#allocation2 + $0x58] sm:$0xf] %v654_v10  ;;  %v676_v19 = vrot.slane %v674_v7, 7  ;;  %1843 = vst [vmem:[#allocation2 + $0x5c] sm:$0xf] %v663_v15  ;;  %v685_v21 = vrot.slane %v683_v13, 7 }
  0xd5   : > { %v692_v23 = vshrl.u32 %v413_v4, 16  ;;  %v695_v24 = vshll.u32 %v413_v4, 16  ;;  %v701_v25 = vshrl.u32 %v414_v9, 16  ;;  %v1848_v27 = vsel %vm8770_vm6, %v671_v16, %v1847_v12  ;;  %v1853_v31 = vld [vmem:[#allocation2 + $0x74] sm:$0x1] }
  0xd6   : > { %v679_v28 = vor.u32 %v677_v8, %v676_v19  ;;  %v681_v29 = vrot.slane %v676_v19, 4  ;;  %v704_v32 = vshll.u32 %v414_v9, 16  ;;  %1849 = vst [vmem:[#allocation2 + $0x64] sm:$0xf] %v1848_v27  ;;  %v688_v33 = vor.u32 %v686_v14, %v685_v21  ;;  %v1856_v37 = vld [vmem:[#allocation2 + $0x78] sm:$0xf] }
  0xd7   : > { %v690_v34 = vrot.slane %v685_v21, 4  ;;  %v694_v35 = vrot.slane %v692_v23, 7  ;;  %v703_v36 = vrot.slane %v701_v25, 7  ;;  %v709_v39 = vshrl.u32 %v415_v20, 16  ;;  %v417_v42 = vld [vmem:[%s8566_s5 + $0x5c] sm:$0xf] }
  0xd8   : > { %v680_v38 = vsel %vm8763_vm5, %v672_v18, %v679_v28  ;;  %v712_v40 = vshll.u32 %v415_v20, 16  ;;  %v718_v41 = vshrl.u32 %v416_v26, 16  ;;  %v689_v43 = vsel %vm8763_vm5, %v681_v29, %v688_v33  ;;  %v418_v51 = vld [vmem:[%s8566_s5 + $0x60] sm:$0xf]  ;;  %v419_v56 = vld [vmem:[%s8566_s5 + $0x64] sm:$0xf] }
  0xd9   : > { %1850 = vst [vmem:[#allocation2 + $0x68] sm:$0xf] %v680_v38  ;;  %v697_v44 = vor.u32 %v695_v24, %v694_v35  ;;  %v699_v45 = vrot.slane %v694_v35, 4  ;;  %v706_v46 = vor.u32 %v704_v32, %v703_v36  ;;  %1851 = vst [vmem:[#allocation2 + $0x6c] sm:$0xf] %v689_v43  ;;  %v707_v47 = vrot.slane %v703_v36, 4 }
  0xda   : > { %v711_v48 = vrot.slane %v709_v39, 7  ;;  %v720_v49 = vrot.slane %v718_v41, 7  ;;  %v721_v50 = vshll.u32 %v416_v26, 16  ;;  %v727_v55 = vshrl.u32 %v417_v42, 16  ;;  %v420_v61 = vld [vmem:[%s8566_s5 + $0x68] sm:$0xf] }
  0xdb   : > { %v698_v52 = vsel %vm8763_vm5, %v690_v34, %v697_v44  ;;  %v1854_v53 = vsel %vm8777_vm7, %v699_v45, %v1853_v31  ;;  %v1857_v54 = vsel %vm8770_vm6, %v706_v46, %v1856_v37  ;;  %v730_v63 = vshll.u32 %v417_v42, 16  ;;  %v421_v2 = vld [vmem:[%s8566_s5 + $0x6c] sm:$0xf]  ;;  %v1862_v5 = vld [vmem:[#allocation2 + $0x88] sm:$0x1] }
  0xdc   : > { %1852 = vst [vmem:[#allocation2 + $0x70] sm:$0xf] %v698_v52  ;;  %1855 = vst [vmem:[#allocation2 + $0x74] sm:$0x1] %v1854_v53  ;;  %v714_v57 = vor.u32 %v712_v40, %v711_v48  ;;  %v716_v58 = vrot.slane %v711_v48, 4  ;;  %v723_v59 = vor.u32 %v721_v50, %v720_v49  ;;  %v725_v60 = vrot.slane %v720_v49, 4 }
  0xdd   : > { %1858 = vst [vmem:[#allocation2 + $0x78] sm:$0xf] %v1857_v54  ;;  %v729_v62 = vrot.slane %v727_v55, 7  ;;  %v736_v0 = vshrl.u32 %v418_v51, 16  ;;  %v739_v1 = vshll.u32 %v418_v51, 16  ;;  %v744_v7 = vshrl.u32 %v419_v56, 16 }
  0xde   : > { %v715_v3 = vsel %vm8763_vm5, %v707_v47, %v714_v57  ;;  %v724_v4 = vsel %vm8763_vm5, %v716_v58, %v723_v59  ;;  %v1865_v6 = vld [vmem:[#allocation2 + $0x8c] sm:$0xf]  ;;  %v747_v8 = vshll.u32 %v419_v56, 16  ;;  %v753_v12 = vshrl.u32 %v420_v61, 16  ;;  %v422_v13 = vld [vmem:[%s8566_s5 + $0x70] sm:$0xf] }
  0xdf   : > { %1859 = vst [vmem:[#allocation2 + $0x7c] sm:$0xf] %v715_v3  ;;  %1860 = vst [vmem:[#allocation2 + $0x80] sm:$0xf] %v724_v4  ;;  %v732_v9 = vor.u32 %v730_v63, %v729_v62  ;;  %v734_v10 = vrot.slane %v729_v62, 4  ;;  %v738_v11 = vrot.slane %v736_v0, 7 }
  0xe0   : > { %v746_v14 = vrot.slane %v744_v7, 7  ;;  %v756_v15 = vshll.u32 %v420_v61, 16  ;;  %v762_v16 = vshrl.u32 %v421_v2, 16  ;;  %v765_v18 = vshll.u32 %v421_v2, 16  ;;  %v423_v19 = vld [vmem:[%s8566_s5 + $0x74] sm:$0xf] }
  0xe1   : > { %v733_v20 = vsel %vm8763_vm5, %v725_v60, %v732_v9  ;;  %v1863_v21 = vsel %vm8777_vm7, %v734_v10, %v1862_v5  ;;  %v741_v23 = vor.u32 %v739_v1, %v738_v11  ;;  %v742_v24 = vrot.slane %v738_v11, 4  ;;  %v424_v34 = vld [vmem:[%s8566_s5 + $0x78] sm:$0xf]  ;;  %v1871_v39 = vld [vmem:[#allocation2 + $0x9c] sm:$0x1] }
  0xe2   : > { %1861 = vst [vmem:[#allocation2 + $0x84] sm:$0xf] %v733_v20  ;;  %1864 = vst [vmem:[#allocation2 + $0x88] sm:$0x1] %v1863_v21  ;;  %v749_v25 = vor.u32 %v747_v8, %v746_v14  ;;  %v751_v26 = vrot.slane %v746_v14, 4  ;;  %v755_v27 = vrot.slane %v753_v12, 7 }
  0xe3   : > { %v764_v28 = vrot.slane %v762_v16, 7  ;;  %v1866_v29 = vsel %vm8770_vm6, %v741_v23, %v1865_v6  ;;  %v771_v31 = vshrl.u32 %v422_v13, 16  ;;  %v774_v32 = vshll.u32 %v422_v13, 16  ;;  %v425_v44 = vld [vmem:[%s8566_s5 + $0x7c] sm:$0xf] }
  0xe4   : > { %v779_v33 = vshrl.u32 %v423_v19, 16  ;;  %1867 = vst [vmem:[#allocation2 + $0x8c] sm:$0xf] %v1866_v29  ;;  %v750_v35 = vsel %vm8763_vm5, %v742_v24, %v749_v25  ;;  %v758_v36 = vor.u32 %v756_v15, %v755_v27  ;;  %v760_v37 = vrot.slane %v755_v27, 4  ;;  %v1874_v47 = vld [vmem:[#allocation2 + $0xa0] sm:$0xf] }
  0xe5   : > { %v767_v38 = vor.u32 %v765_v18, %v764_v28  ;;  %1868 = vst [vmem:[#allocation2 + $0x90] sm:$0xf] %v750_v35  ;;  %v769_v40 = vrot.slane %v764_v28, 4  ;;  %v773_v41 = vrot.slane %v771_v31, 7  ;;  %v782_v43 = vshll.u32 %v423_v19, 16 }
  0xe6   : > { %v781_v42 = vrot.slane %v779_v33, 7  ;;  %v759_v45 = vsel %vm8763_vm5, %v751_v26, %v758_v36  ;;  %v788_v48 = vshrl.u32 %v424_v34, 16  ;;  %v791_v49 = vshll.u32 %v424_v34, 16  ;;  %v426_v50 = vld [vmem:[%s8566_s5 + $0x80] sm:$0xf] }
  0xe7   : > { %v768_v46 = vsel %vm8763_vm5, %v760_v37, %v767_v38  ;;  %1869 = vst [vmem:[#allocation2 + $0x94] sm:$0xf] %v759_v45  ;;  %v1872_v51 = vsel %vm8777_vm7, %v769_v40, %v1871_v39  ;;  %v776_v52 = vor.u32 %v774_v32, %v773_v41  ;;  %v777_v53 = vrot.slane %v773_v41, 4  ;;  %v427_v55 = vld [vmem:[%s8566_s5 + $0x84] sm:$0xf] }
  0xe8   : > { %1870 = vst [vmem:[#allocation2 + $0x98] sm:$0xf] %v768_v46  ;;  %v784_v54 = vor.u32 %v782_v43, %v781_v42  ;;  %1873 = vst [vmem:[#allocation2 + $0x9c] sm:$0x1] %v1872_v51  ;;  %v786_v56 = vrot.slane %v781_v42, 4  ;;  %v790_v57 = vrot.slane %v788_v48, 7 }
  0xe9   : > { %v797_v58 = vshrl.u32 %v425_v44, 16  ;;  %v800_v59 = vshll.u32 %v425_v44, 16  ;;  %v428_v60 = vld [vmem:[%s8566_s5 + $0x88] sm:$0xf]  ;;  %v1875_v61 = vsel %vm8770_vm6, %v776_v52, %v1874_v47  ;;  %v806_v63 = vshrl.u32 %v426_v50, 16 }
  0xea   : > { %v785_v62 = vsel %vm8763_vm5, %v777_v53, %v784_v54  ;;  %v809_v0 = vshll.u32 %v426_v50, 16  ;;  %1876 = vst [vmem:[#allocation2 + $0xa0] sm:$0xf] %v1875_v61  ;;  %v793_v1 = vor.u32 %v791_v49, %v790_v57  ;;  %v795_v2 = vrot.slane %v790_v57, 4  ;;  %v429_v5 = vld [vmem:[%s8566_s5 + $0x8c] sm:$0xf] }
  0xeb   : > { %1877 = vst [vmem:[#allocation2 + $0xa4] sm:$0xf] %v785_v62  ;;  %v799_v3 = vrot.slane %v797_v58, 7  ;;  %v814_v4 = vshrl.u32 %v427_v55, 16  ;;  %v1880_v6 = vld [vmem:[#allocation2 + $0xb0] sm:$0x1] }
  0xec   : > { %v808_v7 = vrot.slane %v806_v63, 7  ;;  %v817_v8 = vshll.u32 %v427_v55, 16  ;;  %v823_v9 = vshrl.u32 %v428_v60, 16  ;;  %v826_v10 = vshll.u32 %v428_v60, 16  ;;  %v1883_v14 = vld [vmem:[#allocation2 + $0xb4] sm:$0xf] }
  0xed   : > { %v794_v11 = vsel %vm8763_vm5, %v786_v56, %v793_v1  ;;  %v802_v12 = vor.u32 %v800_v59, %v799_v3  ;;  %v804_v13 = vrot.slane %v799_v3, 4  ;;  %v816_v15 = vrot.slane %v814_v4, 7  ;;  %v430_v21 = vld [vmem:[%s8566_s5 + $0x90] sm:$0xf]  ;;  %v431_v27 = vld [vmem:[%s8566_s5 + $0x94] sm:$0xf] }
  0xee   : > { %1878 = vst [vmem:[#allocation2 + $0xa8] sm:$0xf] %v794_v11  ;;  %v811_v16 = vor.u32 %v809_v0, %v808_v7  ;;  %v812_v18 = vrot.slane %v808_v7, 4  ;;  %v825_v19 = vrot.slane %v823_v9, 7  ;;  %v832_v20 = vshrl.u32 %v429_v5, 16 }
  0xef   : > { %v803_v23 = vsel %vm8763_vm5, %v795_v2, %v802_v12  ;;  %v1881_v24 = vsel %vm8777_vm7, %v804_v13, %v1880_v6  ;;  %v819_v25 = vor.u32 %v817_v8, %v816_v15  ;;  %v821_v26 = vrot.slane %v816_v15, 4  ;;  %v1889_v33 = vld [vmem:[#allocation2 + $0xc4] sm:$0x1]  ;;  %v432_v34 = vld [vmem:[%s8566_s5 + $0x98] sm:$0xf] }
  0xf0   : > { %1879 = vst [vmem:[#allocation2 + $0xac] sm:$0xf] %v803_v23  ;;  %1882 = vst [vmem:[#allocation2 + $0xb0] sm:$0x1] %v1881_v24  ;;  %v1884_v28 = vsel %vm8770_vm6, %v811_v16, %v1883_v14  ;;  %v828_v29 = vor.u32 %v826_v10, %v825_v19  ;;  %v830_v31 = vrot.slane %v825_v19, 4  ;;  %v834_v32 = vrot.slane %v832_v20, 7 }
  0xf1   : > { %1885 = vst [vmem:[#allocation2 + $0xb4] sm:$0xf] %v1884_v28  ;;  %v820_v35 = vsel %vm8763_vm5, %v812_v18, %v819_v25  ;;  %v835_v36 = vshll.u32 %v429_v5, 16  ;;  %v841_v37 = vshrl.u32 %v430_v21, 16  ;;  %v844_v38 = vshll.u32 %v430_v21, 16 }
  0xf2   : > { %v433_v39 = vld [vmem:[%s8566_s5 + $0x9c] sm:$0xf]  ;;  %1886 = vst [vmem:[#allocation2 + $0xb8] sm:$0xf] %v820_v35  ;;  %v829_v40 = vsel %vm8763_vm5, %v821_v26, %v828_v29  ;;  %v839_v41 = vrot.slane %v834_v32, 4  ;;  %v849_v42 = vshrl.u32 %v431_v27, 16 }
  0xf3   : > { %v852_v43 = vshll.u32 %v431_v27, 16  ;;  %1887 = vst [vmem:[#allocation2 + $0xbc] sm:$0xf] %v829_v40  ;;  %v837_v44 = vor.u32 %v835_v36, %v834_v32  ;;  %v843_v45 = vrot.slane %v841_v37, 7  ;;  %v858_v46 = vshrl.u32 %v432_v34, 16 }
  0xf4   : > { %v861_v47 = vshll.u32 %v432_v34, 16  ;;  %v434_v48 = vld [vmem:[%s8566_s5 + $0xa0] sm:$0xf]  ;;  %v1890_v49 = vsel %vm8777_vm7, %v839_v41, %v1889_v33  ;;  %v851_v51 = vrot.slane %v849_v42, 7  ;;  %v867_v52 = vshrl.u32 %v433_v39, 16 }
  0xf5   : > { %v1892_v50 = vld [vmem:[#allocation2 + $0xc8] sm:$0xf]  ;;  %v870_v53 = vshll.u32 %v433_v39, 16  ;;  %v838_v54 = vsel %vm8763_vm5, %v830_v31, %v837_v44  ;;  %1891 = vst [vmem:[#allocation2 + $0xc4] sm:$0x1] %v1890_v49  ;;  %v846_v55 = vor.u32 %v844_v38, %v843_v45  ;;  %v847_v56 = vrot.slane %v843_v45, 4 }
  0xf6   : > { %v860_v57 = vrot.slane %v858_v46, 7  ;;  %v435_v58 = vld [vmem:[%s8566_s5 + $0xa4] sm:$0xf]  ;;  %1888 = vst [vmem:[#allocation2 + $0xc0] sm:$0xf] %v838_v54  ;;  %v854_v59 = vor.u32 %v852_v43, %v851_v51  ;;  %v856_v60 = vrot.slane %v851_v51, 4 }
  0xf7   : > { %v869_v61 = vrot.slane %v867_v52, 7  ;;  %v876_v62 = vshrl.u32 %v434_v48, 16  ;;  %v436_v63 = vld [vmem:[%s8566_s5 + $0xa8] sm:$0xf]  ;;  %v1893_v0 = vsel %vm8770_vm6, %v846_v55, %v1892_v50  ;;  %v1898_v3 = vld [vmem:[#allocation2 + $0xd8] sm:$0x1] }
  0xf8   : > { %v863_v1 = vor.u32 %v861_v47, %v860_v57  ;;  %v865_v2 = vrot.slane %v860_v57, 4  ;;  %v879_v4 = vshll.u32 %v434_v48, 16  ;;  %1894 = vst [vmem:[#allocation2 + $0xc8] sm:$0xf] %v1893_v0  ;;  %v855_v5 = vsel %vm8763_vm5, %v847_v56, %v854_v59  ;;  %v1901_v9 = vld [vmem:[#allocation2 + $0xdc] sm:$0xf] }
  0xf9   : > { %v872_v6 = vor.u32 %v870_v53, %v869_v61  ;;  %v874_v7 = vrot.slane %v869_v61, 4  ;;  %v878_v8 = vrot.slane %v876_v62, 7  ;;  %v437_v10 = vld [vmem:[%s8566_s5 + $0xac] sm:$0xf]  ;;  %1895 = vst [vmem:[#allocation2 + $0xcc] sm:$0xf] %v855_v5 }
  0xfa   : > { %v864_v11 = vsel %vm8763_vm5, %v856_v60, %v863_v1  ;;  %v884_v12 = vshrl.u32 %v435_v58, 16  ;;  %v887_v13 = vshll.u32 %v435_v58, 16  ;;  %v893_v14 = vshrl.u32 %v436_v63, 16  ;;  %v438_v15 = vld [vmem:[%s8566_s5 + $0xb0] sm:$0xf] }
  0xfb   : > { %1896 = vst [vmem:[#allocation2 + $0xd0] sm:$0xf] %v864_v11  ;;  %v873_v16 = vsel %vm8763_vm5, %v865_v2, %v872_v6  ;;  %v1899_v18 = vsel %vm8777_vm7, %v874_v7, %v1898_v3  ;;  %v881_v19 = vor.u32 %v879_v4, %v878_v8  ;;  %v882_v20 = vrot.slane %v878_v8, 4  ;;  %v439_v26 = vld [vmem:[%s8566_s5 + $0xb4] sm:$0xf] }
  0xfc   : > { %1897 = vst [vmem:[#allocation2 + $0xd4] sm:$0xf] %v873_v16  ;;  %1900 = vst [vmem:[#allocation2 + $0xd8] sm:$0x1] %v1899_v18  ;;  %v886_v21 = vrot.slane %v884_v12, 7  ;;  %v895_v23 = vrot.slane %v893_v14, 7 }
  0xfd   : > { %v896_v24 = vshll.u32 %v436_v63, 16  ;;  %v902_v25 = vshrl.u32 %v437_v10, 16  ;;  %v1902_v27 = vsel %vm8770_vm6, %v881_v19, %v1901_v9  ;;  %v905_v28 = vshll.u32 %v437_v10, 16  ;;  %v440_v32 = vld [vmem:[%s8566_s5 + $0xb8] sm:$0xf] }
  0xfe   : > { %v911_v29 = vshrl.u32 %v438_v15, 16  ;;  %v914_v31 = vshll.u32 %v438_v15, 16  ;;  %1903 = vst [vmem:[#allocation2 + $0xdc] sm:$0xf] %v1902_v27  ;;  %v889_v33 = vor.u32 %v887_v13, %v886_v21  ;;  %v891_v34 = vrot.slane %v886_v21, 4 }
  0xff   : > { %v898_v35 = vor.u32 %v896_v24, %v895_v23  ;;  %v900_v36 = vrot.slane %v895_v23, 4  ;;  %v1907_v37 = vld [vmem:[#allocation2 + $0xec] sm:$0x1]  ;;  %v904_v38 = vrot.slane %v902_v25, 7  ;;  %v919_v40 = vshrl.u32 %v439_v26, 16 }
 0x100   : > { %v913_v39 = vrot.slane %v911_v29, 7  ;;  %v922_v41 = vshll.u32 %v439_v26, 16  ;;  %v441_v42 = vld [vmem:[%s8566_s5 + $0xbc] sm:$0xf]  ;;  %v890_v43 = vsel %vm8763_vm5, %v882_v20, %v889_v33  ;;  %v1910_v45 = vld [vmem:[#allocation2 + $0xf0] sm:$0xf] }
 0x101   : > { %v899_v44 = vsel %vm8763_vm5, %v891_v34, %v898_v35  ;;  %v928_v46 = vshrl.u32 %v440_v32, 16  ;;  %v931_v47 = vshll.u32 %v440_v32, 16  ;;  %v442_v48 = vld [vmem:[%s8566_s5 + $0xc0] sm:$0xf]  ;;  %1904 = vst [vmem:[#allocation2 + $0xe0] sm:$0xf] %v890_v43  ;;  %v907_v49 = vor.u32 %v905_v28, %v904_v38 }
 0x102   : > { %1905 = vst [vmem:[#allocation2 + $0xe4] sm:$0xf] %v899_v44  ;;  %v909_v50 = vrot.slane %v904_v38, 4  ;;  %v916_v51 = vor.u32 %v914_v31, %v913_v39  ;;  %v917_v52 = vrot.slane %v913_v39, 4  ;;  %v921_v53 = vrot.slane %v919_v40, 7 }
 0x103   : > { %v930_v54 = vrot.slane %v928_v46, 7  ;;  %v937_v55 = vshrl.u32 %v441_v42, 16  ;;  %v940_v56 = vshll.u32 %v441_v42, 16  ;;  %v443_v57 = vld [vmem:[%s8566_s5 + $0xc4] sm:$0xf]  ;;  %v908_v58 = vsel %vm8763_vm5, %v900_v36, %v907_v49 }
 0x104   : > { %v1908_v59 = vsel %vm8777_vm7, %v909_v50, %v1907_v37  ;;  %v1911_v60 = vsel %vm8770_vm6, %v916_v51, %v1910_v45  ;;  %v946_v61 = vshrl.u32 %v442_v48, 16  ;;  %v444_v62 = vld [vmem:[%s8566_s5 + $0xc8] sm:$0xf]  ;;  %1906 = vst [vmem:[#allocation2 + $0xe8] sm:$0xf] %v908_v58  ;;  %v924_v63 = vor.u32 %v922_v41, %v921_v53 }
 0x105   : > { %1909 = vst [vmem:[#allocation2 + $0xec] sm:$0x1] %v1908_v59  ;;  %1912 = vst [vmem:[#allocation2 + $0xf0] sm:$0xf] %v1911_v60  ;;  %v926_v0 = vrot.slane %v921_v53, 4  ;;  %v933_v1 = vor.u32 %v931_v47, %v930_v54  ;;  %v935_v2 = vrot.slane %v930_v54, 4 }
 0x106   : > { %v939_v3 = vrot.slane %v937_v55, 7  ;;  %v948_v4 = vrot.slane %v946_v61, 7  ;;  %v949_v5 = vshll.u32 %v442_v48, 16  ;;  %v954_v6 = vshrl.u32 %v443_v57, 16  ;;  %v445_v7 = vld [vmem:[%s8566_s5 + $0xcc] sm:$0xf] }
 0x107   : > { %v925_v8 = vsel %vm8763_vm5, %v917_v52, %v924_v63  ;;  %v934_v9 = vsel %vm8763_vm5, %v926_v0, %v933_v1  ;;  %v1916_v10 = vld [vmem:[#allocation2 + $0x100] sm:$0x1]  ;;  %v1919_v11 = vld [vmem:[#allocation2 + $0x104] sm:$0xf]  ;;  %v957_v12 = vshll.u32 %v443_v57, 16  ;;  %v963_v13 = vshrl.u32 %v444_v62, 16 }
 0x108   : > { %1913 = vst [vmem:[#allocation2 + $0xf4] sm:$0xf] %v925_v8  ;;  %1914 = vst [vmem:[#allocation2 + $0xf8] sm:$0xf] %v934_v9  ;;  %v942_v14 = vor.u32 %v940_v56, %v939_v3  ;;  %v944_v15 = vrot.slane %v939_v3, 4  ;;  %v951_v16 = vor.u32 %v949_v5, %v948_v4  ;;  %v952_v18 = vrot.slane %v948_v4, 4 }
 0x109   : > { %v446_v19 = vld [vmem:[%s8566_s5 + $0xd0] sm:$0xf]  ;;  %v956_v20 = vrot.slane %v954_v6, 7  ;;  %v965_v21 = vrot.slane %v963_v13, 7  ;;  %v966_v23 = vshll.u32 %v444_v62, 16  ;;  %v972_v24 = vshrl.u32 %v445_v7, 16 }
 0x10a   : > { %v447_v25 = vld [vmem:[%s8566_s5 + $0xd4] sm:$0xf]  ;;  %v943_v26 = vsel %vm8763_vm5, %v935_v2, %v942_v14  ;;  %v1917_v27 = vsel %vm8777_vm7, %v944_v15, %v1916_v10  ;;  %v1920_v28 = vsel %vm8770_vm6, %v951_v16, %v1919_v11  ;;  %v975_v29 = vshll.u32 %v445_v7, 16  ;;  %v448_v31 = vld [vmem:[%s8566_s5 + $0xd8] sm:$0xf] }
 0x10b   : > { %1915 = vst [vmem:[#allocation2 + $0xfc] sm:$0xf] %v943_v26  ;;  %1918 = vst [vmem:[#allocation2 + $0x100] sm:$0x1] %v1917_v27  ;;  %v959_v32 = vor.u32 %v957_v12, %v956_v20  ;;  %v961_v33 = vrot.slane %v956_v20, 4  ;;  %v968_v34 = vor.u32 %v966_v23, %v965_v21  ;;  %v970_v35 = vrot.slane %v965_v21, 4 }
 0x10c   : > { %1921 = vst [vmem:[#allocation2 + $0x104] sm:$0xf] %v1920_v28  ;;  %v974_v36 = vrot.slane %v972_v24, 7  ;;  %v981_v37 = vshrl.u32 %v446_v19, 16  ;;  %v984_v38 = vshll.u32 %v446_v19, 16  ;;  %v989_v39 = vshrl.u32 %v447_v25, 16 }
 0x10d   : > { %v449_v40 = vld [vmem:[%s8566_s5 + $0xdc] sm:$0xf]  ;;  %v960_v41 = vsel %vm8763_vm5, %v952_v18, %v959_v32  ;;  %v969_v42 = vsel %vm8763_vm5, %v961_v33, %v968_v34  ;;  %v1925_v43 = vld [vmem:[#allocation2 + $0x114] sm:$0x1]  ;;  %v992_v44 = vshll.u32 %v447_v25, 16  ;;  %v998_v45 = vshrl.u32 %v448_v31, 16 }
 0x10e   : > { %1922 = vst [vmem:[#allocation2 + $0x108] sm:$0xf] %v960_v41  ;;  %1923 = vst [vmem:[#allocation2 + $0x10c] sm:$0xf] %v969_v42  ;;  %v977_v46 = vor.u32 %v975_v29, %v974_v36  ;;  %v979_v47 = vrot.slane %v974_v36, 4  ;;  %v983_v48 = vrot.slane %v981_v37, 7 }
 0x10f   : > { %v1928_v49 = vld [vmem:[#allocation2 + $0x118] sm:$0xf]  ;;  %v991_v50 = vrot.slane %v989_v39, 7  ;;  %v1000_v51 = vrot.slane %v998_v45, 7  ;;  %v1001_v52 = vshll.u32 %v448_v31, 16  ;;  %v1007_v53 = vshrl.u32 %v449_v40, 16 }
 0x110   : > { %v1010_v54 = vshll.u32 %v449_v40, 16  ;;  %v450_v55 = vld [vmem:[%s8566_s5 + $0xe0] sm:$0xf]  ;;  %v978_v56 = vsel %vm8763_vm5, %v970_v35, %v977_v46  ;;  %v1926_v57 = vsel %vm8777_vm7, %v979_v47, %v1925_v43  ;;  %v986_v58 = vor.u32 %v984_v38, %v983_v48  ;;  %v451_v60 = vld [vmem:[%s8566_s5 + $0xe4] sm:$0xf] }
 0x111   : > { %v987_v59 = vrot.slane %v983_v48, 4  ;;  %1924 = vst [vmem:[#allocation2 + $0x110] sm:$0xf] %v978_v56  ;;  %1927 = vst [vmem:[#allocation2 + $0x114] sm:$0x1] %v1926_v57  ;;  %v994_v61 = vor.u32 %v992_v44, %v991_v50  ;;  %v996_v62 = vrot.slane %v991_v50, 4  ;;  %v1003_v63 = vor.u32 %v1001_v52, %v1000_v51 }
 0x112   : > { %v1005_v0 = vrot.slane %v1000_v51, 4  ;;  %v452_v1 = vld [vmem:[%s8566_s5 + $0xe8] sm:$0xf]  ;;  %v1929_v2 = vsel %vm8770_vm6, %v986_v58, %v1928_v49  ;;  %v1009_v3 = vrot.slane %v1007_v53, 7  ;;  %v1016_v4 = vshrl.u32 %v450_v55, 16 }
 0x113   : > { %v1019_v5 = vshll.u32 %v450_v55, 16  ;;  %v453_v6 = vld [vmem:[%s8566_s5 + $0xec] sm:$0xf]  ;;  %1930 = vst [vmem:[#allocation2 + $0x118] sm:$0xf] %v1929_v2  ;;  %v995_v7 = vsel %vm8763_vm5, %v987_v59, %v994_v61  ;;  %v1004_v8 = vsel %vm8763_vm5, %v996_v62, %v1003_v63  ;;  %v1024_v11 = vshrl.u32 %v451_v60, 16 }
 0x114   : > { %v1934_v9 = vld [vmem:[#allocation2 + $0x128] sm:$0x1]  ;;  %v1937_v10 = vld [vmem:[#allocation2 + $0x12c] sm:$0xf]  ;;  %v1027_v12 = vshll.u32 %v451_v60, 16  ;;  %v1012_v13 = vor.u32 %v1010_v54, %v1009_v3  ;;  %v1014_v14 = vrot.slane %v1009_v3, 4 }
 0x115   : > { %1931 = vst [vmem:[#allocation2 + $0x11c] sm:$0xf] %v995_v7  ;;  %1932 = vst [vmem:[#allocation2 + $0x120] sm:$0xf] %v1004_v8  ;;  %v1018_v15 = vrot.slane %v1016_v4, 7  ;;  %v1033_v16 = vshrl.u32 %v452_v1, 16 }
 0x116   : > { %v454_v18 = vld [vmem:[%s8566_s5 + $0xf0] sm:$0xf]  ;;  %v1026_v19 = vrot.slane %v1024_v11, 7  ;;  %v1036_v20 = vshll.u32 %v452_v1, 16  ;;  %v1042_v21 = vshrl.u32 %v453_v6, 16  ;;  %v1045_v23 = vshll.u32 %v453_v6, 16 }
 0x117   : > { %v455_v24 = vld [vmem:[%s8566_s5 + $0xf4] sm:$0xf]  ;;  %v1013_v25 = vsel %vm8763_vm5, %v1005_v0, %v1012_v13  ;;  %v1935_v26 = vsel %vm8777_vm7, %v1014_v14, %v1934_v9  ;;  %v1021_v27 = vor.u32 %v1019_v5, %v1018_v15  ;;  %v1022_v28 = vrot.slane %v1018_v15, 4  ;;  %v456_v38 = vld [vmem:[%s8566_s5 + $0xf8] sm:$0xf] }
 0x118   : > { %1933 = vst [vmem:[#allocation2 + $0x124] sm:$0xf] %v1013_v25  ;;  %1936 = vst [vmem:[#allocation2 + $0x128] sm:$0x1] %v1935_v26  ;;  %v1029_v29 = vor.u32 %v1027_v12, %v1026_v19  ;;  %v1031_v31 = vrot.slane %v1026_v19, 4  ;;  %v1035_v32 = vrot.slane %v1033_v16, 7 }
 0x119   : > { %v1044_v33 = vrot.slane %v1042_v21, 7  ;;  %v1938_v34 = vsel %vm8770_vm6, %v1021_v27, %v1937_v10  ;;  %v1051_v35 = vshrl.u32 %v454_v18, 16  ;;  %v1054_v36 = vshll.u32 %v454_v18, 16  ;;  %v1943_v43 = vld [vmem:[#allocation2 + $0x13c] sm:$0x1] }
 0x11a   : > { %v1059_v37 = vshrl.u32 %v455_v24, 16  ;;  %1939 = vst [vmem:[#allocation2 + $0x12c] sm:$0xf] %v1938_v34  ;;  %v1030_v39 = vsel %vm8763_vm5, %v1022_v28, %v1029_v29  ;;  %v1038_v40 = vor.u32 %v1036_v20, %v1035_v32  ;;  %v1040_v41 = vrot.slane %v1035_v32, 4  ;;  %v457_v48 = vld [vmem:[%s8566_s5 + $0xfc] sm:$0xf] }
 0x11b   : > { %v1047_v42 = vor.u32 %v1045_v23, %v1044_v33  ;;  %1940 = vst [vmem:[#allocation2 + $0x130] sm:$0xf] %v1030_v39  ;;  %v1049_v44 = vrot.slane %v1044_v33, 4  ;;  %v1053_v45 = vrot.slane %v1051_v35, 7  ;;  %v1062_v47 = vshll.u32 %v455_v24, 16 }
 0x11c   : > { %v1061_v46 = vrot.slane %v1059_v37, 7  ;;  %v1039_v49 = vsel %vm8763_vm5, %v1031_v31, %v1038_v40  ;;  %v1946_v51 = vld [vmem:[#allocation2 + $0x140] sm:$0xf]  ;;  %v1068_v52 = vshrl.u32 %v456_v38, 16  ;;  %v1071_v53 = vshll.u32 %v456_v38, 16 }
 0x11d   : > { %v1048_v50 = vsel %vm8763_vm5, %v1040_v41, %v1047_v42  ;;  %v458_v54 = vld [vmem:[%s8566_s5 + $0x100] sm:$0xf]  ;;  %1941 = vst [vmem:[#allocation2 + $0x134] sm:$0xf] %v1039_v49  ;;  %v1944_v55 = vsel %vm8777_vm7, %v1049_v44, %v1943_v43  ;;  %v1056_v56 = vor.u32 %v1054_v36, %v1053_v45  ;;  %v1057_v57 = vrot.slane %v1053_v45, 4 }
 0x11e   : > { %1942 = vst [vmem:[#allocation2 + $0x138] sm:$0xf] %v1048_v50  ;;  %v1064_v58 = vor.u32 %v1062_v47, %v1061_v46  ;;  %v459_v59 = vld [vmem:[%s8566_s5 + $0x104] sm:$0xf]  ;;  %1945 = vst [vmem:[#allocation2 + $0x13c] sm:$0x1] %v1944_v55 }
 0x11f   : > { %v1066_v60 = vrot.slane %v1061_v46, 4  ;;  %v1070_v61 = vrot.slane %v1068_v52, 7  ;;  %v1077_v62 = vshrl.u32 %v457_v48, 16  ;;  %v1080_v63 = vshll.u32 %v457_v48, 16  ;;  %v460_v0 = vld [vmem:[%s8566_s5 + $0x108] sm:$0xf] }
 0x120   : > { %v1947_v1 = vsel %vm8770_vm6, %v1056_v56, %v1946_v51  ;;  %v1065_v2 = vsel %vm8763_vm5, %v1057_v57, %v1064_v58  ;;  %v1086_v3 = vshrl.u32 %v458_v54, 16  ;;  %v1089_v4 = vshll.u32 %v458_v54, 16  ;;  %v461_v9 = vld [vmem:[%s8566_s5 + $0x10c] sm:$0xf]  ;;  %v1952_v10 = vld [vmem:[#allocation2 + $0x150] sm:$0x1] }
 0x121   : > { %1948 = vst [vmem:[#allocation2 + $0x140] sm:$0xf] %v1947_v1  ;;  %1949 = vst [vmem:[#allocation2 + $0x144] sm:$0xf] %v1065_v2  ;;  %v1073_v5 = vor.u32 %v1071_v53, %v1070_v61  ;;  %v1075_v6 = vrot.slane %v1070_v61, 4  ;;  %v1079_v7 = vrot.slane %v1077_v62, 7 }
 0x122   : > { %v1094_v8 = vshrl.u32 %v459_v59, 16  ;;  %v1088_v11 = vrot.slane %v1086_v3, 7  ;;  %v1097_v12 = vshll.u32 %v459_v59, 16  ;;  %v1103_v13 = vshrl.u32 %v460_v0, 16  ;;  %v1955_v19 = vld [vmem:[#allocation2 + $0x154] sm:$0xf] }
 0x123   : > { %v1106_v14 = vshll.u32 %v460_v0, 16  ;;  %v1074_v15 = vsel %vm8763_vm5, %v1066_v60, %v1073_v5  ;;  %v1082_v16 = vor.u32 %v1080_v63, %v1079_v7  ;;  %v1084_v18 = vrot.slane %v1079_v7, 4  ;;  %v462_v26 = vld [vmem:[%s8566_s5 + $0x110] sm:$0xf]  ;;  %v463_v32 = vld [vmem:[%s8566_s5 + $0x114] sm:$0xf] }
 0x124   : > { %v1096_v20 = vrot.slane %v1094_v8, 7  ;;  %1950 = vst [vmem:[#allocation2 + $0x148] sm:$0xf] %v1074_v15  ;;  %v1091_v21 = vor.u32 %v1089_v4, %v1088_v11  ;;  %v1092_v23 = vrot.slane %v1088_v11, 4  ;;  %v1105_v24 = vrot.slane %v1103_v13, 7 }
 0x125   : > { %v1112_v25 = vshrl.u32 %v461_v9, 16  ;;  %v1083_v27 = vsel %vm8763_vm5, %v1075_v6, %v1082_v16  ;;  %v1953_v28 = vsel %vm8777_vm7, %v1084_v18, %v1952_v10  ;;  %v1961_v37 = vld [vmem:[#allocation2 + $0x164] sm:$0x1]  ;;  %v464_v38 = vld [vmem:[%s8566_s5 + $0x118] sm:$0xf]  ;;  %v1115_v40 = vshll.u32 %v461_v9, 16 }
 0x126   : > { %v1099_v29 = vor.u32 %v1097_v12, %v1096_v20  ;;  %v1101_v31 = vrot.slane %v1096_v20, 4  ;;  %1951 = vst [vmem:[#allocation2 + $0x14c] sm:$0xf] %v1083_v27  ;;  %1954 = vst [vmem:[#allocation2 + $0x150] sm:$0x1] %v1953_v28  ;;  %v1956_v33 = vsel %vm8770_vm6, %v1091_v21, %v1955_v19  ;;  %v1108_v34 = vor.u32 %v1106_v14, %v1105_v24 }
 0x127   : > { %v1110_v35 = vrot.slane %v1105_v24, 4  ;;  %v1114_v36 = vrot.slane %v1112_v25, 7  ;;  %1957 = vst [vmem:[#allocation2 + $0x154] sm:$0xf] %v1956_v33  ;;  %v1121_v41 = vshrl.u32 %v462_v26, 16  ;;  %v1124_v42 = vshll.u32 %v462_v26, 16 }
 0x128   : > { %v1100_v39 = vsel %vm8763_vm5, %v1092_v23, %v1099_v29  ;;  %v465_v43 = vld [vmem:[%s8566_s5 + $0x11c] sm:$0xf]  ;;  %v1109_v44 = vsel %vm8763_vm5, %v1101_v31, %v1108_v34  ;;  %v1129_v46 = vshrl.u32 %v463_v32, 16  ;;  %v1132_v47 = vshll.u32 %v463_v32, 16  ;;  %v466_v52 = vld [vmem:[%s8566_s5 + $0x120] sm:$0xf] }
 0x129   : > { %1958 = vst [vmem:[#allocation2 + $0x158] sm:$0xf] %v1100_v39  ;;  %v1119_v45 = vrot.slane %v1114_v36, 4  ;;  %1959 = vst [vmem:[#allocation2 + $0x15c] sm:$0xf] %v1109_v44  ;;  %v1117_v48 = vor.u32 %v1115_v40, %v1114_v36  ;;  %v1123_v49 = vrot.slane %v1121_v41, 7 }
 0x12a   : > { %v1138_v50 = vshrl.u32 %v464_v38, 16  ;;  %v1141_v51 = vshll.u32 %v464_v38, 16  ;;  %v1964_v54 = vld [vmem:[#allocation2 + $0x168] sm:$0xf]  ;;  %v1131_v55 = vrot.slane %v1129_v46, 7  ;;  %v1147_v56 = vshrl.u32 %v465_v43, 16 }
 0x12b   : > { %v1962_v53 = vsel %vm8777_vm7, %v1119_v45, %v1961_v37  ;;  %v1150_v57 = vshll.u32 %v465_v43, 16  ;;  %v1118_v58 = vsel %vm8763_vm5, %v1110_v35, %v1117_v48  ;;  %v1126_v59 = vor.u32 %v1124_v42, %v1123_v49  ;;  %v467_v62 = vld [vmem:[%s8566_s5 + $0x124] sm:$0xf]  ;;  %v468_v3 = vld [vmem:[%s8566_s5 + $0x128] sm:$0xf] }
 0x12c   : > { %1963 = vst [vmem:[#allocation2 + $0x164] sm:$0x1] %v1962_v53  ;;  %v1127_v60 = vrot.slane %v1123_v49, 4  ;;  %v1140_v61 = vrot.slane %v1138_v50, 7  ;;  %1960 = vst [vmem:[#allocation2 + $0x160] sm:$0xf] %v1118_v58  ;;  %v1134_v63 = vor.u32 %v1132_v47, %v1131_v55 }
 0x12d   : > { %v1136_v0 = vrot.slane %v1131_v55, 4  ;;  %v1149_v1 = vrot.slane %v1147_v56, 7  ;;  %v1156_v2 = vshrl.u32 %v466_v52, 16  ;;  %v1965_v4 = vsel %vm8770_vm6, %v1126_v59, %v1964_v54  ;;  %v1970_v7 = vld [vmem:[#allocation2 + $0x178] sm:$0x1] }
 0x12e   : > { %v1143_v5 = vor.u32 %v1141_v51, %v1140_v61  ;;  %v1145_v6 = vrot.slane %v1140_v61, 4  ;;  %v1159_v8 = vshll.u32 %v466_v52, 16  ;;  %1966 = vst [vmem:[#allocation2 + $0x168] sm:$0xf] %v1965_v4  ;;  %v1135_v9 = vsel %vm8763_vm5, %v1127_v60, %v1134_v63  ;;  %v1973_v13 = vld [vmem:[#allocation2 + $0x17c] sm:$0xf] }
 0x12f   : > { %v1152_v10 = vor.u32 %v1150_v57, %v1149_v1  ;;  %v1154_v11 = vrot.slane %v1149_v1, 4  ;;  %v1158_v12 = vrot.slane %v1156_v2, 7  ;;  %v469_v14 = vld [vmem:[%s8566_s5 + $0x12c] sm:$0xf]  ;;  %1967 = vst [vmem:[#allocation2 + $0x16c] sm:$0xf] %v1135_v9 }
 0x130   : > { %v1144_v15 = vsel %vm8763_vm5, %v1136_v0, %v1143_v5  ;;  %v1164_v16 = vshrl.u32 %v467_v62, 16  ;;  %v1167_v18 = vshll.u32 %v467_v62, 16  ;;  %v1173_v19 = vshrl.u32 %v468_v3, 16  ;;  %v470_v20 = vld [vmem:[%s8566_s5 + $0x130] sm:$0xf] }
 0x131   : > { %1968 = vst [vmem:[#allocation2 + $0x170] sm:$0xf] %v1144_v15  ;;  %v1153_v21 = vsel %vm8763_vm5, %v1145_v6, %v1152_v10  ;;  %v1971_v23 = vsel %vm8777_vm7, %v1154_v11, %v1970_v7  ;;  %v1161_v24 = vor.u32 %v1159_v8, %v1158_v12  ;;  %v1162_v25 = vrot.slane %v1158_v12, 4  ;;  %v471_v31 = vld [vmem:[%s8566_s5 + $0x134] sm:$0xf] }
 0x132   : > { %1969 = vst [vmem:[#allocation2 + $0x174] sm:$0xf] %v1153_v21  ;;  %1972 = vst [vmem:[#allocation2 + $0x178] sm:$0x1] %v1971_v23  ;;  %v1166_v26 = vrot.slane %v1164_v16, 7  ;;  %v1175_v27 = vrot.slane %v1173_v19, 7 }
 0x133   : > { %v1176_v28 = vshll.u32 %v468_v3, 16  ;;  %v1182_v29 = vshrl.u32 %v469_v14, 16  ;;  %v1974_v32 = vsel %vm8770_vm6, %v1161_v24, %v1973_v13  ;;  %v1185_v33 = vshll.u32 %v469_v14, 16  ;;  %v472_v36 = vld [vmem:[%s8566_s5 + $0x138] sm:$0xf] }
 0x134   : > { %v1191_v34 = vshrl.u32 %v470_v20, 16  ;;  %v1194_v35 = vshll.u32 %v470_v20, 16  ;;  %1975 = vst [vmem:[#allocation2 + $0x17c] sm:$0xf] %v1974_v32  ;;  %v1169_v37 = vor.u32 %v1167_v18, %v1166_v26  ;;  %v1171_v38 = vrot.slane %v1166_v26, 4 }
 0x135   : > { %v1178_v39 = vor.u32 %v1176_v28, %v1175_v27  ;;  %v1180_v40 = vrot.slane %v1175_v27, 4  ;;  %v1979_v41 = vld [vmem:[#allocation2 + $0x18c] sm:$0x1]  ;;  %v1184_v42 = vrot.slane %v1182_v29, 7  ;;  %v1199_v44 = vshrl.u32 %v471_v31, 16 }
 0x136   : > { %v1193_v43 = vrot.slane %v1191_v34, 7  ;;  %v1202_v45 = vshll.u32 %v471_v31, 16  ;;  %v473_v46 = vld [vmem:[%s8566_s5 + $0x13c] sm:$0xf]  ;;  %v1170_v47 = vsel %vm8763_vm5, %v1162_v25, %v1169_v37  ;;  %v1982_v49 = vld [vmem:[#allocation2 + $0x190] sm:$0xf] }
 0x137   : > { %v1179_v48 = vsel %vm8763_vm5, %v1171_v38, %v1178_v39  ;;  %v1208_v50 = vshrl.u32 %v472_v36, 16  ;;  %v1211_v51 = vshll.u32 %v472_v36, 16  ;;  %v474_v52 = vld [vmem:[%s8566_s5 + $0x140] sm:$0xf]  ;;  %1976 = vst [vmem:[#allocation2 + $0x180] sm:$0xf] %v1170_v47  ;;  %v1187_v53 = vor.u32 %v1185_v33, %v1184_v42 }
 0x138   : > { %1977 = vst [vmem:[#allocation2 + $0x184] sm:$0xf] %v1179_v48  ;;  %v1189_v54 = vrot.slane %v1184_v42, 4  ;;  %v1196_v55 = vor.u32 %v1194_v35, %v1193_v43  ;;  %v1197_v56 = vrot.slane %v1193_v43, 4  ;;  %v1201_v57 = vrot.slane %v1199_v44, 7 }
 0x139   : > { %v1210_v58 = vrot.slane %v1208_v50, 7  ;;  %v1217_v59 = vshrl.u32 %v473_v46, 16  ;;  %v1220_v60 = vshll.u32 %v473_v46, 16  ;;  %v475_v61 = vld [vmem:[%s8566_s5 + $0x144] sm:$0xf]  ;;  %v1188_v62 = vsel %vm8763_vm5, %v1180_v40, %v1187_v53 }
 0x13a   : > { %v1980_v63 = vsel %vm8777_vm7, %v1189_v54, %v1979_v41  ;;  %v1983_v0 = vsel %vm8770_vm6, %v1196_v55, %v1982_v49  ;;  %v1226_v1 = vshrl.u32 %v474_v52, 16  ;;  %v476_v2 = vld [vmem:[%s8566_s5 + $0x148] sm:$0xf]  ;;  %1978 = vst [vmem:[#allocation2 + $0x188] sm:$0xf] %v1188_v62  ;;  %v1204_v3 = vor.u32 %v1202_v45, %v1201_v57 }
 0x13b   : > { %1981 = vst [vmem:[#allocation2 + $0x18c] sm:$0x1] %v1980_v63  ;;  %1984 = vst [vmem:[#allocation2 + $0x190] sm:$0xf] %v1983_v0  ;;  %v1206_v4 = vrot.slane %v1201_v57, 4  ;;  %v1213_v5 = vor.u32 %v1211_v51, %v1210_v58  ;;  %v1215_v6 = vrot.slane %v1210_v58, 4 }
 0x13c   : > { %v1219_v7 = vrot.slane %v1217_v59, 7  ;;  %v1228_v8 = vrot.slane %v1226_v1, 7  ;;  %v1229_v9 = vshll.u32 %v474_v52, 16  ;;  %v1234_v10 = vshrl.u32 %v475_v61, 16  ;;  %v477_v11 = vld [vmem:[%s8566_s5 + $0x14c] sm:$0xf] }
 0x13d   : > { %v1205_v12 = vsel %vm8763_vm5, %v1197_v56, %v1204_v3  ;;  %v1214_v13 = vsel %vm8763_vm5, %v1206_v4, %v1213_v5  ;;  %v1988_v14 = vld [vmem:[#allocation2 + $0x1a0] sm:$0x1]  ;;  %v1991_v15 = vld [vmem:[#allocation2 + $0x1a4] sm:$0xf]  ;;  %v1237_v16 = vshll.u32 %v475_v61, 16  ;;  %v1243_v18 = vshrl.u32 %v476_v2, 16 }
 0x13e   : > { %1985 = vst [vmem:[#allocation2 + $0x194] sm:$0xf] %v1205_v12  ;;  %1986 = vst [vmem:[#allocation2 + $0x198] sm:$0xf] %v1214_v13  ;;  %v1222_v19 = vor.u32 %v1220_v60, %v1219_v7  ;;  %v1224_v20 = vrot.slane %v1219_v7, 4  ;;  %v1231_v21 = vor.u32 %v1229_v9, %v1228_v8  ;;  %v1232_v23 = vrot.slane %v1228_v8, 4 }
 0x13f   : > { %v478_v24 = vld [vmem:[%s8566_s5 + $0x150] sm:$0xf]  ;;  %v1236_v25 = vrot.slane %v1234_v10, 7  ;;  %v1245_v26 = vrot.slane %v1243_v18, 7  ;;  %v1246_v27 = vshll.u32 %v476_v2, 16  ;;  %v1252_v28 = vshrl.u32 %v477_v11, 16 }
 0x140   : > { %v479_v29 = vld [vmem:[%s8566_s5 + $0x154] sm:$0xf]  ;;  %v1223_v31 = vsel %vm8763_vm5, %v1215_v6, %v1222_v19  ;;  %v1989_v32 = vsel %vm8777_vm7, %v1224_v20, %v1988_v14  ;;  %v1992_v33 = vsel %vm8770_vm6, %v1231_v21, %v1991_v15  ;;  %v1255_v34 = vshll.u32 %v477_v11, 16  ;;  %v480_v35 = vld [vmem:[%s8566_s5 + $0x158] sm:$0xf] }
 0x141   : > { %1987 = vst [vmem:[#allocation2 + $0x19c] sm:$0xf] %v1223_v31  ;;  %1990 = vst [vmem:[#allocation2 + $0x1a0] sm:$0x1] %v1989_v32  ;;  %v1239_v36 = vor.u32 %v1237_v16, %v1236_v25  ;;  %v1241_v37 = vrot.slane %v1236_v25, 4  ;;  %v1248_v38 = vor.u32 %v1246_v27, %v1245_v26  ;;  %v1250_v39 = vrot.slane %v1245_v26, 4 }
 0x142   : > { %1993 = vst [vmem:[#allocation2 + $0x1a4] sm:$0xf] %v1992_v33  ;;  %v1254_v40 = vrot.slane %v1252_v28, 7  ;;  %v1261_v41 = vshrl.u32 %v478_v24, 16  ;;  %v1264_v42 = vshll.u32 %v478_v24, 16  ;;  %v1269_v43 = vshrl.u32 %v479_v29, 16 }
 0x143   : > { %v481_v44 = vld [vmem:[%s8566_s5 + $0x15c] sm:$0xf]  ;;  %v1240_v45 = vsel %vm8763_vm5, %v1232_v23, %v1239_v36  ;;  %v1249_v46 = vsel %vm8763_vm5, %v1241_v37, %v1248_v38  ;;  %v1997_v47 = vld [vmem:[#allocation2 + $0x1b4] sm:$0x1]  ;;  %v1272_v48 = vshll.u32 %v479_v29, 16  ;;  %v1278_v49 = vshrl.u32 %v480_v35, 16 }
 0x144   : > { %1994 = vst [vmem:[#allocation2 + $0x1a8] sm:$0xf] %v1240_v45  ;;  %1995 = vst [vmem:[#allocation2 + $0x1ac] sm:$0xf] %v1249_v46  ;;  %v1257_v50 = vor.u32 %v1255_v34, %v1254_v40  ;;  %v1259_v51 = vrot.slane %v1254_v40, 4  ;;  %v1263_v52 = vrot.slane %v1261_v41, 7 }
 0x145   : > { %v2000_v53 = vld [vmem:[#allocation2 + $0x1b8] sm:$0xf]  ;;  %v1271_v54 = vrot.slane %v1269_v43, 7  ;;  %v1280_v55 = vrot.slane %v1278_v49, 7  ;;  %v1281_v56 = vshll.u32 %v480_v35, 16  ;;  %v1287_v57 = vshrl.u32 %v481_v44, 16 }
 0x146   : > { %v1290_v58 = vshll.u32 %v481_v44, 16  ;;  %v482_v59 = vld [vmem:[%s8566_s5 + $0x160] sm:$0xf]  ;;  %v1258_v60 = vsel %vm8763_vm5, %v1250_v39, %v1257_v50  ;;  %v1998_v61 = vsel %vm8777_vm7, %v1259_v51, %v1997_v47  ;;  %v1266_v62 = vor.u32 %v1264_v42, %v1263_v52  ;;  %v483_v0 = vld [vmem:[%s8566_s5 + $0x164] sm:$0xf] }
 0x147   : > { %v1267_v63 = vrot.slane %v1263_v52, 4  ;;  %1996 = vst [vmem:[#allocation2 + $0x1b0] sm:$0xf] %v1258_v60  ;;  %1999 = vst [vmem:[#allocation2 + $0x1b4] sm:$0x1] %v1998_v61  ;;  %v1274_v1 = vor.u32 %v1272_v48, %v1271_v54  ;;  %v1276_v2 = vrot.slane %v1271_v54, 4  ;;  %v1283_v3 = vor.u32 %v1281_v56, %v1280_v55 }
 0x148   : > { %v1285_v4 = vrot.slane %v1280_v55, 4  ;;  %v484_v5 = vld [vmem:[%s8566_s5 + $0x168] sm:$0xf]  ;;  %v2001_v6 = vsel %vm8770_vm6, %v1266_v62, %v2000_v53  ;;  %v1289_v7 = vrot.slane %v1287_v57, 7  ;;  %v1296_v8 = vshrl.u32 %v482_v59, 16 }
 0x149   : > { %v1299_v9 = vshll.u32 %v482_v59, 16  ;;  %v485_v10 = vld [vmem:[%s8566_s5 + $0x16c] sm:$0xf]  ;;  %2002 = vst [vmem:[#allocation2 + $0x1b8] sm:$0xf] %v2001_v6  ;;  %v1275_v11 = vsel %vm8763_vm5, %v1267_v63, %v1274_v1  ;;  %v1284_v12 = vsel %vm8763_vm5, %v1276_v2, %v1283_v3  ;;  %v1304_v15 = vshrl.u32 %v483_v0, 16 }
 0x14a   : > { %v2006_v13 = vld [vmem:[#allocation2 + $0x1c8] sm:$0x1]  ;;  %v2009_v14 = vld [vmem:[#allocation2 + $0x1cc] sm:$0xf]  ;;  %v1307_v16 = vshll.u32 %v483_v0, 16  ;;  %v1292_v18 = vor.u32 %v1290_v58, %v1289_v7  ;;  %v1294_v19 = vrot.slane %v1289_v7, 4 }
 0x14b   : > { %2003 = vst [vmem:[#allocation2 + $0x1bc] sm:$0xf] %v1275_v11  ;;  %2004 = vst [vmem:[#allocation2 + $0x1c0] sm:$0xf] %v1284_v12  ;;  %v1298_v20 = vrot.slane %v1296_v8, 7  ;;  %v1313_v21 = vshrl.u32 %v484_v5, 16 }
 0x14c   : > { %v486_v23 = vld [vmem:[%s8566_s5 + $0x170] sm:$0xf]  ;;  %v1306_v24 = vrot.slane %v1304_v15, 7  ;;  %v1316_v25 = vshll.u32 %v484_v5, 16  ;;  %v1322_v26 = vshrl.u32 %v485_v10, 16  ;;  %v1325_v27 = vshll.u32 %v485_v10, 16 }
 0x14d   : > { %v487_v28 = vld [vmem:[%s8566_s5 + $0x174] sm:$0xf]  ;;  %v1293_v29 = vsel %vm8763_vm5, %v1285_v4, %v1292_v18  ;;  %v2007_v31 = vsel %vm8777_vm7, %v1294_v19, %v2006_v13  ;;  %v1301_v32 = vor.u32 %v1299_v9, %v1298_v20  ;;  %v1302_v33 = vrot.slane %v1298_v20, 4  ;;  %v488_v42 = vld [vmem:[%s8566_s5 + $0x178] sm:$0xf] }
 0x14e   : > { %2005 = vst [vmem:[#allocation2 + $0x1c4] sm:$0xf] %v1293_v29  ;;  %2008 = vst [vmem:[#allocation2 + $0x1c8] sm:$0x1] %v2007_v31  ;;  %v1309_v34 = vor.u32 %v1307_v16, %v1306_v24  ;;  %v1311_v35 = vrot.slane %v1306_v24, 4  ;;  %v1315_v36 = vrot.slane %v1313_v21, 7 }
 0x14f   : > { %v1324_v37 = vrot.slane %v1322_v26, 7  ;;  %v2010_v38 = vsel %vm8770_vm6, %v1301_v32, %v2009_v14  ;;  %v1331_v39 = vshrl.u32 %v486_v23, 16  ;;  %v1334_v40 = vshll.u32 %v486_v23, 16  ;;  %v2015_v47 = vld [vmem:[#allocation2 + $0x1dc] sm:$0x1] }
 0x150   : > { %v1339_v41 = vshrl.u32 %v487_v28, 16  ;;  %2011 = vst [vmem:[#allocation2 + $0x1cc] sm:$0xf] %v2010_v38  ;;  %v1310_v43 = vsel %vm8763_vm5, %v1302_v33, %v1309_v34  ;;  %v1318_v44 = vor.u32 %v1316_v25, %v1315_v36  ;;  %v1320_v45 = vrot.slane %v1315_v36, 4  ;;  %v489_v52 = vld [vmem:[%s8566_s5 + $0x17c] sm:$0xf] }
 0x151   : > { %v1327_v46 = vor.u32 %v1325_v27, %v1324_v37  ;;  %2012 = vst [vmem:[#allocation2 + $0x1d0] sm:$0xf] %v1310_v43  ;;  %v1329_v48 = vrot.slane %v1324_v37, 4  ;;  %v1333_v49 = vrot.slane %v1331_v39, 7  ;;  %v1342_v51 = vshll.u32 %v487_v28, 16 }
 0x152   : > { %v1341_v50 = vrot.slane %v1339_v41, 7  ;;  %v1319_v53 = vsel %vm8763_vm5, %v1311_v35, %v1318_v44  ;;  %v2018_v55 = vld [vmem:[#allocation2 + $0x1e0] sm:$0xf]  ;;  %v1348_v56 = vshrl.u32 %v488_v42, 16  ;;  %v1351_v57 = vshll.u32 %v488_v42, 16 }
 0x153   : > { %v1328_v54 = vsel %vm8763_vm5, %v1320_v45, %v1327_v46  ;;  %v490_v58 = vld [vmem:[%s8566_s5 + $0x180] sm:$0xf]  ;;  %2013 = vst [vmem:[#allocation2 + $0x1d4] sm:$0xf] %v1319_v53  ;;  %v2016_v59 = vsel %vm8777_vm7, %v1329_v48, %v2015_v47  ;;  %v1336_v60 = vor.u32 %v1334_v40, %v1333_v49  ;;  %v1337_v61 = vrot.slane %v1333_v49, 4 }
 0x154   : > { %2014 = vst [vmem:[#allocation2 + $0x1d8] sm:$0xf] %v1328_v54  ;;  %v1344_v62 = vor.u32 %v1342_v51, %v1341_v50  ;;  %v491_v63 = vld [vmem:[%s8566_s5 + $0x184] sm:$0xf]  ;;  %2017 = vst [vmem:[#allocation2 + $0x1dc] sm:$0x1] %v2016_v59 }
 0x155   : > { %v1346_v0 = vrot.slane %v1341_v50, 4  ;;  %v1350_v1 = vrot.slane %v1348_v56, 7  ;;  %v1357_v2 = vshrl.u32 %v489_v52, 16  ;;  %v1360_v3 = vshll.u32 %v489_v52, 16  ;;  %v492_v4 = vld [vmem:[%s8566_s5 + $0x188] sm:$0xf] }
 0x156   : > { %v2019_v5 = vsel %vm8770_vm6, %v1336_v60, %v2018_v55  ;;  %v1345_v6 = vsel %vm8763_vm5, %v1337_v61, %v1344_v62  ;;  %v1366_v7 = vshrl.u32 %v490_v58, 16  ;;  %v1369_v8 = vshll.u32 %v490_v58, 16  ;;  %v493_v13 = vld [vmem:[%s8566_s5 + $0x18c] sm:$0xf]  ;;  %v2024_v14 = vld [vmem:[#allocation2 + $0x1f0] sm:$0x1] }
 0x157   : > { %2020 = vst [vmem:[#allocation2 + $0x1e0] sm:$0xf] %v2019_v5  ;;  %2021 = vst [vmem:[#allocation2 + $0x1e4] sm:$0xf] %v1345_v6  ;;  %v1353_v9 = vor.u32 %v1351_v57, %v1350_v1  ;;  %v1355_v10 = vrot.slane %v1350_v1, 4  ;;  %v1359_v11 = vrot.slane %v1357_v2, 7 }
 0x158   : > { %v1374_v12 = vshrl.u32 %v491_v63, 16  ;;  %v1368_v15 = vrot.slane %v1366_v7, 7  ;;  %v1377_v16 = vshll.u32 %v491_v63, 16  ;;  %v1383_v18 = vshrl.u32 %v492_v4, 16  ;;  %v2027_v24 = vld [vmem:[#allocation2 + $0x1f4] sm:$0xf] }
 0x159   : > { %v1386_v19 = vshll.u32 %v492_v4, 16  ;;  %v1354_v20 = vsel %vm8763_vm5, %v1346_v0, %v1353_v9  ;;  %v1362_v21 = vor.u32 %v1360_v3, %v1359_v11  ;;  %v1364_v23 = vrot.slane %v1359_v11, 4  ;;  %v494_v31 = vld [vmem:[%s8566_s5 + $0x190] sm:$0xf]  ;;  %v495_v36 = vld [vmem:[%s8566_s5 + $0x194] sm:$0xf] }
 0x15a   : > { %v1376_v25 = vrot.slane %v1374_v12, 7  ;;  %2022 = vst [vmem:[#allocation2 + $0x1e8] sm:$0xf] %v1354_v20  ;;  %v1371_v26 = vor.u32 %v1369_v8, %v1368_v15  ;;  %v1372_v27 = vrot.slane %v1368_v15, 4  ;;  %v1385_v28 = vrot.slane %v1383_v18, 7 }
 0x15b   : > { %v1392_v29 = vshrl.u32 %v493_v13, 16  ;;  %v1363_v32 = vsel %vm8763_vm5, %v1355_v10, %v1362_v21  ;;  %v2025_v33 = vsel %vm8777_vm7, %v1364_v23, %v2024_v14  ;;  %v2033_v41 = vld [vmem:[#allocation2 + $0x204] sm:$0x1]  ;;  %v496_v42 = vld [vmem:[%s8566_s5 + $0x198] sm:$0xf]  ;;  %v1395_v44 = vshll.u32 %v493_v13, 16 }
 0x15c   : > { %v1379_v34 = vor.u32 %v1377_v16, %v1376_v25  ;;  %v1381_v35 = vrot.slane %v1376_v25, 4  ;;  %2023 = vst [vmem:[#allocation2 + $0x1ec] sm:$0xf] %v1363_v32  ;;  %2026 = vst [vmem:[#allocation2 + $0x1f0] sm:$0x1] %v2025_v33  ;;  %v2028_v37 = vsel %vm8770_vm6, %v1371_v26, %v2027_v24  ;;  %v1388_v38 = vor.u32 %v1386_v19, %v1385_v28 }
 0x15d   : > { %v1390_v39 = vrot.slane %v1385_v28, 4  ;;  %v1394_v40 = vrot.slane %v1392_v29, 7  ;;  %2029 = vst [vmem:[#allocation2 + $0x1f4] sm:$0xf] %v2028_v37  ;;  %v1401_v45 = vshrl.u32 %v494_v31, 16  ;;  %v1404_v46 = vshll.u32 %v494_v31, 16 }
 0x15e   : > { %v1380_v43 = vsel %vm8763_vm5, %v1372_v27, %v1379_v34  ;;  %v497_v47 = vld [vmem:[%s8566_s5 + $0x19c] sm:$0xf]  ;;  %v1389_v48 = vsel %vm8763_vm5, %v1381_v35, %v1388_v38  ;;  %v1409_v50 = vshrl.u32 %v495_v36, 16  ;;  %v1412_v51 = vshll.u32 %v495_v36, 16  ;;  %v498_v56 = vld [vmem:[%s8566_s5 + $0x1a0] sm:$0xf] }
 0x15f   : > { %2030 = vst [vmem:[#allocation2 + $0x1f8] sm:$0xf] %v1380_v43  ;;  %v1399_v49 = vrot.slane %v1394_v40, 4  ;;  %2031 = vst [vmem:[#allocation2 + $0x1fc] sm:$0xf] %v1389_v48  ;;  %v1397_v52 = vor.u32 %v1395_v44, %v1394_v40  ;;  %v1403_v53 = vrot.slane %v1401_v45, 7 }
 0x160   : > { %v1418_v54 = vshrl.u32 %v496_v42, 16  ;;  %v1421_v55 = vshll.u32 %v496_v42, 16  ;;  %v2036_v58 = vld [vmem:[#allocation2 + $0x208] sm:$0xf]  ;;  %v1411_v59 = vrot.slane %v1409_v50, 7  ;;  %v1427_v60 = vshrl.u32 %v497_v47, 16 }
 0x161   : > { %v2034_v57 = vsel %vm8777_vm7, %v1399_v49, %v2033_v41  ;;  %v1430_v61 = vshll.u32 %v497_v47, 16  ;;  %v1398_v62 = vsel %vm8763_vm5, %v1390_v39, %v1397_v52  ;;  %v1406_v63 = vor.u32 %v1404_v46, %v1403_v53  ;;  %v499_v2 = vld [vmem:[%s8566_s5 + $0x1a4] sm:$0xf]  ;;  %v500_v7 = vld [vmem:[%s8566_s5 + $0x1a8] sm:$0xf] }
 0x162   : > { %2035 = vst [vmem:[#allocation2 + $0x204] sm:$0x1] %v2034_v57  ;;  %v1407_v0 = vrot.slane %v1403_v53, 4  ;;  %v1420_v1 = vrot.slane %v1418_v54, 7  ;;  %2032 = vst [vmem:[#allocation2 + $0x200] sm:$0xf] %v1398_v62  ;;  %v1414_v3 = vor.u32 %v1412_v51, %v1411_v59 }
 0x163   : > { %v1416_v4 = vrot.slane %v1411_v59, 4  ;;  %v1429_v5 = vrot.slane %v1427_v60, 7  ;;  %v1436_v6 = vshrl.u32 %v498_v56, 16  ;;  %v2037_v8 = vsel %vm8770_vm6, %v1406_v63, %v2036_v58  ;;  %v2042_v11 = vld [vmem:[#allocation2 + $0x218] sm:$0x1] }
 0x164   : > { %v1423_v9 = vor.u32 %v1421_v55, %v1420_v1  ;;  %v1425_v10 = vrot.slane %v1420_v1, 4  ;;  %v1439_v12 = vshll.u32 %v498_v56, 16  ;;  %2038 = vst [vmem:[#allocation2 + $0x208] sm:$0xf] %v2037_v8  ;;  %v1415_v13 = vsel %vm8763_vm5, %v1407_v0, %v1414_v3  ;;  %v2045_v18 = vld [vmem:[#allocation2 + $0x21c] sm:$0xf] }
 0x165   : > { %v1432_v14 = vor.u32 %v1430_v61, %v1429_v5  ;;  %v1434_v15 = vrot.slane %v1429_v5, 4  ;;  %v1438_v16 = vrot.slane %v1436_v6, 7  ;;  %v501_v19 = vld [vmem:[%s8566_s5 + $0x1ac] sm:$0xf]  ;;  %2039 = vst [vmem:[#allocation2 + $0x20c] sm:$0xf] %v1415_v13 }
 0x166   : > { %v1424_v20 = vsel %vm8763_vm5, %v1416_v4, %v1423_v9  ;;  %v1444_v21 = vshrl.u32 %v499_v2, 16  ;;  %v1447_v23 = vshll.u32 %v499_v2, 16  ;;  %v1453_v24 = vshrl.u32 %v500_v7, 16  ;;  %v502_v25 = vld [vmem:[%s8566_s5 + $0x1b0] sm:$0xf] }
 0x167   : > { %2040 = vst [vmem:[#allocation2 + $0x210] sm:$0xf] %v1424_v20  ;;  %v1433_v26 = vsel %vm8763_vm5, %v1425_v10, %v1432_v14  ;;  %v2043_v27 = vsel %vm8777_vm7, %v1434_v15, %v2042_v11  ;;  %v1441_v28 = vor.u32 %v1439_v12, %v1438_v16  ;;  %v1442_v29 = vrot.slane %v1438_v16, 4  ;;  %v503_v35 = vld [vmem:[%s8566_s5 + $0x1b4] sm:$0xf] }
 0x168   : > { %2041 = vst [vmem:[#allocation2 + $0x214] sm:$0xf] %v1433_v26  ;;  %2044 = vst [vmem:[#allocation2 + $0x218] sm:$0x1] %v2043_v27  ;;  %v1446_v31 = vrot.slane %v1444_v21, 7  ;;  %v1455_v32 = vrot.slane %v1453_v24, 7 }
 0x169   : > { %v1456_v33 = vshll.u32 %v500_v7, 16  ;;  %v1462_v34 = vshrl.u32 %v501_v19, 16  ;;  %v2046_v36 = vsel %vm8770_vm6, %v1441_v28, %v2045_v18  ;;  %v1465_v37 = vshll.u32 %v501_v19, 16  ;;  %v504_v40 = vld [vmem:[%s8566_s5 + $0x1b8] sm:$0xf] }
 0x16a   : > { %v1471_v38 = vshrl.u32 %v502_v25, 16  ;;  %v1474_v39 = vshll.u32 %v502_v25, 16  ;;  %2047 = vst [vmem:[#allocation2 + $0x21c] sm:$0xf] %v2046_v36  ;;  %v1449_v41 = vor.u32 %v1447_v23, %v1446_v31  ;;  %v1451_v42 = vrot.slane %v1446_v31, 4 }
 0x16b   : > { %v1458_v43 = vor.u32 %v1456_v33, %v1455_v32  ;;  %v1460_v44 = vrot.slane %v1455_v32, 4  ;;  %v2051_v45 = vld [vmem:[#allocation2 + $0x22c] sm:$0x1]  ;;  %v1464_v46 = vrot.slane %v1462_v34, 7  ;;  %v1479_v48 = vshrl.u32 %v503_v35, 16 }
 0x16c   : > { %v1473_v47 = vrot.slane %v1471_v38, 7  ;;  %v1482_v49 = vshll.u32 %v503_v35, 16  ;;  %v505_v50 = vld [vmem:[%s8566_s5 + $0x1bc] sm:$0xf]  ;;  %v1450_v51 = vsel %vm8763_vm5, %v1442_v29, %v1449_v41  ;;  %v2054_v53 = vld [vmem:[#allocation2 + $0x230] sm:$0xf] }
 0x16d   : > { %v1459_v52 = vsel %vm8763_vm5, %v1451_v42, %v1458_v43  ;;  %v1488_v54 = vshrl.u32 %v504_v40, 16  ;;  %v1491_v55 = vshll.u32 %v504_v40, 16  ;;  %v506_v56 = vld [vmem:[%s8566_s5 + $0x1c0] sm:$0xf]  ;;  %2048 = vst [vmem:[#allocation2 + $0x220] sm:$0xf] %v1450_v51  ;;  %v1467_v57 = vor.u32 %v1465_v37, %v1464_v46 }
 0x16e   : > { %2049 = vst [vmem:[#allocation2 + $0x224] sm:$0xf] %v1459_v52  ;;  %v1469_v58 = vrot.slane %v1464_v46, 4  ;;  %v1476_v59 = vor.u32 %v1474_v39, %v1473_v47  ;;  %v1477_v60 = vrot.slane %v1473_v47, 4  ;;  %v1481_v61 = vrot.slane %v1479_v48, 7 }
 0x16f   : > { %v1490_v62 = vrot.slane %v1488_v54, 7  ;;  %v1497_v63 = vshrl.u32 %v505_v50, 16  ;;  %v1500_v0 = vshll.u32 %v505_v50, 16  ;;  %v507_v1 = vld [vmem:[%s8566_s5 + $0x1c4] sm:$0xf]  ;;  %v1468_v2 = vsel %vm8763_vm5, %v1460_v44, %v1467_v57 }
 0x170   : > { %v2052_v3 = vsel %vm8777_vm7, %v1469_v58, %v2051_v45  ;;  %v2055_v4 = vsel %vm8770_vm6, %v1476_v59, %v2054_v53  ;;  %v1506_v5 = vshrl.u32 %v506_v56, 16  ;;  %v508_v6 = vld [vmem:[%s8566_s5 + $0x1c8] sm:$0xf]  ;;  %2050 = vst [vmem:[#allocation2 + $0x228] sm:$0xf] %v1468_v2  ;;  %v1484_v7 = vor.u32 %v1482_v49, %v1481_v61 }
 0x171   : > { %2053 = vst [vmem:[#allocation2 + $0x22c] sm:$0x1] %v2052_v3  ;;  %2056 = vst [vmem:[#allocation2 + $0x230] sm:$0xf] %v2055_v4  ;;  %v1486_v8 = vrot.slane %v1481_v61, 4  ;;  %v1493_v9 = vor.u32 %v1491_v55, %v1490_v62  ;;  %v1495_v10 = vrot.slane %v1490_v62, 4 }
 0x172   : > { %v1499_v11 = vrot.slane %v1497_v63, 7  ;;  %v1508_v12 = vrot.slane %v1506_v5, 7  ;;  %v1509_v13 = vshll.u32 %v506_v56, 16  ;;  %v1514_v14 = vshrl.u32 %v507_v1, 16  ;;  %v509_v15 = vld [vmem:[%s8566_s5 + $0x1cc] sm:$0xf] }
 0x173   : > { %v1485_v16 = vsel %vm8763_vm5, %v1477_v60, %v1484_v7  ;;  %v1494_v18 = vsel %vm8763_vm5, %v1486_v8, %v1493_v9  ;;  %v2060_v19 = vld [vmem:[#allocation2 + $0x240] sm:$0x1]  ;;  %v2063_v20 = vld [vmem:[#allocation2 + $0x244] sm:$0xf]  ;;  %v1517_v21 = vshll.u32 %v507_v1, 16  ;;  %v1523_v23 = vshrl.u32 %v508_v6, 16 }
 0x174   : > { %2057 = vst [vmem:[#allocation2 + $0x234] sm:$0xf] %v1485_v16  ;;  %2058 = vst [vmem:[#allocation2 + $0x238] sm:$0xf] %v1494_v18  ;;  %v1502_v24 = vor.u32 %v1500_v0, %v1499_v11  ;;  %v1504_v25 = vrot.slane %v1499_v11, 4  ;;  %v1511_v26 = vor.u32 %v1509_v13, %v1508_v12  ;;  %v1512_v27 = vrot.slane %v1508_v12, 4 }
 0x175   : > { %v510_v28 = vld [vmem:[%s8566_s5 + $0x1d0] sm:$0xf]  ;;  %v1516_v29 = vrot.slane %v1514_v14, 7  ;;  %v1525_v31 = vrot.slane %v1523_v23, 7  ;;  %v1526_v32 = vshll.u32 %v508_v6, 16  ;;  %v1532_v33 = vshrl.u32 %v509_v15, 16 }
 0x176   : > { %v511_v34 = vld [vmem:[%s8566_s5 + $0x1d4] sm:$0xf]  ;;  %v1503_v35 = vsel %vm8763_vm5, %v1495_v10, %v1502_v24  ;;  %v2061_v36 = vsel %vm8777_vm7, %v1504_v25, %v2060_v19  ;;  %v2064_v37 = vsel %vm8770_vm6, %v1511_v26, %v2063_v20  ;;  %v1535_v38 = vshll.u32 %v509_v15, 16  ;;  %v512_v39 = vld [vmem:[%s8566_s5 + $0x1d8] sm:$0xf] }
 0x177   : > { %2059 = vst [vmem:[#allocation2 + $0x23c] sm:$0xf] %v1503_v35  ;;  %2062 = vst [vmem:[#allocation2 + $0x240] sm:$0x1] %v2061_v36  ;;  %v1519_v40 = vor.u32 %v1517_v21, %v1516_v29  ;;  %v1521_v41 = vrot.slane %v1516_v29, 4  ;;  %v1528_v42 = vor.u32 %v1526_v32, %v1525_v31  ;;  %v1530_v43 = vrot.slane %v1525_v31, 4 }
 0x178   : > { %2065 = vst [vmem:[#allocation2 + $0x244] sm:$0xf] %v2064_v37  ;;  %v1534_v44 = vrot.slane %v1532_v33, 7  ;;  %v1541_v45 = vshrl.u32 %v510_v28, 16  ;;  %v1544_v46 = vshll.u32 %v510_v28, 16  ;;  %v1549_v47 = vshrl.u32 %v511_v34, 16 }
 0x179   : > { %v513_v48 = vld [vmem:[%s8566_s5 + $0x1dc] sm:$0xf]  ;;  %v1520_v49 = vsel %vm8763_vm5, %v1512_v27, %v1519_v40  ;;  %v1529_v50 = vsel %vm8763_vm5, %v1521_v41, %v1528_v42  ;;  %v2069_v51 = vld [vmem:[#allocation2 + $0x254] sm:$0x1]  ;;  %v1552_v52 = vshll.u32 %v511_v34, 16  ;;  %v1558_v53 = vshrl.u32 %v512_v39, 16 }
 0x17a   : > { %2066 = vst [vmem:[#allocation2 + $0x248] sm:$0xf] %v1520_v49  ;;  %2067 = vst [vmem:[#allocation2 + $0x24c] sm:$0xf] %v1529_v50  ;;  %v1537_v54 = vor.u32 %v1535_v38, %v1534_v44  ;;  %v1539_v55 = vrot.slane %v1534_v44, 4  ;;  %v1543_v56 = vrot.slane %v1541_v45, 7 }
 0x17b   : > { %v2072_v57 = vld [vmem:[#allocation2 + $0x258] sm:$0xf]  ;;  %v1551_v58 = vrot.slane %v1549_v47, 7  ;;  %v1560_v59 = vrot.slane %v1558_v53, 7  ;;  %v1561_v60 = vshll.u32 %v512_v39, 16  ;;  %v1567_v61 = vshrl.u32 %v513_v48, 16 }
 0x17c   : > { %v1570_v62 = vshll.u32 %v513_v48, 16  ;;  %v514_v63 = vld [vmem:[%s8566_s5 + $0x1e0] sm:$0xf]  ;;  %v1538_v0 = vsel %vm8763_vm5, %v1530_v43, %v1537_v54  ;;  %v2070_v1 = vsel %vm8777_vm7, %v1539_v55, %v2069_v51  ;;  %v1546_v2 = vor.u32 %v1544_v46, %v1543_v56  ;;  %v515_v4 = vld [vmem:[%s8566_s5 + $0x1e4] sm:$0xf] }
 0x17d   : > { %v1547_v3 = vrot.slane %v1543_v56, 4  ;;  %2068 = vst [vmem:[#allocation2 + $0x250] sm:$0xf] %v1538_v0  ;;  %2071 = vst [vmem:[#allocation2 + $0x254] sm:$0x1] %v2070_v1  ;;  %v1554_v5 = vor.u32 %v1552_v52, %v1551_v58  ;;  %v1556_v6 = vrot.slane %v1551_v58, 4  ;;  %v1563_v7 = vor.u32 %v1561_v60, %v1560_v59 }
 0x17e   : > { %v1565_v8 = vrot.slane %v1560_v59, 4  ;;  %v516_v9 = vld [vmem:[%s8566_s5 + $0x1e8] sm:$0xf]  ;;  %v2073_v10 = vsel %vm8770_vm6, %v1546_v2, %v2072_v57  ;;  %v1569_v11 = vrot.slane %v1567_v61, 7  ;;  %v1576_v12 = vshrl.u32 %v514_v63, 16 }
 0x17f   : > { %v1579_v13 = vshll.u32 %v514_v63, 16  ;;  %v517_v14 = vld [vmem:[%s8566_s5 + $0x1ec] sm:$0xf]  ;;  %2074 = vst [vmem:[#allocation2 + $0x258] sm:$0xf] %v2073_v10  ;;  %v1555_v15 = vsel %vm8763_vm5, %v1547_v3, %v1554_v5  ;;  %v1564_v16 = vsel %vm8763_vm5, %v1556_v6, %v1563_v7  ;;  %v1584_v20 = vshrl.u32 %v515_v4, 16 }
 0x180   : > { %v2078_v18 = vld [vmem:[#allocation2 + $0x268] sm:$0x1]  ;;  %v2081_v19 = vld [vmem:[#allocation2 + $0x26c] sm:$0xf]  ;;  %v1587_v21 = vshll.u32 %v515_v4, 16  ;;  %v1572_v23 = vor.u32 %v1570_v62, %v1569_v11  ;;  %v1574_v24 = vrot.slane %v1569_v11, 4 }
 0x181   : > { %2075 = vst [vmem:[#allocation2 + $0x25c] sm:$0xf] %v1555_v15  ;;  %2076 = vst [vmem:[#allocation2 + $0x260] sm:$0xf] %v1564_v16  ;;  %v1578_v25 = vrot.slane %v1576_v12, 7  ;;  %v1593_v26 = vshrl.u32 %v516_v9, 16 }
 0x182   : > { %v518_v27 = vld [vmem:[%s8566_s5 + $0x1f0] sm:$0xf]  ;;  %v1586_v28 = vrot.slane %v1584_v20, 7  ;;  %v1596_v29 = vshll.u32 %v516_v9, 16  ;;  %v1602_v31 = vshrl.u32 %v517_v14, 16  ;;  %v1605_v32 = vshll.u32 %v517_v14, 16 }
 0x183   : > { %v519_v33 = vld [vmem:[%s8566_s5 + $0x1f4] sm:$0xf]  ;;  %v1573_v34 = vsel %vm8763_vm5, %v1565_v8, %v1572_v23  ;;  %v2079_v35 = vsel %vm8777_vm7, %v1574_v24, %v2078_v18  ;;  %v1581_v36 = vor.u32 %v1579_v13, %v1578_v25  ;;  %v1582_v37 = vrot.slane %v1578_v25, 4  ;;  %v520_v46 = vld [vmem:[%s8566_s5 + $0x1f8] sm:$0xf] }
 0x184   : > { %2077 = vst [vmem:[#allocation2 + $0x264] sm:$0xf] %v1573_v34  ;;  %2080 = vst [vmem:[#allocation2 + $0x268] sm:$0x1] %v2079_v35  ;;  %v1589_v38 = vor.u32 %v1587_v21, %v1586_v28  ;;  %v1591_v39 = vrot.slane %v1586_v28, 4  ;;  %v1595_v40 = vrot.slane %v1593_v26, 7 }
 0x185   : > { %v1604_v41 = vrot.slane %v1602_v31, 7  ;;  %v2082_v42 = vsel %vm8770_vm6, %v1581_v36, %v2081_v19  ;;  %v1611_v43 = vshrl.u32 %v518_v27, 16  ;;  %v1614_v44 = vshll.u32 %v518_v27, 16  ;;  %v2087_v51 = vld [vmem:[#allocation2 + $0x27c] sm:$0x1] }
 0x186   : > { %v1619_v45 = vshrl.u32 %v519_v33, 16  ;;  %2083 = vst [vmem:[#allocation2 + $0x26c] sm:$0xf] %v2082_v42  ;;  %v1590_v47 = vsel %vm8763_vm5, %v1582_v37, %v1589_v38  ;;  %v1598_v48 = vor.u32 %v1596_v29, %v1595_v40  ;;  %v1600_v49 = vrot.slane %v1595_v40, 4  ;;  %v521_v56 = vld [vmem:[%s8566_s5 + $0x1fc] sm:$0xf] }
 0x187   : > { %v1607_v50 = vor.u32 %v1605_v32, %v1604_v41  ;;  %2084 = vst [vmem:[#allocation2 + $0x270] sm:$0xf] %v1590_v47  ;;  %v1609_v52 = vrot.slane %v1604_v41, 4  ;;  %v1613_v53 = vrot.slane %v1611_v43, 7  ;;  %v1622_v55 = vshll.u32 %v519_v33, 16 }
 0x188   : > { %v1621_v54 = vrot.slane %v1619_v45, 7  ;;  %v1599_v57 = vsel %vm8763_vm5, %v1591_v39, %v1598_v48  ;;  %v2090_v59 = vld [vmem:[#allocation2 + $0x280] sm:$0xf]  ;;  %v1628_v60 = vshrl.u32 %v520_v46, 16  ;;  %v1631_v61 = vshll.u32 %v520_v46, 16 }
 0x189   : > { %v1608_v58 = vsel %vm8763_vm5, %v1600_v49, %v1607_v50  ;;  %2085 = vst [vmem:[#allocation2 + $0x274] sm:$0xf] %v1599_v57  ;;  %v2088_v62 = vsel %vm8777_vm7, %v1609_v52, %v2087_v51  ;;  %v1616_v63 = vor.u32 %v1614_v44, %v1613_v53  ;;  %v1617_v0 = vrot.slane %v1613_v53, 4  ;;  %v2096_v11 = vld [vmem:[#allocation2 + $0x290] sm:$0x1] }
 0x18a   : > { %2086 = vst [vmem:[#allocation2 + $0x278] sm:$0xf] %v1608_v58  ;;  %v1624_v1 = vor.u32 %v1622_v55, %v1621_v54  ;;  %2089 = vst [vmem:[#allocation2 + $0x27c] sm:$0x1] %v2088_v62  ;;  %v1626_v2 = vrot.slane %v1621_v54, 4  ;;  %v1630_v3 = vrot.slane %v1628_v60, 7 }
 0x18b   : > { %v1637_v4 = vshrl.u32 %v521_v56, 16  ;;  %v1640_v5 = vshll.u32 %v521_v56, 16  ;;  %v2091_v6 = vsel %vm8770_vm6, %v1616_v63, %v2090_v59 }
 0x18c   : > { %v1625_v7 = vsel %vm8763_vm5, %v1617_v0, %v1624_v1  ;;  %2092 = vst [vmem:[#allocation2 + $0x280] sm:$0xf] %v2091_v6  ;;  %v1633_v8 = vor.u32 %v1631_v61, %v1630_v3  ;;  %v1635_v9 = vrot.slane %v1630_v3, 4 }
 0x18d   : > { %2093 = vst [vmem:[#allocation2 + $0x284] sm:$0xf] %v1625_v7  ;;  %v1639_v10 = vrot.slane %v1637_v4, 7 }
 0x18e   : > { %v1634_v12 = vsel %vm8763_vm5, %v1626_v2, %v1633_v8 }
 0x18f   : > { %v1642_v13 = vor.u32 %v1640_v5, %v1639_v10  ;;  %v1644_v14 = vrot.slane %v1639_v10, 4  ;;  %2094 = vst [vmem:[#allocation2 + $0x288] sm:$0xf] %v1634_v12 }
 0x191   : > { %v1643_v15 = vsel %vm8763_vm5, %v1635_v9, %v1642_v13  ;;  %v2097_v22 = vsel %vm8777_vm7, %v1644_v14, %v2096_v11 }
 0x192   : > { %2095 = vst [vmem:[#allocation2 + $0x28c] sm:$0xf] %v1643_v15  ;;  %2098 = vst [vmem:[#allocation2 + $0x290] sm:$0x1] %v2097_v22 }
 0x193 PF: > { %v8043_v16 = vld [vmem:[#allocation6 + $0x40] sm:$0xff]   ;;  %v8045_v19 = vld [vmem:[#allocation6 + $0x48] sm:$0xff]   ;;  %v8047_v21 = vld [vmem:[#allocation6 + $0x50] sm:$0xff]   ;;  %s6938_s25 = smul.u32 160, %s8328_s18  ;;  %vm2179_vm8 = vsmask.f32 3328 }
 0x194   : > { %v8044_v18 = vld [vmem:[#allocation6 + $0x100] sm:$0xff]   ;;  %7220 = vmatprep.subr.bf16.mxu1 %v8043_v16  ;;  %v8046_v20 = vld [vmem:[#allocation6 + $0x108] sm:$0xff]   ;;  %v8048_v17 = vld [vmem:[#allocation6 + $0x110] sm:$0xff]   ;;  %vm2180_vm9 = vsmask.f32 7440  ;;  %vm3145_vm11 = vcmask 1042432  }
 0x195   : > { %7412 = vmatprep.subr.bf16.mxu0 %v8044_v18  ;;  %7221 = vmatpush3.bf16.msra.mxu1 %v8043_v16  ;;  %v8049_v30 = vld [vmem:[#allocation6 + $0x58] sm:$0xff]   ;;  %v8051_v24 = vld [vmem:[#allocation6 + $0x60] sm:$0xff]   ;;  %v8053_v26 = vld [vmem:[#allocation6 + $0x68] sm:$0xff]   ;;  %s9223_s27 = scalar_lea.vmem [#allocation2], %s6938_s25  ;;  %vm3146_vm12 = vcmask 1046532   ;;  %vm5735_vm14 = vcmask 1041408  }
 0x196   : > { %7413 = vmatpush3.bf16.msra.mxu0 %v8044_v18  ;;  %7222 = vmatprep.subr.bf16.mxu1 %v8045_v19  ;;  %v8050_v23 = vld [vmem:[#allocation6 + $0x118] sm:$0xff]   ;;  %v8052_v25 = vld [vmem:[#allocation6 + $0x120] sm:$0xff]   ;;  %v8054_v27 = vld [vmem:[#allocation6 + $0x128] sm:$0xff]   ;;  %vm6504_vm15 = vcmask 1041409   ;;  %vm6506_vm0 = vcmask 1042434   ;;  %vm6508_vm1 = vcmask 1043459  }
 0x197   : > { %7414 = vmatprep.subr.bf16.mxu0 %v8046_v20  ;;  %v8055_v43 = vld [vmem:[#allocation6 + $0x70] sm:$0xff]   ;;  %v8057_v54 = vld [vmem:[#allocation6 + $0x78] sm:$0xff]   ;;  %vm9247_vm10 = vmor %vm2179_vm8, %vm2180_vm9  ;;  %vm6510_vm2 = vcmask 1044484   ;;  %vm6512_vm3 = vcmask 1045509   ;;  %vm6514_vm4 = vcmask 1046534   ;;  %vm6516_vm5 = vcmask 1047559  }
 0x198   : > { %v8056_v48 = vld [vmem:[#allocation6 + $0x130] sm:$0xff]   ;;  %v8058_v60 = vld [vmem:[#allocation6 + $0x138] sm:$0xff]   ;;  %vm9385_vm13 = vmor %vm3145_vm11, %vm3146_vm12  ;;  %s7003_s8 = sshll.u32 %s8328_s18, 3  ;;  %s6933_s9 = sshll.u32 %s8332_s19, 5 }
 0x199   : > { %7223 = vmatpush3.bf16.msra.mxu1 %v8045_v19  ;;  %v9226_v28 = vld [vmem:[%s9223_s27] sm:$0xf]  ;;  %v9229_v29 = vld [vmem:[%s9223_s27 + $0x4] sm:$0xf]  ;;  %v2105_v31 = vld [vmem:[%s9223_s27 + $0x8] sm:$0xf]  ;;  %s6605_s20 = sadd.s32 %s7003_s8, %s6933_s9 }
 0x19a   : > { %7415 = vmatpush3.bf16.msra.mxu0 %v8046_v20  ;;  %7224 = vmatprep.subr.bf16.mxu1 %v8047_v21  ;;  %v2183_v32 = vshrl.u32 %v9226_v28, 16  ;;  %v2186_v33 = vshll.u32 %v9226_v28, 16  ;;  %v2192_v34 = vshll.u32 %v9229_v29, 16  ;;  %v2196_v35 = vshrl.u32 %v9229_v29, 16  ;;  %v2107_v38 = vld [vmem:[%s9223_s27 + $0x14] sm:$0xf] }
 0x19b   : > { %7416 = vmatprep.subr.bf16.mxu0 %v8048_v17  ;;  %v2202_v36 = vshll.u32 %v2105_v31, 16  ;;  %v2206_v37 = vshrl.u32 %v2105_v31, 16  ;;  %v9238_v41 = vld [vmem:[%s9223_s27 + $0x18] sm:$0xf]  ;;  %v9241_v42 = vld [vmem:[%s9223_s27 + $0x1c] sm:$0xf] }
 0x19c   : > { %v2185_v39 = vrot.slane %v2183_v32, 4  ;;  %v2188_v40 = vrot.slane %v2186_v33, 5  ;;  %v2194_v44 = vrot.slane %v2192_v34, 5  ;;  %v2198_v45 = vrot.slane %v2196_v35, 4  ;;  %v2106_v53 = vld [vmem:[%s9223_s27 + $0xc] sm:$0xf] }
 0x19d   : > { %7225 = vmatpush3.bf16.msra.mxu1 %v8047_v21  ;;  %v2204_v46 = vrot.slane %v2202_v36, 5  ;;  %v2208_v47 = vrot.slane %v2206_v37, 4  ;;  %v2227_v50 = vshrl.u32 %v2107_v38, 16  ;;  %v2230_v51 = vshll.u32 %v2107_v38, 16  ;;  %v2143_v1 = vld [vmem:[%s9223_s27 + $0x10] sm:$0x1] }
 0x19e   : > { %7417 = vmatpush3.bf16.msra.mxu0 %v8048_v17  ;;  %7226 = vmatprep.subr.bf16.mxu1 %v8049_v30  ;;  %v2189_v49 = vor.u32 %v2188_v40, %v2185_v39  ;;  %v2236_v52 = vshll.u32 %v9238_v41, 16  ;;  %v2199_v56 = vor.u32 %v2198_v45, %v2194_v44  ;;  %v2240_v58 = vshrl.u32 %v9238_v41, 16  ;;  %v9257_v6 = vld [vmem:[%s9223_s27 + $0x20] sm:$0xf]  ;;  %v9265_v15 = vld [vmem:[%s9223_s27 + $0x24] sm:$0x1] }
 0x19f   : > { %7418 = vmatprep.subr.bf16.mxu0 %v8050_v23  ;;  %v2209_v57 = vor.u32 %v2208_v47, %v2204_v46  ;;  %v2246_v59 = vshll.u32 %v9241_v42, 16  ;;  %v2229_v62 = vrot.slane %v2227_v50, 4  ;;  %v2232_v63 = vrot.slane %v2230_v51, 5  ;;  %v9274_v31 = vld [vmem:[#allocation6 + $0x140] sm:$0xff]   ;;  %v9280_v33 = vld [vmem:[%s9223_s27 + $0x30] sm:$0xf] }
 0x1a0   : > { %v2190_v61 = vrot.slane %v2189_v49, 4  ;;  %v2238_v0 = vrot.slane %v2236_v52, 5  ;;  %v2200_v2 = vrot.slane %v2199_v56, 4  ;;  %v2242_v4 = vrot.slane %v2240_v58, 4  ;;  %v9277_v32 = vld [vmem:[%s9223_s27 + $0x2c] sm:$0xf] }
 0x1a1   : > { %7227 = vmatpush3.bf16.msra.mxu1 %v8049_v30  ;;  %v9254_v3 = vrot.slane %v2209_v57, 4  ;;  %v2248_v5 = vrot.slane %v2246_v59, 5  ;;  %v2233_v8 = vor.u32 %v2232_v63, %v2229_v62  ;;  %v2250_v9 = vshrl.u32 %v9241_v42, 16  ;;  %v8059_v30 = vld [vmem:[#allocation6] sm:$0xff]   ;;  %v9291_v49 = vld [vmem:[%s9223_s27 + $0x38] sm:$0x1] }
 0x1a2   : > { %7419 = vmatpush3.bf16.msra.mxu0 %v8050_v23  ;;  %7228 = vmatprep.subr.bf16.mxu1 %v8051_v24  ;;  %v2195_v7 = vsel %vm9247_vm10, %v2190_v61, %v2194_v44  ;;  %v2212_v10 = vshll.u32 %v2106_v53, 16  ;;  %v2205_v11 = vsel %vm9247_vm10, %v2200_v2, %v2204_v46  ;;  %v2243_v12 = vor.u32 %v2242_v4, %v2238_v0  ;;  %v2111_v23 = vld [vmem:[%s9223_s27 + $0x28] sm:$0xf]  ;;  %v9288_v44 = vld [vmem:[%s9223_s27 + $0x34] sm:$0xf]  ;;  %s6934_s18 = sshll.u32 %s6605_s20, 6 }
 0x1a3   : > { %7420 = vmatprep.subr.bf16.mxu0 %v8052_v25  ;;  %v2216_v13 = vshrl.u32 %v2106_v53, 16  ;;  %v2222_v14 = vshll.u32 %v2143_v1, 16  ;;  %v6723_v22 = vcombine.low %v2195_v7, %v2205_v11  ;;  %v2234_v16 = vrot.slane %v2233_v8, 4  ;;  %v8062_v63 = vld [vmem:[#allocation6 + $0x8] sm:$0xff]   ;;  %v2115_v4 = vld [vmem:[%s9223_s27 + $0x3c] sm:$0xf]  ;;  %s10371_s10 = scalar_lea.hbm %s10442_s3, %s6934_s18 }
 0x1a4   : > { %v2252_v18 = vrot.slane %v2250_v9, 4  ;;  %v2214_v19 = vrot.slane %v2212_v10, 5  ;;  %v2244_v20 = vrot.slane %v2243_v12, 4  ;;  %v2260_v36 = vshrl.u32 %v9257_v6, 16  ;;  %v9307_v10 = vld [vmem:[%s9223_s27 + $0x40] sm:$0xf] }
 0x1a5   : > { %7229 = vmatpush3.bf16.msra.mxu1 %v8051_v24  ;;  %v2218_v21 = vrot.slane %v2216_v13, 4  ;;  %v2224_v17 = vrot.slane %v2222_v14, 5  ;;  %7236 = vmatprep.mubr.bf16.mxu1 %v6723_v22  ;;  %v2239_v24 = vsel %vm9247_vm10, %v2234_v16, %v2238_v0  ;;  %v2266_v37 = vshll.u32 %v9265_v15, 16  ;;  %v8061_v12 = vld [vmem:[#allocation6 + $0x148] sm:$0xff]   ;;  %s6608_s19 = sshll.u32 %s8579_s11, 4  ;;  %s10378_s6 = scalar_lea.sflag [#allocation5], %s215_s29  ;;  %s10373_s19 = int_to_ptr.vmem [resolvable:$true] %s6608_s19 }
 0x1a6   : > { %7421 = vmatpush3.bf16.msra.mxu0 %v8052_v25  ;;  %7230 = vmatprep.subr.bf16.mxu1 %v8053_v26  ;;  %v2253_v25 = vor.u32 %v2252_v18, %v2248_v5  ;;  %v2249_v34 = vsel %vm9247_vm10, %v2244_v20, %v2248_v5  ;;  %v2262_v46 = vrot.slane %v2260_v36, 4  ;;  %v2274_v51 = vshll.u32 %v2111_v23, 16  ;;  %s8218_s5 = scalar_lea.vmem %s10373_s19, 512  ;;  %p10547_p9 = scmp.ne.s32.totalorder %s10481_s28, 0 }
 0x1a7   : > { %7422 = vmatprep.subr.bf16.mxu0 %v8054_v27  ;;  %v2219_v35 = vor.u32 %v2218_v21, %v2214_v19  ;;  %v6725_v38 = vcombine.low %v2239_v24, %v2249_v34  ;;  %v2268_v47 = vrot.slane %v2266_v37, 5  ;;  %v2280_v52 = vshll.u32 %v9277_v32, 16  ;;  %v8065_v21 = vld [vmem:[#allocation6 + $0x10] sm:$0xff]   ;;  %v9312_v24 = vld [vmem:[%s9223_s27 + $0x44] sm:$0xf]  ;;  %p8219_p7 = scmp.ne.s32.totalorder %s10373_s19, %s8218_s5  ;;  %s8352_s30 = smov [#allocation8]  }
 0x1a8   : > { %v2254_v39 = vrot.slane %v2253_v25, 4  ;;  %v2284_v53 = vshrl.u32 %v9277_v32, 16  ;;  %v2290_v58 = vshll.u32 %v9280_v33, 16  ;;  %v2294_v2 = vshrl.u32 %v9280_v33, 16  ;;  %v9320_v37 = vld [vmem:[%s9223_s27 + $0x48] sm:$0xf] }
 0x1a9   : > { %7231 = vmatpush3.bf16.msra.mxu1 %v8053_v26  ;;  %v2215_v26 = vsel %vm9247_vm10, %v9254_v3, %v2214_v19  ;;  %v2220_v45 = vrot.slane %v2219_v35, 4  ;;  %7428 = vmatprep.mubr.bf16.mxu0 %v6725_v38  ;;  %v2282_v61 = vrot.slane %v2280_v52, 5  ;;  %v2300_v3 = vshll.u32 %v9288_v44, 16  ;;  %v8063_v35 = vld [vmem:[#allocation6 + $0x150] sm:$0xff]   ;;  %p8220_p11 = pnand %p8219_p7, %p10547_p9  ;;  %s8222_s25 = sshll.u32 %s8352_s30, 4  ;;  %s8223_s25 = int_to_ptr.vmem [resolvable:$false] %s8222_s25 }
 0x1aa   : > { %7423 = vmatpush3.bf16.msra.mxu0 %v8054_v27  ;;  %7232 = vmatprep.subr.bf16.mxu1 %v8055_v43  ;;  %v2256_v27 = vshll.u32 %v9257_v6, 16  ;;  %v2286_v62 = vrot.slane %v2284_v53, 4  ;;  %v2292_v1 = vrot.slane %v2290_v58, 5  ;;  %v2304_v8 = vshrl.u32 %v9288_v44, 16  ;;  %p8225_p0 = scmp.lt.s32.totalorder %s10373_s19, %s8223_s25 }
 0x1ab   : > { %7424 = vmatprep.subr.bf16.mxu0 %v8056_v48  ;;  %v2310_v9 = vshll.u32 %v9291_v49, 16  ;;  %v2296_v13 = vrot.slane %v2294_v2, 4  ;;  %v2302_v14 = vrot.slane %v2300_v3, 5  ;;  %v2315_v22 = vshrl.u32 %v2115_v4, 16  ;;  %v9348_v3 = vld [vmem:[%s9223_s27 + $0x58] sm:$0xf]  ;;  %p8221_p13 = pneg %p8220_p11 }
 0x1ac   : > { %v2258_v40 = vrot.slane %v2256_v27, 5  ;;  %v2287_v7 = vor.u32 %v2286_v62, %v2282_v61  ;;  %v2306_v20 = vrot.slane %v2304_v8, 4  ;;  %v2324_v36 = vshll.u32 %v9307_v10, 16  ;;  %v9342_v62 = vld [vmem:[%s9223_s27 + $0x54] sm:$0xf] }
 0x1ad   : > { %7233 = vmatpush3.bf16.msra.mxu1 %v8055_v43  ;;  %v3172_v43 = vrot.slane %v9265_v15, 5  ;;  %v2317_v25 = vrot.slane %v2315_v22, 4  ;;  %v9357_v22 = vld [vmem:[%s9223_s27 + $0x5c] sm:$0xf] }
 0x1ae   : > { %7425 = vmatpush3.bf16.msra.mxu0 %v8056_v48  ;;  %7234 = vmatprep.subr.bf16.mxu1 %v8057_v54  ;;  %v2271_v48 = vshrl.u32 %v2111_v23, 16  ;;  %v2259_v50 = vsel %vm9247_vm10, %v2254_v39, %v2258_v40  ;;  %v2263_v56 = vor.u32 %v2262_v46, %v2258_v40  ;;  %v2288_v19 = vrot.slane %v2287_v7, 4  ;;  %v9327_v46 = vld [vmem:[%s9223_s27 + $0x4c] sm:$0x1] }
 0x1af   : > { %7426 = vmatprep.subr.bf16.mxu0 %v8058_v60  ;;  %v2312_v23 = vrot.slane %v2310_v9, 5  ;;  %v2307_v34 = vor.u32 %v2306_v20, %v2302_v14  ;;  %v2354_v8 = vshll.u32 %v9327_v46, 16 }
 0x1b0   : > { %v2273_v57 = vrot.slane %v2271_v48, 4  ;;  %v2264_v0 = vrot.slane %v2263_v56, 4  ;;  %v2293_v27 = vsel %vm9247_vm10, %v2288_v19, %v2292_v1  ;;  %v2344_v56 = vshll.u32 %v9320_v37, 16 }
 0x1b1   : > { %7235 = vmatpush3.bf16.msra.mxu1 %v8057_v54  ;;  %v2225_v54 = vsel %vm9247_vm10, %v2220_v45, %v2224_v17  ;;  %v2297_v17 = vor.u32 %v2296_v13, %v2292_v1  ;;  %v2328_v45 = vshrl.u32 %v9307_v10, 16  ;;  %v2308_v48 = vrot.slane %v2307_v34, 4 }
 0x1b2   : > { %7427 = vmatpush3.bf16.msra.mxu0 %v8058_v60  ;;  %7268 = vmatprep.subr.bf16.mxu1 %v8059_v30  ;;  %v6724_v59 = vcombine.low %v2215_v26, %v2225_v54  ;;  %v2276_v60 = vrot.slane %v2274_v51, 5  ;;  %v2269_v11 = vsel %vm9247_vm10, %v2264_v0, %v2268_v47  ;;  %v2318_v26 = vshll.u32 %v2115_v4, 16  ;;  %v8068_v47 = vld [vmem:[#allocation6 + $0x18] sm:$0xff]  }
 0x1b3   : > { %7460 = vmatprep.subr.bf16.mxu0 %v9274_v31  ;;  %v6726_v16 = vcombine.low %v2259_v50, %v2269_v11  ;;  %v2298_v39 = vrot.slane %v2297_v17, 4  ;;  %v2326_v50 = vrot.slane %v2324_v36, 5  ;;  %v2334_v51 = vshll.u32 %v9312_v24, 16  ;;  %v8064_v4 = vld [vmem:[#allocation6 + $0x158] sm:$0xff]  }
 0x1b4   : > { %7237 = vmatmul.mubr.bf16.vlgmr.msra.gmra.mrb[0].mxu1 %v6724_v59  ;;  %v2277_v5 = vor.u32 %v2276_v60, %v2273_v57  ;;  %v2320_v40 = vrot.slane %v2318_v26, 5  ;;  %v2330_v54 = vrot.slane %v2328_v45, 4  ;;  %v9336_v57 = vld [vmem:[%s9223_s27 + $0x50] sm:$0xf]  ;;  %v2313_v58 = vsel %vm9247_vm10, %v2308_v48, %v2312_v23  ;;  %v9361_v17 = vld [vmem:[%s9223_s27 + $0x60] sm:$0x1] }
 0x1b5   : > { %7269 = vmatpush3.bf16.msra.mxu1 %v8059_v30  ;;  %7240 = vmatprep.mubr.bf16.mxu1 %v6725_v38  ;;  %v2303_v52 = vsel %vm9247_vm10, %v2298_v39, %v2302_v14  ;;  %v2336_v59 = vrot.slane %v2334_v51, 5  ;;  %v2346_v2 = vrot.slane %v2344_v56, 5  ;;  %v2359_v9 = vshrl.u32 %v9336_v57, 16  ;;  %v8073_v51 = vld [vmem:[#allocation6 + $0x28] sm:$0xff]  }
 0x1b6   : > { %v2278_v18 = vrot.slane %v2277_v5, 4  ;;  %7270 = vmatprep.subr.bf16.mxu1 %v8062_v63  ;;  %7429 = vmatmul.mubr.bf16.vlgmr.msra.gmra.mrb[0].mxu0 %v6726_v16  ;;  %v2321_v53 = vor.u32 %v2320_v40, %v2317_v25  ;;  %v2331_v1 = vor.u32 %v2330_v54, %v2326_v50  ;;  %v2362_v13 = vshll.u32 %v9336_v57, 16  ;;  %v8066_v25 = vld [vmem:[#allocation6 + $0x160] sm:$0xff]   ;;  %v2154_v54 = vld [vmem:[%s9223_s27 + $0x14] sm:$0xe] }
 0x1b7   : > { %7461 = vmatpush3.bf16.msra.mxu0 %v9274_v31  ;;  %v2338_v31 = vshrl.u32 %v9312_v24, 16  ;;  %v2368_v14 = vshll.u32 %v9342_v62, 16  ;;  %v2356_v20 = vrot.slane %v2354_v8, 5  ;;  %v2378_v40 = vshll.u32 %v9348_v3, 16 }
 0x1b8   : > { %v2283_v30 = vsel %vm9247_vm10, %v2278_v18, %v2282_v61  ;;  %7462 = vmatprep.subr.bf16.mxu0 %v8061_v12  ;;  %v2348_v61 = vshrl.u32 %v9320_v37, 16  ;;  %v2322_v0 = vrot.slane %v2321_v53, 4  ;;  %v2364_v26 = vrot.slane %v2362_v13, 5 }
 0x1b9   : > { %v9323_v38 = vcombine.low %v2283_v30, %v2293_v27  ;;  %7271 = vmatpush3.bf16.msra.mxu1 %v8062_v63  ;;  %v2340_v60 = vrot.slane %v2338_v31, 4  ;;  %v9344_v63 = vcombine.low %v2303_v52, %v2313_v58  ;;  %v2370_v30 = vrot.slane %v2368_v14, 5 }
 0x1ba   : > { %7272 = vmatprep.subr.bf16.mxu1 %v8065_v21  ;;  %v2350_v7 = vrot.slane %v2348_v61, 4  ;;  %v2327_v11 = vsel %vm9247_vm10, %v2322_v0, %v2326_v50  ;;  %v2372_v27 = vshrl.u32 %v9342_v62, 16  ;;  %v2382_v48 = vshrl.u32 %v9348_v3, 16  ;;  %v8067_v61 = vld [vmem:[#allocation6 + $0x168] sm:$0xff]  }
 0x1bb   : > { %7432 = vmatprep.mubr.bf16.mxu0 %v9323_v38  ;;  %7463 = vmatpush3.bf16.msra.mxu0 %v8061_v12  ;;  %v2341_v5 = vor.u32 %v2340_v60, %v2336_v59  ;;  %v2332_v12 = vrot.slane %v2331_v1, 4  ;;  %v2388_v50 = vshll.u32 %v9357_v22, 16  ;;  %v2380_v52 = vrot.slane %v2378_v40, 5  ;;  %v2155_v40 = vld [vmem:[%s9223_s27 + $0x28] sm:$0xe] }
 0x1bc   : > { %7241 = vmatmul.mubr.bf16.gmra.mrb[4].mxu1 %v6726_v16  ;;  %7464 = vmatprep.subr.bf16.mxu0 %v8063_v35  ;;  %v8071_v16 = vld [vmem:[#allocation6 + $0x20] sm:$0xff]   ;;  %v2351_v19 = vor.u32 %v2350_v7, %v2346_v2  ;;  %v2374_v45 = vrot.slane %v2372_v27, 4  ;;  %v2392_v53 = vshrl.u32 %v9357_v22, 16  ;;  %v2384_v60 = vrot.slane %v2382_v48, 4 }
 0x1bd   : > { %7244 = vmatprep.mubr.bf16.mxu1 %v9323_v38  ;;  %7273 = vmatpush3.bf16.msra.mxu1 %v8065_v21  ;;  %v2342_v18 = vrot.slane %v2341_v5, 4  ;;  %v2361_v21 = vrot.slane %v2359_v9, 4  ;;  %v2337_v23 = vsel %vm9247_vm10, %v2332_v12, %v2336_v59  ;;  %v2390_v0 = vrot.slane %v2388_v50, 5  ;;  %v8075_v12 = vld [vmem:[#allocation6 + $0x30] sm:$0xff]   ;;  %v9408_v27 = vld [vmem:[%s9223_s27 + $0x6c] sm:$0xf] }
 0x1be   : > { %7274 = vmatprep.subr.bf16.mxu1 %v8068_v47  ;;  %7433 = vmatmul.mubr.bf16.gmra.mrb[4].mxu0 %v9344_v63  ;;  %v9366_v34 = vcombine.low %v2327_v11, %v2337_v23  ;;  %v2352_v39 = vrot.slane %v2351_v19, 4  ;;  %v2375_v59 = vor.u32 %v2374_v45, %v2370_v30  ;;  %v2394_v1 = vrot.slane %v2392_v53, 4 }
 0x1bf   : > { %7465 = vmatpush3.bf16.msra.mxu0 %v8063_v35  ;;  %v2347_v36 = vsel %vm9247_vm10, %v2342_v18, %v2346_v2  ;;  %v2365_v35 = vor.u32 %v2364_v26, %v2361_v21  ;;  %v6772_v5 = vrot.slane %v2154_v54, 9  ;;  %v2385_v9 = vor.u32 %v2384_v60, %v2380_v52  ;;  %v8069_v18 = vld [vmem:[#allocation6 + $0x170] sm:$0xff]   ;;  %v9436_v60 = vld [vmem:[%s9223_s27 + $0x70] sm:$0xf] }
 0x1c0   : > { %7466 = vmatprep.subr.bf16.mxu0 %v8064_v4  ;;  %7436 = vmatprep.mubr.bf16.mxu0 %v9366_v34  ;;  %v2357_v31 = vsel %vm9247_vm10, %v2352_v39, %v2356_v20  ;;  %v2376_v8 = vrot.slane %v2375_v59, 4  ;;  %v3163_v11 = vrot.slane %v9238_v41, 5  ;;  %v2395_v13 = vor.u32 %v2394_v1, %v2390_v0  ;;  %v9398_v20 = vld [vmem:[%s9223_s27 + $0x64] sm:$0xf] }
 0x1c1   : > { %7275 = vmatpush3.bf16.msra.mxu1 %v8068_v47  ;;  %v2398_v47 = vshll.u32 %v9361_v17, 16  ;;  %v9380_v56 = vcombine.low %v2347_v36, %v2357_v31  ;;  %v2366_v58 = vrot.slane %v2365_v35, 4  ;;  %v3169_v19 = vrot.slane %v9257_v6, 5 }
 0x1c2   : > { %7276 = vmatprep.subr.bf16.mxu1 %v8071_v16  ;;  %v2381_v21 = vsel %vm9247_vm10, %v2376_v8, %v2380_v52  ;;  %v2386_v41 = vrot.slane %v2385_v9, 4  ;;  %v3164_v23 = vsel %vm9385_vm13, %v6772_v5, %v3163_v11  ;;  %v3165_v26 = vrot.slane %v3163_v11, 4  ;;  %v9445_v11 = vld [vmem:[%s9223_s27 + $0x74] sm:$0x1] }
 0x1c3   : > { %7467 = vmatpush3.bf16.msra.mxu0 %v8064_v4  ;;  %v2371_v7 = vsel %vm9247_vm10, %v2366_v58, %v2370_v30  ;;  %v2400_v14 = vrot.slane %v2398_v47, 5  ;;  %v9405_v30 = vld [vmem:[%s9223_s27 + $0x68] sm:$0xf]  ;;  %v3171_v39 = vrot.slane %v3169_v19, 4  ;;  %v2403_v48 = vshrl.u32 %v9398_v20, 16 }
 0x1c4   : > { %7245 = vmatmul.mubr.bf16.gmra.mrb[8].mxu1 %v9344_v63  ;;  %7468 = vmatprep.subr.bf16.mxu0 %v8066_v25  ;;  %v9410_v36 = vcombine.low %v2371_v7, %v2381_v21  ;;  %v2391_v35 = vsel %vm9247_vm10, %v2386_v41, %v2390_v0  ;;  %v2406_v50 = vshll.u32 %v9398_v20, 16  ;;  %v2412_v53 = vshll.u32 %v9405_v30, 16  ;;  %v8070_v0 = vld [vmem:[#allocation6 + $0x178] sm:$0xff]   ;;  %v9453_v21 = vld [vmem:[%s9223_s27 + $0x78] sm:$0xf] }
 0x1c5   : > { %7248 = vmatprep.mubr.bf16.mxu1 %v9366_v34  ;;  %7277 = vmatpush3.bf16.msra.mxu1 %v8071_v16  ;;  %v3166_v16 = vrot.slane %v9241_v42, 5  ;;  %v2396_v42 = vrot.slane %v2395_v13, 4  ;;  %v3173_v54 = vsel %vm9385_vm13, %v3171_v39, %v3172_v43  ;;  %v2405_v58 = vrot.slane %v2403_v48, 4  ;;  %v9447_v13 = vld [vmem:[#allocation6 + $0x80] sm:$0xff]   ;;  %v2158_v4 = vld [vmem:[%s9223_s27 + $0x64] sm:$0xe] }
 0x1c6   : > { %7278 = vmatprep.subr.bf16.mxu1 %v8073_v51  ;;  %7437 = vmatmul.mubr.bf16.gmra.mrb[8].mxu0 %v9380_v56  ;;  %v2408_v59 = vrot.slane %v2406_v50, 5  ;;  %v2414_v5 = vrot.slane %v2412_v53, 5  ;;  %v2422_v7 = vshll.u32 %v9408_v27, 16  ;;  %v6773_v8 = vrot.slane %v2155_v40, 9 }
 0x1c7   : > { %7469 = vmatpush3.bf16.msra.mxu0 %v8066_v25  ;;  %v3168_v6 = vrot.slane %v3166_v16, 4  ;;  %v8077_v25 = vld [vmem:[#allocation6 + $0x38] sm:$0xff]   ;;  %v3167_v45 = vsel %vm9385_vm13, %v3165_v26, %v3166_v16  ;;  %7440 = vmatprep.mubr.bf16.mxu0 %v9410_v36  ;;  %v3176_v9 = vrot.slane %v9277_v32, 5  ;;  %v3179_v43 = vrot.slane %v9280_v33, 5  ;;  %v9460_v26 = vld [vmem:[%s9223_s27 + $0x7c] sm:$0xf] }
 0x1c8   : > { %7470 = vmatprep.subr.bf16.mxu0 %v8067_v61  ;;  %v9423_v31 = vcombine.low %v3164_v23, %v3167_v45  ;;  %v2409_v15 = vor.u32 %v2408_v59, %v2405_v58  ;;  %v2424_v16 = vrot.slane %v2422_v7, 5  ;;  %v2436_v23 = vshrl.u32 %v9436_v60, 16 }
 0x1c9   : > { %7279 = vmatpush3.bf16.msra.mxu1 %v8073_v51  ;;  %v2401_v51 = vsel %vm9247_vm10, %v2396_v42, %v2400_v14  ;;  %v3170_v52 = vsel %vm9385_vm13, %v3168_v6, %v3169_v19  ;;  %v2426_v19 = vshrl.u32 %v9408_v27, 16  ;;  %v3177_v33 = vsel %vm9385_vm13, %v6773_v8, %v3176_v9  ;;  %v8072_v42 = vld [vmem:[#allocation6 + $0x180] sm:$0xff]   ;;  %v9477_v8 = vld [vmem:[%s9223_s27 + $0x80] sm:$0xf] }
 0x1ca   : > { %7280 = vmatprep.subr.bf16.mxu1 %v8075_v12  ;;  %v9428_v47 = vcombine.low %v2391_v35, %v2401_v51  ;;  %v9438_v1 = vcombine.low %v3170_v52, %v3173_v54  ;;  %v2410_v32 = vrot.slane %v2409_v15, 4  ;;  %v3178_v41 = vrot.slane %v3176_v9, 4  ;;  %v8074_v15 = vld [vmem:[#allocation6 + $0x188] sm:$0xff]  }
 0x1cb   : > { %7471 = vmatpush3.bf16.msra.mxu0 %v8067_v61  ;;  %v2416_v61 = vshrl.u32 %v9405_v30, 16  ;;  %v2428_v39 = vrot.slane %v2426_v19, 4  ;;  %v2442_v35 = vshll.u32 %v9445_v11, 16  ;;  %v2438_v48 = vrot.slane %v2436_v23, 4  ;;  %v2156_v19 = vld [vmem:[%s9223_s27 + $0x3c] sm:$0xe] }
 0x1cc   : > { %7249 = vmatmul.mubr.bf16.gmra.mrb[12].mxu1 %v9380_v56  ;;  %7472 = vmatprep.subr.bf16.mxu0 %v8069_v18  ;;  %v3180_v45 = vsel %vm9385_vm13, %v3178_v41, %v3179_v43  ;;  %v3181_v50 = vrot.slane %v3179_v43, 4  ;;  %v3182_v58 = vrot.slane %v9288_v44, 5  ;;  %v3185_v59 = vrot.slane %v9291_v49, 5  ;;  %v9493_v23 = vld [vmem:[%s9223_s27 + $0x88] sm:$0x1] }
 0x1cd   : > { %7252 = vmatprep.mubr.bf16.mxu1 %v9410_v36  ;;  %7281 = vmatpush3.bf16.msra.mxu1 %v8075_v12  ;;  %v2418_v14 = vrot.slane %v2416_v61, 4  ;;  %v2432_v12 = vshll.u32 %v9436_v60, 16  ;;  %v9469_v52 = vcombine.low %v3177_v33, %v3180_v45  ;;  %v2429_v53 = vor.u32 %v2428_v39, %v2424_v16 }
 0x1ce   : > { %7282 = vmatprep.subr.bf16.mxu1 %v8077_v25  ;;  %7441 = vmatmul.mubr.bf16.gmra.mrb[12].mxu0 %v9428_v47  ;;  %v2444_v54 = vrot.slane %v2442_v35, 5  ;;  %v2456_v9 = vshll.u32 %v9460_v26, 16  ;;  %v3183_v49 = vsel %vm9385_vm13, %v3181_v50, %v3182_v58  ;;  %v2460_v35 = vshrl.u32 %v9460_v26, 16  ;;  %v8076_v50 = vld [vmem:[#allocation6 + $0x190] sm:$0xff]  }
 0x1cf   : > { %7473 = vmatpush3.bf16.msra.mxu0 %v8069_v18  ;;  %7476 = vmatprep.mubr.bf16.mxu0 %v9423_v31  ;;  %v2419_v6 = vor.u32 %v2418_v14, %v2414_v5  ;;  %v2434_v40 = vrot.slane %v2432_v12, 5  ;;  %v2415_v18 = vsel %vm9247_vm10, %v2410_v32, %v2414_v5  ;;  %v2447_v5 = vshrl.u32 %v9453_v21, 16  ;;  %v9487_v12 = vld [vmem:[%s9223_s27 + $0x84] sm:$0xf] }
 0x1d0   : > { %7474 = vmatprep.subr.bf16.mxu0 %v8070_v0  ;;  %v2430_v7 = vrot.slane %v2429_v53, 4  ;;  %v3184_v14 = vrot.slane %v3182_v58, 4  ;;  %v2458_v41 = vrot.slane %v2456_v9, 5 }
 0x1d1   : > { %7283 = vmatpush3.bf16.msra.mxu1 %v8077_v25  ;;  %v2420_v51 = vrot.slane %v2419_v6, 4  ;;  %v2439_v25 = vor.u32 %v2438_v48, %v2434_v40  ;;  %v2449_v32 = vrot.slane %v2447_v5, 4  ;;  %v6774_v48 = vrot.slane %v2156_v19, 9 }
 0x1d2   : > { %7316 = vmatprep.subr.bf16.mxu1 %v9447_v13  ;;  %v3186_v39 = vsel %vm9385_vm13, %v3184_v14, %v3185_v59  ;;  %v2470_v59 = vshrl.u32 %v9477_v8, 16  ;;  %v2476_v5 = vshll.u32 %v9487_v12, 16 }
 0x1d3   : > { %7475 = vmatpush3.bf16.msra.mxu0 %v8070_v0  ;;  %v2425_v61 = vsel %vm9247_vm10, %v2420_v51, %v2424_v16  ;;  %v2450_v0 = vshll.u32 %v9453_v21, 16  ;;  %v2440_v44 = vrot.slane %v2439_v25, 4  ;;  %v2435_v16 = vsel %vm9247_vm10, %v2430_v7, %v2434_v40  ;;  %v9514_v7 = vld [vmem:[%s9223_s27 + $0x8c] sm:$0xf] }
 0x1d4   : > { %7253 = vmatmul.mubr.bf16.gmra.mrb[16].mxu1 %v9428_v47  ;;  %7508 = vmatprep.subr.bf16.mxu0 %v8072_v42  ;;  %v9481_v43 = vcombine.low %v2415_v18, %v2425_v61  ;;  %v2466_v18 = vshll.u32 %v9477_v8, 16  ;;  %v9505_v45 = vcombine.low %v3183_v49, %v3186_v39  ;;  %v2462_v51 = vrot.slane %v2460_v35, 4  ;;  %v9527_v35 = vld [vmem:[%s9223_s27 + $0x94] sm:$0xf] }
 0x1d5   : > { %v2452_v33 = vrot.slane %v2450_v0, 5  ;;  %v2445_v6 = vsel %vm9247_vm10, %v2440_v44, %v2444_v54  ;;  %v3189_v54 = vrot.slane %v9307_v10, 5  ;;  %v3192_v25 = vrot.slane %v9312_v24, 5 }
 0x1d6   : > { %10506 = vst [vmem:[#allocation17_spill] sm:$0xff] %v9481_v43  ;;  %7477 = vmatmul.mubr.bf16.vlgmr.msra.gmra.mrb[0].mxu0 %v9438_v1  ;;  %7256 = vmatprep.mubr.bf16.mxu1 %v9481_v43  ;;  %v9503_v40 = vcombine.low %v2435_v16, %v2445_v6  ;;  %v2468_v53 = vrot.slane %v2466_v18, 5  ;;  %v2480_v61 = vshrl.u32 %v9487_v12, 16  ;;  %v2463_v0 = vor.u32 %v2462_v51, %v2458_v41  ;;  %v9522_v16 = vld [vmem:[%s9223_s27 + $0x90] sm:$0xf] }
 0x1d7   : > { %7509 = vmatpush3.bf16.msra.mxu0 %v8072_v42  ;;  %7480 = vmatprep.mubr.bf16.mxu0 %v9469_v52  ;;  %v2453_v42 = vor.u32 %v2452_v33, %v2449_v32  ;;  %v3190_v10 = vsel %vm9385_vm13, %v6774_v48, %v3189_v54  ;;  %v3191_v9 = vrot.slane %v3189_v54, 4  ;;  %v2486_v24 = vshll.u32 %v9493_v23, 16  ;;  %v8078_v32 = vld [vmem:[#allocation6 + $0x198] sm:$0xff]  }
 0x1d8   : > { %10507 = vst [vmem:[#allocation18_spill] sm:$0xff] %v9503_v40  ;;  %7510 = vmatprep.subr.bf16.mxu0 %v8074_v15  ;;  %v2472_v49 = vrot.slane %v2470_v59, 4  ;;  %v2478_v14 = vrot.slane %v2476_v5, 5  ;;  %v2482_v19 = vrot.slane %v2480_v61, 4  ;;  %v2464_v33 = vrot.slane %v2463_v0, 4  ;;  %v8082_v59 = vld [vmem:[#allocation6 + $0x1a0] sm:$0xff]  }
 0x1d9   : > { %v2454_v58 = vrot.slane %v2453_v42, 4  ;;  %v2488_v6 = vrot.slane %v2486_v24, 5  ;;  %v3194_v39 = vrot.slane %v3192_v25, 4  ;;  %v3195_v48 = vrot.slane %v9320_v37, 5  ;;  %v9546_v24 = vld [vmem:[%s9223_s27 + $0x98] sm:$0xf] }
 0x1da   : > { %v2483_v42 = vor.u32 %v2482_v19, %v2478_v14  ;;  %v2469_v51 = vsel %vm9247_vm10, %v2464_v33, %v2468_v53  ;;  %v3198_v54 = vrot.slane %v9327_v46, 5  ;;  %v2504_v19 = vshrl.u32 %v9522_v16, 16 }
 0x1db   : > { %7511 = vmatpush3.bf16.msra.mxu0 %v8074_v15  ;;  %v2459_v44 = vsel %vm9247_vm10, %v2454_v58, %v2458_v41  ;;  %v3193_v15 = vsel %vm9385_vm13, %v3191_v9, %v3192_v25  ;;  %v2473_v41 = vor.u32 %v2472_v49, %v2468_v53  ;;  %v2491_v25 = vshrl.u32 %v9514_v7, 16 }
 0x1dc   : > { %7257 = vmatmul.mubr.bf16.gmra.mrb[20].mxu1 %v9503_v40  ;;  %7512 = vmatprep.subr.bf16.mxu0 %v8076_v50  ;;  %v9530_v18 = vcombine.low %v3190_v10, %v3193_v15  ;;  %v2494_v58 = vshll.u32 %v9514_v7, 16  ;;  %v9538_v5 = vcombine.low %v2459_v44, %v2469_v51  ;;  %v2484_v0 = vrot.slane %v2483_v42, 4  ;;  %v2157_v10 = vld [vmem:[%s9223_s27 + $0x50] sm:$0xe] }
 0x1dd   : > { %v2474_v61 = vrot.slane %v2473_v41, 4  ;;  %v3196_v37 = vsel %vm9385_vm13, %v3194_v39, %v3195_v48  ;;  %v3197_v46 = vrot.slane %v3195_v48, 4  ;;  %v2493_v53 = vrot.slane %v2491_v25, 4  ;;  %v9560_v48 = vld [vmem:[%s9223_s27 + $0x9c] sm:$0x1] }
 0x1de   : > { %7481 = vmatmul.mubr.bf16.gmra.mrb[4].mxu0 %v9505_v45  ;;  %10508 = vst [vmem:[#allocation19_spill] sm:$0xff] %v9538_v5  ;;  %v2500_v9 = vshll.u32 %v9522_v16, 16  ;;  %7260 = vmatprep.mubr.bf16.mxu1 %v9538_v5  ;;  %v2489_v49 = vsel %vm9247_vm10, %v2484_v0, %v2488_v6  ;;  %v2510_v33 = vshll.u32 %v9527_v35, 16  ;;  %v8086_v6 = vld [vmem:[#allocation6 + $0x1a8] sm:$0xff]   ;;  %v3202_v0 = vrot.slane %v9342_v62, 5 }
 0x1df   : > { %7513 = vmatpush3.bf16.msra.mxu0 %v8076_v50  ;;  %7484 = vmatprep.mubr.bf16.mxu0 %v9530_v18  ;;  %v2496_v50 = vrot.slane %v2494_v58, 5  ;;  %v2479_v44 = vsel %vm9247_vm10, %v2474_v61, %v2478_v14  ;;  %v3199_v39 = vsel %vm9385_vm13, %v3197_v46, %v3198_v54  ;;  %v2506_v14 = vrot.slane %v2504_v19, 4  ;;  %v8090_v19 = vld [vmem:[#allocation6 + $0x1b0] sm:$0xff]  }
 0x1e0   : > { %7514 = vmatprep.subr.bf16.mxu0 %v8078_v32  ;;  %v9555_v15 = vcombine.low %v2479_v44, %v2489_v49  ;;  %v2502_v42 = vrot.slane %v2500_v9, 5  ;;  %v9562_v51 = vcombine.low %v3196_v37, %v3199_v39  ;;  %v2512_v25 = vrot.slane %v2510_v33, 5 }
 0x1e1   : > { %v2497_v41 = vor.u32 %v2496_v50, %v2493_v53  ;;  %v6775_v58 = vrot.slane %v2157_v10, 9  ;;  %v3205_v44 = vrot.slane %v9348_v3, 5  ;;  %v2514_v54 = vshrl.u32 %v9527_v35, 16 }
 0x1e2   : > { %10509 = vst [vmem:[#allocation20_spill] sm:$0xff] %v9555_v15  ;;  %v2520_v37 = vshll.u32 %v9546_v24, 16  ;;  %v2524_v46 = vshrl.u32 %v9546_v24, 16  ;;  %v2530_v10 = vshll.u32 %v9560_v48, 16  ;;  %v3204_v9 = vrot.slane %v3202_v0, 4 }
 0x1e3   : > { %7515 = vmatpush3.bf16.msra.mxu0 %v8078_v32  ;;  %v2498_v61 = vrot.slane %v2497_v41, 4  ;;  %v2507_v32 = vor.u32 %v2506_v14, %v2502_v42  ;;  %v3203_v50 = vsel %vm9385_vm13, %v6775_v58, %v3202_v0  ;;  %v2516_v49 = vrot.slane %v2514_v54, 4  ;;  %v8094_v54 = vld [vmem:[#allocation6 + $0x1b8] sm:$0xff]  }
 0x1e4   : > { %7516 = vmatprep.subr.bf16.mxu0 %v8082_v59  ;;  %7261 = vmatmul.mubr.bf16.gmra.mrb[24].mxu1 %v9555_v15  ;;  %v2522_v39 = vrot.slane %v2520_v37, 5  ;;  %v2526_v41 = vrot.slane %v2524_v46, 4  ;;  %v2532_v14 = vrot.slane %v2530_v10, 5  ;;  %v3206_v15 = vsel %vm9385_vm13, %v3204_v9, %v3205_v44  ;;  %v2159_v9 = vld [vmem:[%s9223_s27 + $0x78] sm:$0xe] }
 0x1e5   : > { %v2503_v53 = vsel %vm9247_vm10, %v2498_v61, %v2502_v42  ;;  %v2508_v33 = vrot.slane %v2507_v32, 4  ;;  %v2517_v5 = vor.u32 %v2516_v49, %v2512_v25  ;;  %v3207_v40 = vrot.slane %v3205_v44, 4 }
 0x1e6   : > { %7485 = vmatmul.mubr.bf16.gmra.mrb[8].mxu0 %v9562_v51  ;;  %v3208_v42 = vrot.slane %v9357_v22, 5  ;;  %v9582_v61 = vcombine.low %v3203_v50, %v3206_v15  ;;  %v3211_v0 = vrot.slane %v9361_v17, 5  ;;  %v6776_v49 = vrot.slane %v2158_v4, 9 }
 0x1e7   : > { %7517 = vmatpush3.bf16.msra.mxu0 %v8082_v59  ;;  %v2513_v58 = vsel %vm9247_vm10, %v2508_v33, %v2512_v25  ;;  %v2527_v59 = vor.u32 %v2526_v41, %v2522_v39  ;;  %v2518_v37 = vrot.slane %v2517_v5, 4  ;;  %v3215_v15 = vrot.slane %v9405_v30, 5 }
 0x1e8   : > { %7518 = vmatprep.subr.bf16.mxu0 %v8086_v6  ;;  %v9585_v32 = vcombine.low %v2503_v53, %v2513_v58  ;;  %v3209_v46 = vsel %vm9385_vm13, %v3207_v40, %v3208_v42  ;;  %v3210_v10 = vrot.slane %v3208_v42, 4  ;;  %7488 = vmatprep.mubr.bf16.mxu0 %v9582_v61  ;;  %v3218_v25 = vrot.slane %v9408_v27, 5 }
 0x1e9   : > { %v2528_v44 = vrot.slane %v2527_v59, 4  ;;  %v2523_v17 = vsel %vm9247_vm10, %v2518_v37, %v2522_v39  ;;  %v3221_v5 = vrot.slane %v9436_v60, 5  ;;  %v3216_v50 = vsel %vm9385_vm13, %v6776_v49, %v3215_v15 }
 0x1ea   : > { %10510 = vst [vmem:[#allocation21_spill] sm:$0xff] %v9585_v32  ;;  %7264 = vmatprep.mubr.bf16.mxu1 %v9585_v32  ;;  %v3212_v40 = vsel %vm9385_vm13, %v3210_v10, %v3211_v0  ;;  %v3217_v33 = vrot.slane %v3215_v15, 4  ;;  %v3220_v42 = vrot.slane %v3218_v25, 4  ;;  %v6777_v58 = vrot.slane %v2159_v9, 9  ;;  %v9613_v0 = vld [vmem:[#allocation6 + $0x1c0] sm:$0xff]  }
 0x1eb   : > { %7519 = vmatpush3.bf16.msra.mxu0 %v8086_v6  ;;  %v3224_v6 = vrot.slane %v9445_v11, 5  ;;  %v2533_v4 = vsel %vm9247_vm10, %v2528_v44, %v2532_v14  ;;  %v9602_v53 = vcombine.low %v3209_v46, %v3212_v40  ;;  %v3223_v39 = vrot.slane %v3221_v5, 4  ;;  %v2160_v15 = vld [vmem:[%s9223_s27 + $0x8c] sm:$0xe]  ;;  %v8146_v32 = vld [vmem:[%s9223_s27 + $0x40] sm:$0xf] }
 0x1ec   : > { %7520 = vmatprep.subr.bf16.mxu0 %v8090_v19  ;;  %v9606_v41 = vcombine.low %v2523_v17, %v2533_v4  ;;  %v3219_v11 = vsel %vm9385_vm13, %v3217_v33, %v3218_v25  ;;  %v3228_v14 = vrot.slane %v9460_v26, 5  ;;  %v3231_v59 = vrot.slane %v9477_v8, 5  ;;  %v8137_v33 = vld [vmem:[%s9223_s27 + $0x14] sm:$0xf] }
 0x1ed   : > { %v9616_v37 = vcombine.low %v3216_v50, %v3219_v11  ;;  %v3225_v46 = vsel %vm9385_vm13, %v3223_v39, %v3224_v6  ;;  %v10512_v10 = vcombine.low %v9226_v28, %v9229_v29  ;;  %v3234_v49 = vrot.slane %v9487_v12, 5  ;;  %v9637_v29 = vld [vmem:[%s9223_s27 + $0x8] sm:$0xf]  ;;  %v8085_v11 = vld [vmem:[#allocation6 + $0x88] sm:$0xff]  }
 0x1ee   : > { %10511 = vst [vmem:[#allocation22_spill] sm:$0xff] %v9606_v41  ;;  %7489 = vmatmul.mubr.bf16.gmra.mrb[12].mxu0 %v9602_v53  ;;  %7265 = vmatmul.mubr.bf16.gmra.mrb[28].mxu1 %v9606_v41  ;;  %v3229_v9 = vsel %vm9385_vm13, %v6777_v58, %v3228_v14  ;;  %v3230_v44 = vrot.slane %v3228_v14, 4  ;;  %v3233_v40 = vrot.slane %v3231_v59, 4  ;;  %v3241_v28 = vrot.slane %v9522_v16, 5 }
 0x1ef   : > { %7521 = vmatpush3.bf16.msra.mxu0 %v8090_v19  ;;  %v3222_v19 = vsel %vm9385_vm13, %v3220_v42, %v3221_v5  ;;  %7284 = vmatprep.mubr.bf16.mxu1 %v10512_v10  ;;  %v9640_v5 = vld [vmem:[%s9223_s27 + $0xc] sm:$0xf]  ;;  %v3236_v4 = vrot.slane %v3234_v49, 4  ;;  %v3237_v50 = vrot.slane %v9493_v23, 5  ;;  %v8138_v42 = vld [vmem:[%s9223_s27 + $0x18] sm:$0xf] }
 0x1f0   : > { %7522 = vmatprep.subr.bf16.mxu0 %v8094_v54  ;;  %7492 = vmatprep.mubr.bf16.mxu0 %v9616_v37  ;;  %v9630_v25 = vcombine.low %v3222_v19, %v3225_v46  ;;  %v3232_v17 = vsel %vm9385_vm13, %v3230_v44, %v3231_v59  ;;  %v6748_v6 = vcombine.low %v9637_v29, %v9640_v5  ;;  %v6778_v58 = vrot.slane %v2160_v15, 9  ;;  %v9653_v19 = vld [vmem:[%s9223_s27 + $0xa4] sm:$0xf]  ;;  %v8139_v23 = vld [vmem:[%s9223_s27 + $0x1c] sm:$0xf] }
 0x1f1   : > { %v9649_v39 = vcombine.low %v8137_v33, %v8138_v42  ;;  %v3243_v14 = vrot.slane %v3241_v28, 4  ;;  %v3244_v59 = vrot.slane %v9527_v35, 5  ;;  %v3247_v46 = vrot.slane %v9546_v24, 5  ;;  %v8140_v10 = vld [vmem:[%s9223_s27 + $0x20] sm:$0xf] }
 0x1f2   : > { %v3235_v44 = vsel %vm9385_vm13, %v3233_v40, %v3234_v49  ;;  %v3238_v15 = vsel %vm9385_vm13, %v3236_v4, %v3237_v50  ;;  %v3242_v42 = vsel %vm9385_vm13, %v6778_v58, %v3241_v28  ;;  %v2161_v49 = vld [vmem:[%s9223_s27 + $0xa0] sm:$0xe]  ;;  %v4158_v40 = vrot.slane %v9653_v19, 5  ;;  %v9680_v50 = vld [vmem:[%s9223_s27 + $0xa8] sm:$0xf] }
 0x1f3   : > { %7523 = vmatpush3.bf16.msra.mxu0 %v8094_v54  ;;  %v9644_v54 = vcombine.low %v3229_v9, %v3232_v17  ;;  %10513 = vst [vmem:[#allocation23_spill] sm:$0xff] %v9649_v39  ;;  %v9660_v9 = vcombine.low %v8139_v23, %v8140_v10  ;;  %v8141_v17 = vld [vmem:[%s9223_s27 + $0x28] sm:$0xf]  ;;  %v3245_v23 = vsel %vm9385_vm13, %v3243_v14, %v3244_v59  ;;  %v8089_v10 = vld [vmem:[#allocation6 + $0x90] sm:$0xff]   ;;  %v3246_v4 = vrot.slane %v3244_v59, 4 }
 0x1f4   : > { %7556 = vmatprep.subr.bf16.mxu0 %v9613_v0  ;;  %v9688_v28 = vcombine.low %v9348_v3, %v9357_v22  ;;  %v9690_v58 = vcombine.low %v3235_v44, %v3238_v15  ;;  %v3249_v14 = vrot.slane %v3247_v46, 4  ;;  %v9697_v59 = vcombine.low %v9398_v20, %v9405_v30  ;;  %v8097_v15 = vld [vmem:[#allocation6 + $0xa0] sm:$0xff]  }
 0x1f5   : > { %10514 = vst [vmem:[#allocation24_spill] sm:$0xff] %v9660_v9  ;;  %v9707_v3 = vcombine.low %v9453_v21, %v9460_v26  ;;  %v9711_v22 = vcombine.low %v9477_v8, %v9487_v12  ;;  %v4160_v44 = vrot.slane %v4158_v40, 4  ;;  %v4161_v20 = vrot.slane %v9680_v50, 5  ;;  %v9723_v21 = vld [vmem:[%s9223_s27 + $0xa0] sm:$0xf] }
 0x1f6   : > { %7493 = vmatmul.mubr.bf16.gmra.mrb[16].mxu0 %v9630_v25  ;;  %7285 = vmatmul.mubr.bf16.vlgmr.msra.gmra.mrb[0].mxu1 %v6748_v6  ;;  %v8142_v6 = vld [vmem:[%s9223_s27 + $0x2c] sm:$0xf]  ;;  %10515 = vst [vmem:[#allocation25_spill] sm:$0xff] %v9690_v58  ;;  %v9716_v30 = vcombine.low %v9514_v7, %v9522_v16  ;;  %v3845_v26 = vshrl.u32 %v9723_v21, 16  ;;  %v3848_v8 = vshll.u32 %v9723_v21, 16  ;;  %v3248_v12 = vsel %vm9385_vm13, %v3246_v4, %v3247_v46 }
 0x1f7   : > { %7496 = vmatprep.mubr.bf16.mxu0 %v9644_v54  ;;  %7317 = vmatpush3.bf16.msra.mxu1 %v9447_v13  ;;  %v9670_v33 = vcombine.low %v8141_v17, %v8142_v6  ;;  %v3250_v13 = vrot.slane %v9560_v48, 5  ;;  %v9684_v17 = vcombine.low %v9336_v57, %v9342_v62  ;;  %v9693_v6 = vld [vmem:[%s9223_s27 + $0xac] sm:$0xf]  ;;  %v9701_v48 = vcombine.low %v9408_v27, %v9436_v60  ;;  %v8093_v60 = vld [vmem:[#allocation6 + $0x98] sm:$0xff]   ;;  %v8143_v4 = vld [vmem:[%s9223_s27 + $0x30] sm:$0xf] }
 0x1f8   : > { %7288 = vmatprep.mubr.bf16.mxu1 %v9649_v39  ;;  %7318 = vmatprep.subr.bf16.mxu1 %v8085_v11  ;;  %v9703_v57 = vcombine.low %v3242_v42, %v3245_v23  ;;  %v6823_v62 = vrot.slane %v2161_v49, 9  ;;  %v9720_v27 = vcombine.low %v9527_v35, %v9546_v24  ;;  %v4164_v16 = vrot.slane %v9693_v6, 5  ;;  %v8148_v39 = vld [vmem:[%s9223_s27 + $0x48] sm:$0xf] }
 0x1f9   : > { %v3251_v7 = vsel %vm9385_vm13, %v3249_v14, %v3250_v13  ;;  %v4162_v24 = vsel %vm9385_vm13, %v4160_v44, %v4161_v20  ;;  %v3847_v46 = vrot.slane %v3845_v26, 4  ;;  %v3850_v42 = vrot.slane %v3848_v8, 5  ;;  %v8144_v13 = vld [vmem:[%s9223_s27 + $0x34] sm:$0xf] }
 0x1fa   : > { %10516 = vst [vmem:[#allocation26_spill] sm:$0xff] %v9703_v57  ;;  %v4159_v35 = vsel %vm9385_vm13, %v6823_v62, %v4158_v40  ;;  %v9741_v23 = vcombine.low %v3248_v12, %v3251_v7  ;;  %v4163_v49 = vrot.slane %v4161_v20, 4  ;;  %v9745_v14 = vcombine.low %v8143_v4, %v8144_v13  ;;  %v8145_v62 = vld [vmem:[%s9223_s27 + $0x3c] sm:$0xf]  ;;  %v8101_v44 = vld [vmem:[#allocation6 + $0xa8] sm:$0xff]  }
 0x1fb   : > { %7319 = vmatpush3.bf16.msra.mxu1 %v8085_v11  ;;  %v2151_v11 = vld [vmem:[%s9223_s27 + $0xb0] sm:$0x1]  ;;  %v4166_v41 = vrot.slane %v4164_v16, 4  ;;  %v3851_v26 = vor.u32 %v3850_v42, %v3847_v46  ;;  %v3854_v8 = vshll.u32 %v9653_v19, 16  ;;  %v3864_v7 = vshll.u32 %v9680_v50, 16  ;;  %v8105_v42 = vld [vmem:[#allocation6 + $0xb0] sm:$0xff]  }
 0x1fc   : > { %7320 = vmatprep.subr.bf16.mxu1 %v8089_v10  ;;  %10517 = vst [vmem:[#allocation27_spill] sm:$0xff] %v9741_v23  ;;  %v4167_v40 = vrot.slane %v2151_v11, 5  ;;  %v4165_v20 = vsel %vm9385_vm13, %v4163_v49, %v4164_v16  ;;  %v3874_v16 = vshll.u32 %v9693_v6, 16  ;;  %v3884_v46 = vshll.u32 %v2151_v11, 16  ;;  %v8109_v11 = vld [vmem:[#allocation6 + $0xb8] sm:$0xff]  }
 0x1fd   : > { %v3866_v4 = vrot.slane %v3864_v7, 5  ;;  %v8110_v7 = vld [vmem:[#allocation6 + $0x1d8] sm:$0xff]  }
 0x1fe   : > { %7497 = vmatmul.mubr.bf16.gmra.mrb[20].mxu0 %v9690_v58  ;;  %7289 = vmatmul.mubr.bf16.gmra.mrb[4].mxu1 %v9660_v9  ;;  %v9751_v9 = vcombine.low %v8145_v62, %v8146_v32  ;;  %v4168_v12 = vsel %vm9385_vm13, %v4166_v41, %v4167_v40  ;;  %v3856_v32 = vrot.slane %v3854_v8, 5  ;;  %v3852_v41 = vrot.slane %v3851_v26, 4 }
 0x1ff   : > { %7500 = vmatprep.mubr.bf16.mxu0 %v9703_v57  ;;  %7292 = vmatprep.mubr.bf16.mxu1 %v9670_v33  ;;  %v9767_v13 = vcombine.low %v4165_v20, %v4168_v12  ;;  %v3876_v62 = vrot.slane %v3874_v16, 5  ;;  %v3886_v58 = vrot.slane %v3884_v46, 5  ;;  %v8112_v16 = vld [vmem:[#allocation6 + $0x1e0] sm:$0xff]  }
 0x200   : > { %7321 = vmatpush3.bf16.msra.mxu1 %v8089_v10  ;;  %v9747_v10 = vcombine.low %v4159_v35, %v4162_v24  ;;  %v3868_v35 = vshrl.u32 %v9680_v50, 16  ;;  %v3878_v24 = vshrl.u32 %v9693_v6, 16  ;;  %v3857_v26 = vsel %vm9247_vm10, %v3852_v41, %v3856_v32 }
 0x201   : > { %7322 = vmatprep.subr.bf16.mxu1 %v8093_v60  ;;  %v3153_v41 = vrot.slane %v9637_v29, 5  ;;  %v8118_v29 = vld [vmem:[#allocation6 + $0x1f0] sm:$0xff]  }
 0x202   : > { %10518 = vst [vmem:[#allocation28_spill] sm:$0xff] %v9747_v10  ;;  %v3870_v40 = vrot.slane %v3868_v35, 4  ;;  %v3880_v8 = vrot.slane %v3878_v24, 4  ;;  %v2153_v24 = vld [vmem:[%s9223_s27] sm:$0xe] }
 0x203   : > { %v6771_v46 = vrot.slane %v2153_v24, 9  ;;  %v9851_v24 = vld [vmem:[%s9223_s27 + $0xc0] sm:$0xf] }
 0x204   : > { %7323 = vmatpush3.bf16.msra.mxu1 %v8093_v60  ;;  %v3858_v60 = vshrl.u32 %v9653_v19, 16  ;;  %v3871_v57 = vor.u32 %v3870_v40, %v3866_v4  ;;  %v3881_v43 = vor.u32 %v3880_v8, %v3876_v62  ;;  %v8150_v8 = vld [vmem:[%s9223_s27 + $0x10] sm:$0x1] }
 0x205   : > { %7324 = vmatprep.subr.bf16.mxu1 %v8097_v15 }
 0x206   : > { %7501 = vmatmul.mubr.bf16.gmra.mrb[24].mxu0 %v9741_v23  ;;  %7293 = vmatmul.mubr.bf16.gmra.mrb[8].mxu1 %v9745_v14  ;;  %v3860_v49 = vrot.slane %v3858_v60, 4  ;;  %v3872_v20 = vrot.slane %v3871_v57, 4  ;;  %v3882_v12 = vrot.slane %v3881_v43, 4  ;;  %v9787_v43 = vld [vmem:[#allocation6 + $0xc0] sm:$0xff]  }
 0x207   : > { %7504 = vmatprep.mubr.bf16.mxu0 %v9747_v10  ;;  %7296 = vmatprep.mubr.bf16.mxu1 %v9751_v9  ;;  %v8147_v10 = vld [vmem:[%s9223_s27 + $0x44] sm:$0xf] }
 0x208   : > { %7325 = vmatpush3.bf16.msra.mxu1 %v8097_v15  ;;  %v9771_v15 = vcombine.low %v8147_v10, %v8148_v39  ;;  %v3861_v23 = vor.u32 %v3860_v49, %v3856_v32  ;;  %v8102_v32 = vld [vmem:[#allocation6 + $0x1c8] sm:$0xff]  }
 0x209   : > { %7326 = vmatprep.subr.bf16.mxu1 %v8101_v44  ;;  %v8114_v49 = vld [vmem:[#allocation6 + $0x1e8] sm:$0xff]  }
 0x20a   : > { %v3862_v60 = vrot.slane %v3861_v23, 4  ;;  %v3887_v23 = vsel %vm9247_vm10, %v3882_v12, %v3886_v58  ;;  %v8106_v58 = vld [vmem:[#allocation6 + $0x1d0] sm:$0xff]   ;;  %v8122_v12 = vld [vmem:[#allocation6 + $0x1f8] sm:$0xff]  }
 0x20c   : > { %7327 = vmatpush3.bf16.msra.mxu1 %v8101_v44  ;;  %v3867_v39 = vsel %vm9247_vm10, %v3862_v60, %v3866_v4  ;;  %v3877_v44 = vsel %vm9247_vm10, %v3872_v20, %v3876_v62  ;;  %v3156_v4 = vrot.slane %v9640_v5, 5 }
 0x20d   : > { %7328 = vmatprep.subr.bf16.mxu1 %v8105_v42  ;;  %v9781_v10 = vcombine.low %v3857_v26, %v3867_v39  ;;  %v9789_v57 = vcombine.low %v3877_v44, %v3887_v23  ;;  %v3155_v26 = vrot.slane %v3153_v41, 4  ;;  %v8124_v44 = vld [vmem:[#allocation6 + $0x200] sm:$0xff]  }
 0x20e   : > { %7505 = vmatmul.mubr.bf16.gmra.mrb[28].mxu0 %v9767_v13  ;;  %7297 = vmatmul.mubr.bf16.gmra.mrb[12].mxu1 %v9771_v15  ;;  %v3158_v20 = vrot.slane %v3156_v4, 4 }
 0x20f   : > { %7524 = vmatprep.mubr.bf16.mxu0 %v9670_v33  ;;  %7300 = vmatprep.mubr.bf16.mxu1 %v9684_v17  ;;  %v3157_v5 = vsel %vm9385_vm13, %v3155_v26, %v3156_v4  ;;  %v8132_v4 = vld [vmem:[#allocation6 + $0x228] sm:$0xff]  }
 0x210   : > { %7329 = vmatpush3.bf16.msra.mxu1 %v8105_v42 }
 0x211   : > { %7330 = vmatprep.subr.bf16.mxu1 %v8109_v11 }
 0x214   : > { %7331 = vmatpush3.bf16.msra.mxu1 %v8109_v11  ;;  %v3159_v11 = vrot.slane %v8150_v8, 5  ;;  %v10523_v8 = vld [vmem:[#allocation27_spill] sm:$0xff] }
 0x215   : > { %7364 = vmatprep.subr.bf16.mxu1 %v9787_v43 }
 0x216   : > { %7525 = vmatmul.mubr.bf16.vlgmr.msra.gmra.mrb[0].mxu0 %v9745_v14  ;;  %7301 = vmatmul.mubr.bf16.gmra.mrb[16].mxu1 %v9688_v28  ;;  %v3160_v39 = vsel %vm9385_vm13, %v3158_v20, %v3159_v11  ;;  %v10524_v11 = vld [vmem:[#allocation19_spill] sm:$0xff] }
 0x217   : > { %7557 = vmatpush3.bf16.msra.mxu0 %v9613_v0  ;;  %7304 = vmatprep.mubr.bf16.mxu1 %v9697_v59  ;;  %v8149_v0 = vld [vmem:[%s9223_s27 + $0x4] sm:$0xf]  ;;  %v6780_v23 = vcombine.low %v3157_v5, %v3160_v39  ;;  %v10525_v20 = vld [vmem:[#allocation23_spill] sm:$0xff] }
 0x218   : > { %7528 = vmatprep.mubr.bf16.mxu0 %v9751_v9  ;;  %7558 = vmatprep.subr.bf16.mxu0 %v8102_v32  ;;  %v3150_v35 = vrot.slane %v8149_v0, 5  ;;  %v8120_v0 = vld [vmem:[#allocation6 + $0xd8] sm:$0xff]  }
 0x21a   : > { %v3152_v42 = vrot.slane %v3150_v35, 4  ;;  %v3151_v40 = vsel %vm9385_vm13, %v6771_v46, %v3150_v35  ;;  %v8125_v35 = vld [vmem:[#allocation6 + $0xe8] sm:$0xff]   ;;  %v8129_v46 = vld [vmem:[#allocation6 + $0xf8] sm:$0xff]  }
 0x21b   : > { %7559 = vmatpush3.bf16.msra.mxu0 %v8102_v32  ;;  %v8113_v32 = vld [vmem:[#allocation6 + $0xc8] sm:$0xff]  }
 0x21c   : > { %7560 = vmatprep.subr.bf16.mxu0 %v8106_v58  ;;  %v3154_v62 = vsel %vm9385_vm13, %v3152_v42, %v3153_v41  ;;  %v8126_v42 = vld [vmem:[#allocation6 + $0x208] sm:$0xff]   ;;  %v8151_v41 = vld [vmem:[#allocation6 + $0x100] sm:$0xff]  }
 0x21d   : > { %v6779_v60 = vcombine.low %v3151_v40, %v3154_v62  ;;  %v10520_v40 = vld [vmem:[#allocation17_spill] sm:$0xff]  ;;  %v10521_v62 = vld [vmem:[#allocation26_spill] sm:$0xff] }
 0x21e   : > { %7529 = vmatmul.mubr.bf16.gmra.mrb[4].mxu0 %v9771_v15  ;;  %7305 = vmatmul.mubr.bf16.gmra.mrb[20].mxu1 %v9701_v48 }
 0x21f   : > { %7532 = vmatprep.mubr.bf16.mxu0 %v9684_v17  ;;  %7308 = vmatprep.mubr.bf16.mxu1 %v9707_v3 }
 0x220   : > { %7561 = vmatpush3.bf16.msra.mxu0 %v8106_v58  ;;  %v8116_v58 = vld [vmem:[#allocation6 + $0xd0] sm:$0xff]  }
 0x221   : > { %7562 = vmatprep.subr.bf16.mxu0 %v8110_v7 }
 0x224   : > { %7563 = vmatpush3.bf16.msra.mxu0 %v8110_v7  ;;  %v9827_v7 = vcombine.low %v9723_v21, %v9653_v19  ;;  %v8123_v19 = vld [vmem:[#allocation6 + $0xe0] sm:$0xff]   ;;  %v9841_v21 = vcombine.low %v9680_v50, %v9693_v6  ;;  %v8127_v50 = vld [vmem:[#allocation6 + $0xf0] sm:$0xff]  }
 0x225   : > { %7564 = vmatprep.subr.bf16.mxu0 %v8112_v16 }
 0x226   : > { %7533 = vmatmul.mubr.bf16.gmra.mrb[8].mxu0 %v9688_v28  ;;  %7309 = vmatmul.mubr.bf16.gmra.mrb[24].mxu1 %v9711_v22 }
 0x227   : > { %7536 = vmatprep.mubr.bf16.mxu0 %v9697_v59  ;;  %7312 = vmatprep.mubr.bf16.mxu1 %v9716_v30 }
 0x228   : > { %7565 = vmatpush3.bf16.msra.mxu0 %v8112_v16  ;;  %v9848_v16 = vld [vmem:[%s9223_s27 + $0xbc] sm:$0xf] }
 0x229   : > { %7566 = vmatprep.subr.bf16.mxu0 %v8114_v49  ;;  %v6835_v6 = vcombine.low %v9848_v16, %v9851_v24 }
 0x22c   : > { %7567 = vmatpush3.bf16.msra.mxu0 %v8114_v49  ;;  %v8128_v49 = vld [vmem:[#allocation6 + $0x210] sm:$0xff]  }
 0x22d   : > { %7568 = vmatprep.subr.bf16.mxu0 %v8118_v29 }
 0x22e   : > { %7537 = vmatmul.mubr.bf16.gmra.mrb[12].mxu0 %v9701_v48  ;;  %7313 = vmatmul.mubr.bf16.gmra.mrb[28].mxu1 %v9720_v27 }
 0x22f   : > { %7540 = vmatprep.mubr.bf16.mxu0 %v9707_v3  ;;  %7332 = vmatprep.mubr.bf16.mxu1 %v6779_v60 }
 0x230   : > { %7569 = vmatpush3.bf16.msra.mxu0 %v8118_v29  ;;  %v10522_v29 = vld [vmem:[#allocation18_spill] sm:$0xff] }
 0x231   : > { %7570 = vmatprep.subr.bf16.mxu0 %v8122_v12 }
 0x234   : > { %7571 = vmatpush3.bf16.msra.mxu0 %v8122_v12 }
 0x235   : > { %7604 = vmatprep.subr.bf16.mxu0 %v8124_v44 }
 0x236   : > { %7541 = vmatmul.mubr.bf16.gmra.mrb[16].mxu0 %v9711_v22  ;;  %7333 = vmatmul.mubr.bf16.vlgmr.msra.gmra.mrb[0].mxu1 %v6780_v23 }
 0x237   : > { %7544 = vmatprep.mubr.bf16.mxu0 %v9716_v30  ;;  %7365 = vmatpush3.bf16.msra.mxu1 %v9787_v43  ;;  %v9837_v43 = vld [vmem:[%s9223_s27 + $0xb8] sm:$0xf] }
 0x238   : > { %7336 = vmatprep.mubr.bf16.mxu1 %v9423_v31  ;;  %7366 = vmatprep.subr.bf16.mxu1 %v8113_v32  ;;  %v9834_v31 = vld [vmem:[%s9223_s27 + $0xb4] sm:$0xf]  ;;  %v4719_v60 = vshrl.u32 %v9837_v43, 16  ;;  %v4715_v12 = vshll.u32 %v9837_v43, 16  ;;  %v5019_v55 = vrot.slane %v9837_v43, 5 }
 0x239   : > { %v4709_v26 = vshll.u32 %v9834_v31, 16 }
 0x23a   : > { %v4721_v23 = vrot.slane %v4719_v60, 4 }
 0x23b   : > { %7367 = vmatpush3.bf16.msra.mxu1 %v8113_v32  ;;  %v4711_v39 = vrot.slane %v4709_v26, 5  ;;  %v10526_v32 = vld [vmem:[#allocation20_spill] sm:$0xff]  ;;  %v10529_v26 = vld [vmem:[#allocation22_spill] sm:$0xff] }
 0x23c   : > { %7368 = vmatprep.subr.bf16.mxu1 %v8116_v58 }
 0x23e   : > { %7545 = vmatmul.mubr.bf16.gmra.mrb[20].mxu0 %v9720_v27  ;;  %7337 = vmatmul.mubr.bf16.gmra.mrb[4].mxu1 %v9438_v1  ;;  %v6834_v1 = vcombine.low %v9834_v31, %v9837_v43 }
 0x23f   : > { %7548 = vmatprep.mubr.bf16.mxu0 %v9827_v7  ;;  %7340 = vmatprep.mubr.bf16.mxu1 %v9469_v52 }
 0x240   : > { %7369 = vmatpush3.bf16.msra.mxu1 %v8116_v58  ;;  %v4729_v58 = vshrl.u32 %v9848_v16, 16 }
 0x241   : > { %7370 = vmatprep.subr.bf16.mxu1 %v8120_v0 }
 0x244   : > { %7371 = vmatpush3.bf16.msra.mxu1 %v8120_v0  ;;  %v4739_v0 = vshrl.u32 %v9851_v24, 16 }
 0x245   : > { %7372 = vmatprep.subr.bf16.mxu1 %v8123_v19 }
 0x246   : > { %7549 = vmatmul.mubr.bf16.gmra.mrb[24].mxu0 %v9841_v21  ;;  %7341 = vmatmul.mubr.bf16.gmra.mrb[8].mxu1 %v9505_v45 }
 0x247   : > { %7552 = vmatprep.mubr.bf16.mxu0 %v6834_v1  ;;  %7344 = vmatprep.mubr.bf16.mxu1 %v9530_v18  ;;  %v4725_v1 = vshll.u32 %v9848_v16, 16 }
 0x248   : > { %7373 = vmatpush3.bf16.msra.mxu1 %v8123_v19  ;;  %v10528_v19 = vld [vmem:[#allocation21_spill] sm:$0xff] }
 0x249   : > { %7374 = vmatprep.subr.bf16.mxu1 %v8125_v35 }
 0x24c   : > { %7375 = vmatpush3.bf16.msra.mxu1 %v8125_v35  ;;  %v4735_v35 = vshll.u32 %v9851_v24, 16 }
 0x24d   : > { %7376 = vmatprep.subr.bf16.mxu1 %v8127_v50 }
 0x24e   : > { %7553 = vmatmul.mubr.bf16.gmra.mrb[28].mxu0 %v6835_v6  ;;  %7345 = vmatmul.mubr.bf16.gmra.mrb[12].mxu1 %v9562_v51 }
 0x24f   : > { %7572 = vmatprep.mubr.bf16.mxu0 %v9323_v38  ;;  %7348 = vmatprep.mubr.bf16.mxu1 %v9582_v61  ;;  %v8130_v38 = vld [vmem:[#allocation6 + $0x218] sm:$0xff]  }
 0x250   : > { %7377 = vmatpush3.bf16.msra.mxu1 %v8127_v50 }
 0x251   : > { %7378 = vmatprep.subr.bf16.mxu1 %v8129_v46 }
 0x254   : > { %7379 = vmatpush3.bf16.msra.mxu1 %v8129_v46  ;;  %v8152_v46 = vld [vmem:[#allocation6 + $0x108] sm:$0xff]  }
 0x255   : > { %7652 = vmatprep.subr.bf16.mxu1 %v8151_v41 }
 0x256   : > { %7573 = vmatmul.mubr.bf16.vlgmr.msra.gmra.mrb[0].mxu0 %v9344_v63  ;;  %7349 = vmatmul.mubr.bf16.gmra.mrb[16].mxu1 %v9602_v53  ;;  %v8131_v63 = vld [vmem:[#allocation6 + $0x220] sm:$0xff]  }
 0x257   : > { %7605 = vmatpush3.bf16.msra.mxu0 %v8124_v44  ;;  %7352 = vmatprep.mubr.bf16.mxu1 %v9616_v37  ;;  %v4717_v44 = vrot.slane %v4715_v12, 5 }
 0x258   : > { %7576 = vmatprep.mubr.bf16.mxu0 %v9366_v34  ;;  %7606 = vmatprep.subr.bf16.mxu0 %v8126_v42  ;;  %v10519_v34 = vld [vmem:[#allocation25_spill] sm:$0xff] }
 0x259   : > { %v4722_v6 = vor.u32 %v4721_v23, %v4717_v44 }
 0x25b   : > { %7607 = vmatpush3.bf16.msra.mxu0 %v8126_v42  ;;  %v4727_v42 = vrot.slane %v4725_v1, 5 }
 0x25c   : > { %7608 = vmatprep.subr.bf16.mxu0 %v8128_v49 }
 0x25e   : > { %7577 = vmatmul.mubr.bf16.gmra.mrb[4].mxu0 %v9380_v56  ;;  %7353 = vmatmul.mubr.bf16.gmra.mrb[20].mxu1 %v9630_v25  ;;  %v8133_v56 = vld [vmem:[#allocation6 + $0x230] sm:$0xff]  }
 0x25f   : > { %7580 = vmatprep.mubr.bf16.mxu0 %v9410_v36  ;;  %7356 = vmatprep.mubr.bf16.mxu1 %v9644_v54  ;;  %v8134_v36 = vld [vmem:[#allocation6 + $0x238] sm:$0xff]  }
 0x260   : > { %7609 = vmatpush3.bf16.msra.mxu0 %v8128_v49  ;;  %v4731_v49 = vrot.slane %v4729_v58, 4 }
 0x261   : > { %7610 = vmatprep.subr.bf16.mxu0 %v8130_v38 }
 0x264   : > { %7611 = vmatpush3.bf16.msra.mxu0 %v8130_v38  ;;  %v4737_v38 = vrot.slane %v4735_v35, 5  ;;  %v8157_v35 = vld [vmem:[#allocation6 + $0x130] sm:$0xff]  }
 0x265   : > { %7612 = vmatprep.subr.bf16.mxu0 %v8131_v63 }
 0x266   : > { %7581 = vmatmul.mubr.bf16.gmra.mrb[8].mxu0 %v9428_v47  ;;  %7357 = vmatmul.mubr.bf16.gmra.mrb[24].mxu1 %v10519_v34  ;;  %v4706_v47 = vshrl.u32 %v9834_v31, 16  ;;  %v10527_v31 = vld [vmem:[#allocation24_spill] sm:$0xff] }
 0x267   : > { %7584 = vmatprep.mubr.bf16.mxu0 %v10520_v40  ;;  %7360 = vmatprep.mubr.bf16.mxu1 %v10521_v62 }
 0x268   : > { %7613 = vmatpush3.bf16.msra.mxu0 %v8131_v63  ;;  %v4708_v5 = vrot.slane %v4706_v47, 4  ;;  %v4741_v63 = vrot.slane %v4739_v0, 4  ;;  %v8153_v47 = vld [vmem:[#allocation6 + $0x110] sm:$0xff]   ;;  %v8155_v0 = vld [vmem:[#allocation6 + $0x120] sm:$0xff]  }
 0x269   : > { %7614 = vmatprep.subr.bf16.mxu0 %v8132_v4 }
 0x26a   : > { %v4712_v50 = vor.u32 %v4711_v39, %v4708_v5  ;;  %v8154_v5 = vld [vmem:[#allocation6 + $0x118] sm:$0xff]  }
 0x26c   : > { %7615 = vmatpush3.bf16.msra.mxu0 %v8132_v4  ;;  %v4713_v4 = vrot.slane %v4712_v50, 4 }
 0x26d   : > { %7616 = vmatprep.subr.bf16.mxu0 %v8133_v56 }
 0x26e   : > { %7585 = vmatmul.mubr.bf16.gmra.mrb[12].mxu0 %v10522_v29  ;;  %7361 = vmatmul.mubr.bf16.gmra.mrb[28].mxu1 %v10523_v8 }
 0x26f   : > { %7588 = vmatprep.mubr.bf16.mxu0 %v10524_v11  ;;  %7380 = vmatprep.mubr.bf16.mxu1 %v10525_v20  ;;  %v4718_v20 = vsel %vm9247_vm10, %v4713_v4, %v4717_v44  ;;  %v5403_v4 = vlaneseq }
 0x270   : > { %7617 = vmatpush3.bf16.msra.mxu0 %v8133_v56  ;;  %v4723_v56 = vrot.slane %v4722_v6, 4 }
 0x271   : > { %7618 = vmatprep.subr.bf16.mxu0 %v8134_v36 }
 0x272   : > { %v4728_v12 = vsel %vm9247_vm10, %v4723_v56, %v4727_v42  ;;  %v9965_v56 = vld [vmem:[%s10441_s2] ss:$0 sm:$0xff] }
 0x273   : > { %v6844_v39 = vcombine.low %v4718_v20, %v4728_v12 }
 0x274   : > { %7619 = vmatpush3.bf16.msra.mxu0 %v8134_v36  ;;  %v9888_v36 = vld [vmem:[%s9223_s27 + $0xc4] sm:$0x1] }
 0x275   : > { %v4745_v60 = vshll.u32 %v9888_v36, 16 }
 0x276   : > { %7589 = vmatmul.mubr.bf16.gmra.mrb[16].mxu0 %v10526_v32  ;;  %7381 = vmatmul.mubr.bf16.vlgmr.msra.gmra.mrb[0].mxu1 %v10527_v31  ;;  %v8156_v31 = vld [vmem:[#allocation6 + $0x128] sm:$0xff]  }
 0x277   : > { %7592 = vmatprep.mubr.bf16.mxu0 %v10528_v19  ;;  %7660 = vmatpush3.bf16.msra.mxu1 %v8151_v41  ;;  %v4742_v41 = vor.u32 %v4741_v63, %v4737_v38  ;;  %v4747_v58 = vrot.slane %v4745_v60, 5 }
 0x278   : > { %7384 = vmatprep.mubr.bf16.mxu1 %v9670_v33  ;;  %7653 = vmatprep.subr.bf16.mxu1 %v8152_v46  ;;  %v4732_v33 = vor.u32 %v4731_v49, %v4727_v42 }
 0x27a   : > { %v4733_v23 = vrot.slane %v4732_v33, 4 }
 0x27b   : > { %7661 = vmatpush3.bf16.msra.mxu1 %v8152_v46 }
 0x27c   : > { %7654 = vmatprep.subr.bf16.mxu1 %v8153_v47 }
 0x27e   : > { %7593 = vmatmul.mubr.bf16.gmra.mrb[20].mxu0 %v10529_v26  ;;  %7385 = vmatmul.mubr.bf16.gmra.mrb[4].mxu1 %v9745_v14  ;;  %v4743_v14 = vrot.slane %v4742_v41, 4  ;;  %v5404_v41 = vshrl.u32 %v5403_v4, 7 }
 0x27f   : > { %7596 = vmatprep.mubr.bf16.mxu0 %v9781_v10  ;;  %7388 = vmatprep.mubr.bf16.mxu1 %v9751_v9  ;;  %v4738_v9 = vsel %vm9247_vm10, %v4733_v23, %v4737_v38  ;;  %v8351_v38 = vmov 1983009808  }
 0x280   : > { %7662 = vmatpush3.bf16.msra.mxu1 %v8153_v47  ;;  %v4748_v44 = vsel %vm9247_vm10, %v4743_v14, %v4747_v58  ;;  %v5401_v63 = vunpack.c.l.s4 %v8351_v38 }
 0x281   : > { %7655 = vmatprep.subr.bf16.mxu1 %v8154_v5  ;;  %v6845_v1 = vcombine.low %v4738_v9, %v4748_v44 }
 0x282   : > { %v5402_v33 = vunpack.c.0.s8 %v5401_v63 }
 0x284   : > { %7663 = vmatpush3.bf16.msra.mxu1 %v8154_v5 }
 0x285   : > { %7656 = vmatprep.subr.bf16.mxu1 %v8155_v0 }
 0x286   : > { %7597 = vmatmul.mubr.bf16.gmra.mrb[24].mxu0 %v9789_v57  ;;  %7389 = vmatmul.mubr.bf16.gmra.mrb[8].mxu1 %v9771_v15  ;;  %v8158_v15 = vld [vmem:[#allocation6 + $0x138] sm:$0xff]  }
 0x287   : > { %7600 = vmatprep.mubr.bf16.mxu0 %v6844_v39  ;;  %7392 = vmatprep.mubr.bf16.mxu1 %v9684_v17 }
 0x288   : > { %7664 = vmatpush3.bf16.msra.mxu1 %v8155_v0 }
 0x289   : > { %7657 = vmatprep.subr.bf16.mxu1 %v8156_v31 }
 0x28c   : > { %7665 = vmatpush3.bf16.msra.mxu1 %v8156_v31 }
 0x28d   : > { %7658 = vmatprep.subr.bf16.mxu1 %v8157_v35 }
 0x28e   : > { %7601 = vmatmul.mubr.bf16.gmra.mrb[28].mxu0 %v6845_v1  ;;  %7393 = vmatmul.mubr.bf16.gmra.mrb[12].mxu1 %v9688_v28 }
 0x28f   : > { %7620 = vmatprep.mubr.bf16.mxu0 %v9469_v52  ;;  %7396 = vmatprep.mubr.bf16.mxu1 %v9697_v59  ;;  %v2162_v52 = vld [vmem:[%s9223_s27 + $0xb4] sm:$0xe]  ;;  %v5028_v59 = vrot.slane %v9888_v36, 5  ;;  %s8224_s27 = scalar_lea.vmem %s8223_s25, 1024 }
 0x290   : > { %7666 = vmatpush3.bf16.msra.mxu1 %v8157_v35  ;;  %v9973_v35 = vsub.s32 %v5402_v33, %v5404_v41  ;;  %p8226_p2 = scmp.lt.s32.totalorder %s8224_s27, %s8218_s5 }
 0x291   : > { %7659 = vmatprep.subr.bf16.mxu1 %v8158_v15 }
 0x292   : > { %p8227_p5 = por %p8226_p2, %p8225_p0 }
 0x294   : > { %7667 = vmatpush3.bf16.msra.mxu1 %v8158_v15  ;;  %p8228_p8 = pnand %p8227_p5, %p8221_p13 }
 0x296   : > { %7621 = vmatmul.mubr.bf16.vlgmr.msra.gmra.mrb[0].mxu0 %v9505_v45  ;;  %7397 = vmatmul.mubr.bf16.gmra.mrb[16].mxu1 %v9701_v48  ;;  %v6854_v45 = vrot.slane %v2162_v52, 9 }
 0x297   : > { %7624 = vmatprep.mubr.bf16.mxu0 %v9530_v18  ;;  %7400 = vmatprep.mubr.bf16.mxu1 %v9707_v3  ;;  %v5021_v18 = vrot.slane %v5019_v55, 4 }
 0x29e   : > { %7625 = vmatmul.mubr.bf16.gmra.mrb[4].mxu0 %v9562_v51  ;;  %7401 = vmatmul.mubr.bf16.gmra.mrb[20].mxu1 %v9711_v22  ;;  %v5022_v51 = vrot.slane %v9848_v16, 5 }
 0x29f   : > { %7628 = vmatprep.mubr.bf16.mxu0 %v9582_v61  ;;  %7404 = vmatprep.mubr.bf16.mxu1 %v9716_v30  ;;  %v10530_v61 = vld [vmem:[#allocation28_spill] sm:$0xff] }
 0x2a0   : > { %v5024_v17 = vrot.slane %v5022_v51, 4 }
 0x2a6   : > { %7629 = vmatmul.mubr.bf16.gmra.mrb[8].mxu0 %v9602_v53  ;;  %7405 = vmatmul.mubr.bf16.gmra.mrb[24].mxu1 %v9720_v27  ;;  %v5025_v53 = vrot.slane %v9851_v24, 5 }
 0x2a7   : > { %7632 = vmatprep.mubr.bf16.mxu0 %v9616_v37  ;;  %7408 = vmatprep.mubr.bf16.mxu1 %v9827_v7  ;;  %v5020_v37 = vsel %vm9385_vm13, %v6854_v45, %v5019_v55 }
 0x2a8   : > { %v5027_v28 = vrot.slane %v5025_v53, 4  ;;  %v5026_v48 = vsel %vm9385_vm13, %v5024_v17, %v5025_v53 }
 0x2aa   : > { %v5029_v3 = vsel %vm9385_vm13, %v5027_v28, %v5028_v59 }
 0x2ab   : > { %v6856_v22 = vcombine.low %v5026_v48, %v5029_v3 }
 0x2ae   : > { %7633 = vmatmul.mubr.bf16.gmra.mrb[12].mxu0 %v9630_v25  ;;  %7409 = vmatmul.mubr.bf16.gmra.mrb[28].mxu1 %v9841_v21  ;;  %v5023_v25 = vsel %vm9385_vm13, %v5021_v18, %v5022_v51 }
 0x2af   : > { %7636 = vmatprep.mubr.bf16.mxu0 %v9644_v54  ;;  %7444 = vmatprep.mubr.bf16.mxu1 %v10520_v40  ;;  %v6855_v54 = vcombine.low %v5020_v37, %v5023_v25 }
 0x2b6   : > { %7637 = vmatmul.mubr.bf16.gmra.mrb[16].mxu0 %v10519_v34  ;;  %7445 = vmatmul.mubr.bf16.vlgmr.msra.gmra.mrb[16].mxu1 %v10522_v29 }
 0x2b7   : > { %7640 = vmatprep.mubr.bf16.mxu0 %v10521_v62  ;;  %7448 = vmatprep.mubr.bf16.mxu1 %v10524_v11 }
 0x2be   : > { %7641 = vmatmul.mubr.bf16.gmra.mrb[20].mxu0 %v10523_v8  ;;  %7449 = vmatmul.mubr.bf16.gmra.mrb[20].mxu1 %v10526_v32 }
 0x2bf   : > { %7644 = vmatprep.mubr.bf16.mxu0 %v10530_v61  ;;  %7452 = vmatprep.mubr.bf16.mxu1 %v10528_v19 }
 0x2c6   : > { %7645 = vmatmul.mubr.bf16.gmra.mrb[24].mxu0 %v9767_v13  ;;  %7453 = vmatmul.mubr.bf16.gmra.mrb[24].mxu1 %v10529_v26 }
 0x2c7   : > { %7648 = vmatprep.mubr.bf16.mxu0 %v6855_v54  ;;  %7456 = vmatprep.mubr.bf16.mxu1 %v9781_v10 }
 0x2ce   : > { %7649 = vmatmul.mubr.bf16.gmra.mrb[28].mxu0 %v6856_v22  ;;  %7457 = vmatmul.mubr.bf16.gmra.mrb[28].mxu1 %v9789_v57 }
 0x349   : > { %v7382_v30 = vpop.f32.mrb[0].mxu1 }
 0x34a   : > { %v3685_v27 = vpop.f32.mrb[1].mxu1 }
 0x34b   : > { %v7383_v7 = vpop.f32.mrb[2].mxu1 }
 0x34c   : > { %v3688_v43 = vpop.f32.mrb[3].mxu1 }
 0x351   : > { %v7386_v13 = vpop.f32.mrb[4].mxu1 }
 0x352   : > { %v3701_v21 = vpop.f32.mrb[5].mxu1 }
 0x353   : > { %v7387_v16 = vpop.f32.mrb[6].mxu1 }
 0x354   : > { %v3704_v24 = vpop.f32.mrb[7].mxu1 }
 0x359   : > { %v7390_v34 = vpop.f32.mrb[8].mxu1 }
 0x35a   : > { %v3717_v40 = vpop.f32.mrb[9].mxu1 }
 0x35b   : > { %v9950_v62 = vpop.f32.mrb[10].mxu1 }
 0x35c   : > { %v9952_v2 = vpop.f32.mrb[11].mxu1 }
 0x361   : > { %v9954_v29 = vpop.f32.mrb[12].mxu1 }
 0x362   : > { %v9956_v10 = vpop.f32.mrb[13].mxu1 }
 0x363   : > { %v9958_v8 = vpop.f32.mrb[14].mxu1 }
 0x364   : > { %v9960_v57 = vpop.f32.mrb[15].mxu1 }
 0x369   : > { %v7622_v11 = vpop.f32.mrb[0].mxu0 }
 0x36a   : > { %v7668_v32 = vadd.f32 %v7622_v11, %v7382_v30  ;;  %v5137_v19 = vpop.f32.mrb[1].mxu0 }
 0x36b   : > { %v7669_v50 = vadd.f32 %v5137_v19, %v3685_v27  ;;  %v7623_v6 = vpop.f32.mrb[2].mxu0 }
 0x36c   : > { %v7670_v46 = vadd.f32 %v7623_v6, %v7383_v7  ;;  %v5140_v42 = vpop.f32.mrb[3].mxu0  ;;  %v5305_v47 = vadd.f32 %v7668_v32, %v9965_v56 }
 0x36d   : > { %v7671_v49 = vadd.f32 %v5140_v42, %v3688_v43  ;;  %v5303_v20 = vadd.f32 %v7669_v50, %v9965_v56 }
 0x36e   : > { %v5306_v39 = vadd.f32 %v7670_v46, %v9965_v56  ;;  %v5337_v31 = vmax.f32 %v5305_v47, 0.0 }
 0x36f   : > { %v5304_v0 = vadd.f32 %v7671_v49, %v9965_v56  ;;  %v5335_v55 = vmax.f32 %v5303_v20, 0.0 }
 0x370   : > { %v5338_v18 = vmax.f32 %v5306_v39, 0.0 }
 0x371   : > { %v7626_v36 = vpop.f32.mrb[4].mxu0  ;;  %v5336_v53 = vmax.f32 %v5304_v0, 0.0 }
 0x372   : > { %v7672_v26 = vadd.f32 %v7626_v36, %v7386_v13  ;;  %v5153_v60 = vpop.f32.mrb[5].mxu0 }
 0x373   : > { %v7673_v12 = vadd.f32 %v5153_v60, %v3701_v21  ;;  %v7627_v5 = vpop.f32.mrb[6].mxu0 }
 0x374   : > { %v5309_v23 = vadd.f32 %v7672_v26, %v9965_v56  ;;  %v7674_v14 = vadd.f32 %v7627_v5, %v7387_v16  ;;  %v5156_v58 = vpop.f32.mrb[7].mxu0 }
 0x375   : > { %v5307_v9 = vadd.f32 %v7673_v12, %v9965_v56  ;;  %v7675_v44 = vadd.f32 %v5156_v58, %v3704_v24 }
 0x376   : > { %v5341_v1 = vmax.f32 %v5309_v23, 0.0  ;;  %v5310_v15 = vadd.f32 %v7674_v14, %v9965_v56 }
 0x377   : > { %v5339_v52 = vmax.f32 %v5307_v9, 0.0  ;;  %v5308_v45 = vadd.f32 %v7675_v44, %v9965_v56 }
 0x378   : > { %v5369_v51 = vmax.f32 %v5337_v31, %v5341_v1  ;;  %v5342_v61 = vmax.f32 %v5310_v15, 0.0 }
 0x379   : > { %v5367_v37 = vmax.f32 %v5335_v55, %v5339_v52  ;;  %v5340_v25 = vmax.f32 %v5308_v45, 0.0  ;;  %v7630_v54 = vpop.f32.mrb[8].mxu0 }
 0x37a   : > { %v5433_v17 = vcombine.high %v5369_v51, %v5369_v51  ;;  %v5440_v28 = vrot.slane %v5369_v51, %v9973_v35  ;;  %v9978_v59 = vmax.f32 %v5338_v18, %v5342_v61  ;;  %v9980_v48 = vadd.f32 %v7630_v54, %v7390_v34  ;;  %v5169_v3 = vpop.f32.mrb[9].mxu0 }
 0x37b   : > { %v5399_v22 = vcombine.high %v5367_v37, %v5367_v37  ;;  %v5406_v30 = vrot.slane %v5367_v37, %v9973_v35  ;;  %v9983_v27 = vmax.f32 %v5336_v53, %v5340_v25  ;;  %v9985_v7 = vadd.f32 %v5169_v3, %v3717_v40  ;;  %v9987_v43 = vpop.f32.mrb[10].mxu0 }
 0x37c   : > { %v5447_v13 = vrot.slane %v5433_v17, %v9973_v35  ;;  %v5448_v21 = vcombine.high %v5440_v28, %v5440_v28  ;;  %v5792_v16 = vsel %vm5735_vm14, %v5440_v28, -inf  ;;  %v5450_v24 = vcombine.high %v9978_v59, %v9978_v59  ;;  %v9993_v34 = vpop.f32.mrb[11].mxu0 }
 0x37d   : > { %v5793_v11 = vrot.slane %v5792_v16, 4  ;;  %v5413_v32 = vrot.slane %v5399_v22, %v9973_v35  ;;  %v5414_v19 = vcombine.high %v5406_v30, %v5406_v30  ;;  %v5736_v50 = vsel %vm5735_vm14, %v5406_v30, -inf }
 0x37e   : > { %v5449_v40 = vcombine.high %v5447_v13, %v5447_v13  ;;  %v5799_v6 = vsel %vm5735_vm14, %v5448_v21, -inf  ;;  %v5806_v46 = vsel %vm5735_vm14, %v5447_v13, -inf  ;;  %v5737_v42 = vrot.slane %v5736_v50, 4 }
 0x37f   : > { %v5794_v49 = vmax.f32 %v5792_v16, %v5793_v11  ;;  %v5800_v38 = vrot.slane %v5799_v6, 4  ;;  %v5807_v63 = vrot.slane %v5806_v46, 4  ;;  %v5415_v4 = vcombine.high %v5413_v32, %v5413_v32 }
 0x380   : > { %v5813_v36 = vsel %vm5735_vm14, %v5449_v40, -inf  ;;  %v5738_v47 = vmax.f32 %v5736_v50, %v5737_v42  ;;  %v5743_v26 = vsel %vm5735_vm14, %v5414_v19, -inf  ;;  %v5750_v33 = vsel %vm5735_vm14, %v5413_v32, -inf }
 0x381   : > { %v5795_v41 = vrot.slane %v5794_v49, 2  ;;  %v5801_v60 = vmax.f32 %v5799_v6, %v5800_v38  ;;  %v5808_v20 = vmax.f32 %v5806_v46, %v5807_v63  ;;  %v5814_v12 = vrot.slane %v5813_v36, 4  ;;  %v10002_v5 = vpop.f32.mrb[12].mxu0 }
 0x382   : > { %v5739_v39 = vrot.slane %v5738_v47, 2  ;;  %v5744_v23 = vrot.slane %v5743_v26, 4  ;;  %v5751_v14 = vrot.slane %v5750_v33, 4  ;;  %v5757_v58 = vsel %vm5735_vm14, %v5415_v4, -inf  ;;  %v10005_v0 = vpop.f32.mrb[13].mxu0 }
 0x383   : > { %v5796_v9 = vmax.f32 %v5794_v49, %v5795_v41  ;;  %v5802_v44 = vrot.slane %v5801_v60, 2  ;;  %v5809_v31 = vrot.slane %v5808_v20, 2  ;;  %v5815_v1 = vmax.f32 %v5813_v36, %v5814_v12  ;;  %v10007_v15 = vpop.f32.mrb[14].mxu0 }
 0x384   : > { %v5740_v55 = vmax.f32 %v5738_v47, %v5739_v39  ;;  %v5745_v52 = vmax.f32 %v5743_v26, %v5744_v23  ;;  %v5752_v45 = vmax.f32 %v5750_v33, %v5751_v14  ;;  %v5758_v18 = vrot.slane %v5757_v58, 4  ;;  %v10009_v51 = vpop.f32.mrb[15].mxu0 }
 0x385   : > { %v5797_v61 = vrot.slane %v5796_v9, 1  ;;  %v5803_v53 = vmax.f32 %v5801_v60, %v5802_v44  ;;  %v5810_v37 = vmax.f32 %v5808_v20, %v5809_v31  ;;  %v5816_v25 = vrot.slane %v5815_v1, 2 }
 0x386   : > { %v5741_v54 = vrot.slane %v5740_v55, 1  ;;  %v5746_v17 = vrot.slane %v5745_v52, 2  ;;  %v5753_v28 = vrot.slane %v5752_v45, 2  ;;  %v5759_v3 = vmax.f32 %v5757_v58, %v5758_v18 }
 0x387   : > { %v5798_v22 = vmax.f32 %v5796_v9, %v5797_v61  ;;  %v5804_v30 = vrot.slane %v5803_v53, 1  ;;  %v5811_v13 = vrot.slane %v5810_v37, 1  ;;  %v5817_v21 = vmax.f32 %v5815_v1, %v5816_v25 }
 0x388   : > { %v5742_v16 = vmax.f32 %v5740_v55, %v5741_v54  ;;  %v5747_v11 = vmax.f32 %v5745_v52, %v5746_v17  ;;  %v5754_v32 = vmax.f32 %v5752_v45, %v5753_v28  ;;  %v5760_v19 = vrot.slane %v5759_v3, 2 }
 0x389   : > { %v5805_v50 = vmax.f32 %v5803_v53, %v5804_v30  ;;  %v5812_v40 = vmax.f32 %v5810_v37, %v5811_v13  ;;  %v5818_v6 = vrot.slane %v5817_v21, 1  ;;  %v6947_v46 = vpack.c.bf16 %v5798_v22, %v5798_v22  ;;  %v10011_v42 = vpop.f32.mrb[16].mxu0  ;;  %v10013_v36 = vpop.f32.mrb[16].mxu1 }
 0x38a   : > { %v5748_v49 = vrot.slane %v5747_v11, 1  ;;  %v5755_v38 = vrot.slane %v5754_v32, 1  ;;  %v5761_v63 = vmax.f32 %v5759_v3, %v5760_v19  ;;  %v6939_v4 = vpack.c.bf16 %v5742_v16, %v5742_v16  ;;  %v10015_v47 = vpop.f32.mrb[17].mxu0  ;;  %v10017_v60 = vpop.f32.mrb[17].mxu1 }
 0x38b   : > { %v5819_v26 = vmax.f32 %v5817_v21, %v5818_v6  ;;  %v6948_v33 = vpack.c.bf16 %v5805_v50, %v5805_v50  ;;  %v6949_v41 = vpack.c.bf16 %v5812_v40, %v5812_v40  ;;  %v10019_v20 = vpop.f32.mrb[18].mxu0  ;;  %v10021_v14 = vpop.f32.mrb[18].mxu1  ;;  %v6448_v9 = vunpack.c.l.b16 %v6947_v46 }
 0x38c   : > { %v5749_v12 = vmax.f32 %v5747_v11, %v5748_v49  ;;  %v5756_v39 = vmax.f32 %v5754_v32, %v5755_v38  ;;  %v5762_v23 = vrot.slane %v5761_v63, 1  ;;  %v10023_v58 = vpop.f32.mrb[19].mxu0  ;;  %v6440_v31 = vunpack.c.l.b16 %v6939_v4  ;;  %v10027_v55 = vpop.f32.mrb[19].mxu1 }
 0x38d   : > { %v6449_v44 = vunpack.c.l.b16 %v6948_v33  ;;  %v5457_v1 = vrot.slane %v9978_v59, %v9973_v35  ;;  %v5464_v61 = vrot.slane %v5450_v24, %v9973_v35  ;;  %v6950_v53 = vpack.c.bf16 %v5819_v26, %v5819_v26 }
 0x38e   : > { %v5763_v52 = vmax.f32 %v5761_v63, %v5762_v23  ;;  %v6940_v45 = vpack.c.bf16 %v5749_v12, %v5749_v12  ;;  %v6941_v18 = vpack.c.bf16 %v5756_v39, %v5756_v39  ;;  %v6450_v37 = vunpack.c.l.b16 %v6949_v41 }
 0x38f   : > { %v5465_v25 = vcombine.high %v5457_v1, %v5457_v1  ;;  %v5820_v54 = vsel %vm5735_vm14, %v5457_v1, -inf  ;;  %v6518_v17 = vsel %vm6504_vm15, %v6449_v44, %v6448_v9  ;;  %v5466_v30 = vcombine.high %v5464_v61, %v5464_v61 }
 0x390   : > { %v6942_v28 = vpack.c.bf16 %v5763_v52, %v5763_v52  ;;  %v6441_v3 = vunpack.c.l.b16 %v6940_v45  ;;  %v6442_v22 = vunpack.c.l.b16 %v6941_v18  ;;  %v5821_v13 = vrot.slane %v5820_v54, 4 }
 0x391   : > { %v5827_v21 = vsel %vm5735_vm14, %v5465_v25, -inf  ;;  %v5834_v16 = vsel %vm5735_vm14, %v5464_v61, -inf  ;;  %v10037_v11 = vpop.f32.mrb[20].mxu0  ;;  %v10040_v19 = vpop.f32.mrb[20].mxu1  ;;  %v6451_v40 = vunpack.c.l.b16 %v6950_v53  ;;  %v6519_v6 = vsel %vm6506_vm0, %v6450_v37, %v6518_v17 }
 0x392   : > { %v6505_v59 = vsel %vm6504_vm15, %v6441_v3, %v6440_v31  ;;  %v5828_v24 = vrot.slane %v5827_v21, 4  ;;  %v5835_v32 = vrot.slane %v5834_v16, 4  ;;  %v10042_v50 = vpop.f32.mrb[21].mxu0  ;;  %v5822_v46 = vmax.f32 %v5820_v54, %v5821_v13  ;;  %v10046_v38 = vpop.f32.mrb[21].mxu1 }
 0x393   : > { %v5841_v49 = vsel %vm5735_vm14, %v5466_v30, -inf  ;;  %v10048_v63 = vpop.f32.mrb[22].mxu0  ;;  %v5416_v41 = vcombine.high %v9983_v27, %v9983_v27  ;;  %v10052_v12 = vpop.f32.mrb[22].mxu1  ;;  %v10056_v23 = vunpack.c.l.b16 %v6942_v28  ;;  %v10059_v9 = vsel %vm6506_vm0, %v6442_v22, %v6505_v59 }
 0x394   : > { %v5829_v4 = vmax.f32 %v5827_v21, %v5828_v24  ;;  %v5836_v26 = vmax.f32 %v5834_v16, %v5835_v32  ;;  %v5842_v33 = vrot.slane %v5841_v49, 4  ;;  %v10054_v39 = vpop.f32.mrb[23].mxu0  ;;  %v5823_v44 = vrot.slane %v5822_v46, 2  ;;  %v10063_v1 = vpop.f32.mrb[23].mxu1 }
 0x395   : > { %v5423_v31 = vrot.slane %v9983_v27, %v9973_v35  ;;  %v5430_v61 = vrot.slane %v5416_v41, %v9973_v35  ;;  %v6520_v37 = vsel %vm6508_vm1, %v6451_v40, %v6519_v6 }
 0x396   : > { %v5830_v52 = vrot.slane %v5829_v4, 2  ;;  %v5837_v45 = vrot.slane %v5836_v26, 2  ;;  %v5843_v18 = vmax.f32 %v5841_v49, %v5842_v33  ;;  %v5824_v53 = vmax.f32 %v5822_v46, %v5823_v44 }
 0x397   : > { %v5431_v25 = vcombine.high %v5423_v31, %v5423_v31  ;;  %v5764_v54 = vsel %vm5735_vm14, %v5423_v31, -inf  ;;  %v5432_v27 = vcombine.high %v5430_v61, %v5430_v61  ;;  %v5778_v21 = vsel %vm5735_vm14, %v5430_v61, -inf }
 0x398   : > { %v5831_v17 = vmax.f32 %v5829_v4, %v5830_v52  ;;  %v5838_v28 = vmax.f32 %v5836_v26, %v5837_v45  ;;  %v5844_v3 = vrot.slane %v5843_v18, 2  ;;  %v5825_v22 = vrot.slane %v5824_v53, 1 }
 0x399   : > { %v5765_v30 = vrot.slane %v5764_v54, 4  ;;  %v5771_v13 = vsel %vm5735_vm14, %v5431_v25, -inf  ;;  %v10070_v16 = vpop.f32.mrb[24].mxu0  ;;  %v10072_v6 = vpop.f32.mrb[24].mxu1  ;;  %v5779_v26 = vrot.slane %v5778_v21, 4  ;;  %v5785_v33 = vsel %vm5735_vm14, %v5432_v27, -inf }
 0x39a   : > { %10531 = vst [vmem:[#allocation25_spill] sm:$0xff] %v10070_v16  ;;  %v5832_v59 = vrot.slane %v5831_v17, 1  ;;  %v5839_v24 = vrot.slane %v5838_v28, 1  ;;  %v5845_v32 = vmax.f32 %v5843_v18, %v5844_v3  ;;  %v5772_v40 = vrot.slane %v5771_v13, 4  ;;  %10532 = vst [vmem:[#allocation17_spill] sm:$0xff] %v10072_v6  ;;  %v10074_v46 = vpop.f32.mrb[25].mxu0 }
 0x39b   : > { %10533 = vst [vmem:[#allocation26_spill] sm:$0xff] %v10074_v46  ;;  %v5826_v49 = vmax.f32 %v5824_v53, %v5825_v22  ;;  %v5766_v4 = vmax.f32 %v5764_v54, %v5765_v30  ;;  %v10077_v41 = vpop.f32.mrb[25].mxu1  ;;  %v10079_v44 = vpop.f32.mrb[26].mxu0  ;;  %v5780_v46 = vmax.f32 %v5778_v21, %v5779_v26  ;;  %v5786_v53 = vrot.slane %v5785_v33, 4 }
 0x39c   : > { %10534 = vst [vmem:[#allocation18_spill] sm:$0xff] %v10077_v41  ;;  %10535 = vst [vmem:[#allocation27_spill] sm:$0xff] %v10079_v44  ;;  %v5833_v31 = vmax.f32 %v5831_v17, %v5832_v59  ;;  %v5840_v52 = vmax.f32 %v5838_v28, %v5839_v24  ;;  %v5846_v45 = vrot.slane %v5845_v32, 1  ;;  %v5773_v61 = vmax.f32 %v5771_v13, %v5772_v40  ;;  %v10081_v25 = vpop.f32.mrb[26].mxu1  ;;  %v10083_v18 = vpop.f32.mrb[27].mxu0 }
 0x39d   : > { %10536 = vst [vmem:[#allocation19_spill] sm:$0xff] %v10081_v25  ;;  %10537 = vst [vmem:[#allocation23_spill] sm:$0xff] %v10083_v18  ;;  %v6951_v3 = vpack.c.bf16 %v5826_v49, %v5826_v49  ;;  %v5767_v16 = vrot.slane %v5766_v4, 2  ;;  %v10085_v54 = vpop.f32.mrb[27].mxu1  ;;  %v5781_v17 = vrot.slane %v5780_v46, 2  ;;  %v5787_v28 = vmax.f32 %v5785_v33, %v5786_v53 }
 0x39e   : > { %10538 = vst [vmem:[#allocation20_spill] sm:$0xff] %v10085_v54  ;;  %v5847_v22 = vmax.f32 %v5845_v32, %v5846_v45  ;;  %v6952_v27 = vpack.c.bf16 %v5833_v31, %v5833_v31  ;;  %v6953_v30 = vpack.c.bf16 %v5840_v52, %v5840_v52  ;;  %v5774_v41 = vrot.slane %v5773_v61, 2 }
 0x39f   : > { %v6452_v6 = vunpack.c.l.b16 %v6951_v3  ;;  %v5768_v44 = vmax.f32 %v5766_v4, %v5767_v16  ;;  %v5782_v25 = vmax.f32 %v5780_v46, %v5781_v17  ;;  %v5788_v21 = vrot.slane %v5787_v28, 2 }
 0x3a0   : > { %v6954_v59 = vpack.c.bf16 %v5847_v22, %v5847_v22  ;;  %v6453_v13 = vunpack.c.l.b16 %v6952_v27  ;;  %v6454_v24 = vunpack.c.l.b16 %v6953_v30  ;;  %v5775_v40 = vmax.f32 %v5773_v61, %v5774_v41 }
 0x3a1   : > { %v6521_v18 = vsel %vm6510_vm2, %v6452_v6, %v6520_v37  ;;  %v5769_v49 = vrot.slane %v5768_v44, 1  ;;  %v10088_v26 = vpop.f32.mrb[28].mxu0  ;;  %v6509_v16 = vsel %vm6508_vm1, %v10056_v23, %v10059_v9  ;;  %v10094_v4 = vpop.f32.mrb[28].mxu1  ;;  %v5783_v6 = vrot.slane %v5782_v25, 1 }
 0x3a2   : > { %v6455_v54 = vunpack.c.l.b16 %v6954_v59  ;;  %v6522_v32 = vsel %vm6512_vm3, %v6453_v13, %v6521_v18  ;;  %v5776_v31 = vrot.slane %v5775_v40, 1  ;;  %v10096_v33 = vpop.f32.mrb[29].mxu0  ;;  %v5789_v46 = vmax.f32 %v5787_v28, %v5788_v21  ;;  %v10099_v52 = vpop.f32.mrb[29].mxu1 }
 0x3a3   : > { %v6523_v41 = vsel %vm6514_vm4, %v6454_v24, %v6522_v32  ;;  %v5770_v37 = vmax.f32 %v5768_v44, %v5769_v49  ;;  %v10101_v45 = vpop.f32.mrb[30].mxu0  ;;  %v5313_v23 = vadd.f32 %v9980_v48, %v9965_v56  ;;  %v7678_v9 = vadd.f32 %v9987_v43, %v9950_v62  ;;  %v10108_v3 = vpop.f32.mrb[30].mxu1 }
 0x3a4   : > { %v6524_v61 = vsel %vm6516_vm5, %v6455_v54, %v6523_v41  ;;  %v5777_v18 = vmax.f32 %v5775_v40, %v5776_v31  ;;  %v10110_v53 = vpop.f32.mrb[31].mxu0  ;;  %v5784_v22 = vmax.f32 %v5782_v25, %v5783_v6  ;;  %v5790_v27 = vrot.slane %v5789_v46, 1  ;;  %v10112_v17 = vpop.f32.mrb[31].mxu1 }
 0x3a5   : > { %v6568_v44 = vpack.c.b16 %v6524_v61, %v6524_v61  ;;  %v6943_v30 = vpack.c.bf16 %v5770_v37, %v5770_v37  ;;  %v5311_v54 = vadd.f32 %v9985_v7, %v9965_v56  ;;  %v7679_v48 = vadd.f32 %v9993_v34, %v9952_v2 }
 0x3a6   : > { %v6944_v28 = vpack.c.bf16 %v5777_v18, %v5777_v18  ;;  %v7680_v62 = vadd.f32 %v10002_v5, %v9954_v29  ;;  %v5791_v43 = vmax.f32 %v5789_v46, %v5790_v27  ;;  %v6945_v59 = vpack.c.bf16 %v5784_v22, %v5784_v22 }
 0x3a7   : > { %6584 = vst [vmem:[%s8579_s11 + $0x4] sm:$0xf] %v6568_v44  ;;  %v6444_v13 = vunpack.c.l.b16 %v6943_v30  ;;  %v7681_v25 = vadd.f32 %v10005_v0, %v9956_v10  ;;  %v5345_v40 = vmax.f32 %v5313_v23, 0.0  ;;  %v5314_v49 = vadd.f32 %v7678_v9, %v9965_v56 }
 0x3a8   : > { %v6445_v24 = vunpack.c.l.b16 %v6944_v28  ;;  %v5317_v21 = vadd.f32 %v7680_v62, %v9965_v56  ;;  %v6946_v7 = vpack.c.bf16 %v5791_v43, %v5791_v43  ;;  %v6446_v32 = vunpack.c.l.b16 %v6945_v59 }
 0x3a9   : > { %v6511_v2 = vsel %vm6510_vm2, %v6444_v13, %v6509_v16  ;;  %v5315_v34 = vadd.f32 %v7681_v25, %v9965_v56  ;;  %v5343_v5 = vmax.f32 %v5311_v54, 0.0  ;;  %v7682_v41 = vadd.f32 %v10007_v15, %v9958_v8 }
 0x3aa   : > { %v6513_v29 = vsel %vm6512_vm3, %v6445_v24, %v6511_v2  ;;  %v5349_v31 = vmax.f32 %v5317_v21, 0.0  ;;  %v6447_v10 = vunpack.c.l.b16 %v6946_v7  ;;  %v7683_v6 = vadd.f32 %v10009_v51, %v9960_v57 }
 0x3ab   : > { %v6515_v0 = vsel %vm6514_vm4, %v6446_v32, %v6513_v29  ;;  %v5347_v37 = vmax.f32 %v5315_v34, 0.0  ;;  %v5318_v16 = vadd.f32 %v7682_v41, %v9965_v56  ;;  %v10136_v61 = vadd.f32 %v10011_v42, %v10013_v36 }
 0x3ac   : > { %v5373_v46 = vmax.f32 %v5345_v40, %v5349_v31  ;;  %v10140_v18 = vadd.f32 %v10015_v47, %v10017_v60  ;;  %v6517_v8 = vsel %vm6516_vm5, %v6447_v10, %v6515_v0  ;;  %v5346_v15 = vmax.f32 %v5314_v49, 0.0 }
 0x3ad   : > { %v5371_v23 = vmax.f32 %v5343_v5, %v5347_v37  ;;  %v10145_v9 = vadd.f32 %v10019_v20, %v10021_v14  ;;  %v6567_v57 = vpack.c.b16 %v6517_v8, %v6517_v8  ;;  %v5350_v22 = vmax.f32 %v5318_v16, 0.0 }
 0x3ae   : > { %v5501_v51 = vcombine.high %v5373_v46, %v5373_v46  ;;  %v5508_v44 = vrot.slane %v5373_v46, %v9973_v35  ;;  %v10149_v42 = vadd.f32 %v7679_v48, %v9965_v56  ;;  %v10153_v60 = vadd.f32 %v7683_v6, %v9965_v56 }
 0x3af   : > { %v5467_v36 = vcombine.high %v5371_v23, %v5371_v23  ;;  %v5474_v47 = vrot.slane %v5371_v23, %v9973_v35  ;;  %6583 = vst [vmem:[%s8579_s11] sm:$0xf] %v6567_v57  ;;  %v10158_v14 = vmax.f32 %v5346_v15, %v5350_v22 }
 0x3b0   : > { %v5515_v27 = vrot.slane %v5501_v51, %v9973_v35  ;;  %v5516_v30 = vcombine.high %v5508_v44, %v5508_v44  ;;  %v5904_v20 = vsel %vm5735_vm14, %v5508_v44, -inf }
 0x3b1   : > { %v5905_v28 = vrot.slane %v5904_v20, 4  ;;  %v5481_v54 = vrot.slane %v5467_v36, %v9973_v35  ;;  %v5482_v62 = vcombine.high %v5474_v47, %v5474_v47  ;;  %v5848_v48 = vsel %vm5735_vm14, %v5474_v47, -inf }
 0x3b2   : > { %v5517_v43 = vcombine.high %v5515_v27, %v5515_v27  ;;  %v5911_v59 = vsel %vm5735_vm14, %v5516_v30, -inf  ;;  %v5918_v13 = vsel %vm5735_vm14, %v5515_v27, -inf  ;;  %v5849_v25 = vrot.slane %v5848_v48, 4 }
 0x3b3   : > { %v5906_v24 = vmax.f32 %v5904_v20, %v5905_v28  ;;  %v5912_v40 = vrot.slane %v5911_v59, 4  ;;  %v5919_v49 = vrot.slane %v5918_v13, 4  ;;  %v5483_v21 = vcombine.high %v5481_v54, %v5481_v54 }
 0x3b4   : > { %v5925_v7 = vsel %vm5735_vm14, %v5517_v43, -inf  ;;  %v5850_v32 = vmax.f32 %v5848_v48, %v5849_v25  ;;  %v5855_v2 = vsel %vm5735_vm14, %v5482_v62, -inf  ;;  %v5862_v34 = vsel %vm5735_vm14, %v5481_v54, -inf }
 0x3b5   : > { %v5907_v29 = vrot.slane %v5906_v24, 2  ;;  %v5913_v5 = vmax.f32 %v5911_v59, %v5912_v40  ;;  %v5920_v31 = vmax.f32 %v5918_v13, %v5919_v49  ;;  %v5926_v41 = vrot.slane %v5925_v7, 4 }
 0x3b6   : > { %v5851_v10 = vrot.slane %v5850_v32, 2  ;;  %v5856_v0 = vrot.slane %v5855_v2, 4  ;;  %v5863_v37 = vrot.slane %v5862_v34, 4  ;;  %v5869_v6 = vsel %vm5735_vm14, %v5483_v21, -inf }
 0x3b7   : > { %v5908_v46 = vmax.f32 %v5906_v24, %v5907_v29  ;;  %v5914_v16 = vrot.slane %v5913_v5, 2  ;;  %v5921_v8 = vrot.slane %v5920_v31, 2  ;;  %v5927_v15 = vmax.f32 %v5925_v7, %v5926_v41 }
 0x3b8   : > { %v5852_v23 = vmax.f32 %v5850_v32, %v5851_v10  ;;  %v5857_v57 = vmax.f32 %v5855_v2, %v5856_v0  ;;  %v5864_v51 = vmax.f32 %v5862_v34, %v5863_v37  ;;  %v5870_v44 = vrot.slane %v5869_v6, 4 }
 0x3b9   : > { %v5909_v22 = vrot.slane %v5908_v46, 1  ;;  %v5915_v36 = vmax.f32 %v5913_v5, %v5914_v16  ;;  %v5922_v47 = vmax.f32 %v5920_v31, %v5921_v8  ;;  %v5928_v27 = vrot.slane %v5927_v15, 2 }
 0x3ba   : > { %v5853_v30 = vrot.slane %v5852_v23, 1  ;;  %v5858_v20 = vrot.slane %v5857_v57, 2  ;;  %v5865_v28 = vrot.slane %v5864_v51, 2  ;;  %v5871_v54 = vmax.f32 %v5869_v6, %v5870_v44 }
 0x3bb   : > { %v5910_v62 = vmax.f32 %v5908_v46, %v5909_v22  ;;  %v5916_v48 = vrot.slane %v5915_v36, 1  ;;  %v5923_v43 = vrot.slane %v5922_v47, 1  ;;  %v5929_v59 = vmax.f32 %v5927_v15, %v5928_v27 }
 0x3bc   : > { %v5854_v13 = vmax.f32 %v5852_v23, %v5853_v30  ;;  %v5859_v25 = vmax.f32 %v5857_v57, %v5858_v20  ;;  %v5866_v24 = vmax.f32 %v5864_v51, %v5865_v28  ;;  %v5872_v40 = vrot.slane %v5871_v54, 2 }
 0x3bd   : > { %v5917_v49 = vmax.f32 %v5915_v36, %v5916_v48  ;;  %v5924_v21 = vmax.f32 %v5922_v47, %v5923_v43  ;;  %v5930_v7 = vrot.slane %v5929_v59, 1  ;;  %v6963_v32 = vpack.c.bf16 %v5910_v62, %v5910_v62 }
 0x3be   : > { %v5860_v2 = vrot.slane %v5859_v25, 1  ;;  %v5867_v34 = vrot.slane %v5866_v24, 1  ;;  %v5873_v29 = vmax.f32 %v5871_v54, %v5872_v40  ;;  %v6955_v5 = vpack.c.bf16 %v5854_v13, %v5854_v13 }
 0x3bf   : > { %v5931_v31 = vmax.f32 %v5929_v59, %v5930_v7  ;;  %v6964_v41 = vpack.c.bf16 %v5917_v49, %v5917_v49  ;;  %v6965_v10 = vpack.c.bf16 %v5924_v21, %v5924_v21  ;;  %v5348_v0 = vmax.f32 %v10153_v60, 0.0 }
 0x3c0   : > { %v5344_v37 = vmax.f32 %v10149_v42, 0.0  ;;  %v5861_v6 = vmax.f32 %v5859_v25, %v5860_v2  ;;  %v5868_v46 = vmax.f32 %v5866_v24, %v5867_v34  ;;  %v5874_v16 = vrot.slane %v5873_v29, 1 }
 0x3c1   : > { %v6464_v8 = vunpack.c.l.b16 %v6963_v32  ;;  %v6465_v15 = vunpack.c.l.b16 %v6964_v41  ;;  %v6456_v23 = vunpack.c.l.b16 %v6955_v5  ;;  %v5518_v57 = vcombine.high %v10158_v14, %v10158_v14 }
 0x3c2   : > { %v5875_v51 = vmax.f32 %v5873_v29, %v5874_v16  ;;  %v6956_v44 = vpack.c.bf16 %v5861_v6, %v5861_v6  ;;  %v6957_v22 = vpack.c.bf16 %v5868_v46, %v5868_v46  ;;  %v5525_v36 = vrot.slane %v10158_v14, %v9973_v35 }
 0x3c3   : > { %v6966_v47 = vpack.c.bf16 %v5931_v31, %v5931_v31  ;;  %v6466_v27 = vunpack.c.l.b16 %v6965_v10  ;;  %v5532_v60 = vrot.slane %v5518_v57, %v9973_v35  ;;  %v5372_v42 = vmax.f32 %v5344_v37, %v5348_v0 }
 0x3c4   : > { %v6532_v30 = vsel %vm6504_vm15, %v6465_v15, %v6464_v8  ;;  %v6958_v20 = vpack.c.bf16 %v5875_v51, %v5875_v51  ;;  %v6457_v28 = vunpack.c.l.b16 %v6956_v44  ;;  %v6458_v54 = vunpack.c.l.b16 %v6957_v22 }
 0x3c5   : > { %v5533_v62 = vcombine.high %v5525_v36, %v5525_v36  ;;  %v5534_v48 = vcombine.high %v5532_v60, %v5532_v60  ;;  %v5932_v43 = vsel %vm5735_vm14, %v5525_v36, -inf  ;;  %v5946_v59 = vsel %vm5735_vm14, %v5532_v60, -inf }
 0x3c6   : > { %v6525_v13 = vsel %vm6504_vm15, %v6457_v28, %v6456_v23  ;;  %v5933_v25 = vrot.slane %v5932_v43, 4  ;;  %v5947_v14 = vrot.slane %v5946_v59, 4  ;;  %v10181_v24 = vadd.f32 %v10136_v61, %v9965_v56 }
 0x3c7   : > { %v6467_v40 = vunpack.c.l.b16 %v6966_v47  ;;  %v6533_v49 = vsel %vm6506_vm0, %v6466_v27, %v6532_v30  ;;  %v5939_v21 = vsel %vm5735_vm14, %v5533_v62, -inf  ;;  %v5953_v7 = vsel %vm5735_vm14, %v5534_v48, -inf }
 0x3c8   : > { %v5934_v32 = vmax.f32 %v5932_v43, %v5933_v25  ;;  %v5940_v2 = vrot.slane %v5939_v21, 4  ;;  %v5948_v34 = vmax.f32 %v5946_v59, %v5947_v14  ;;  %v5954_v29 = vrot.slane %v5953_v7, 4 }
 0x3c9   : > { %v6459_v5 = vunpack.c.l.b16 %v6958_v20  ;;  %v6526_v31 = vsel %vm6506_vm0, %v6458_v54, %v6525_v13  ;;  %v5484_v41 = vcombine.high %v5372_v42, %v5372_v42  ;;  %v5491_v10 = vrot.slane %v5372_v42, %v9973_v35 }
 0x3ca   : > { %v5935_v0 = vrot.slane %v5934_v32, 2  ;;  %v5941_v61 = vmax.f32 %v5939_v21, %v5940_v2  ;;  %v5949_v37 = vrot.slane %v5948_v34, 2  ;;  %v5955_v6 = vmax.f32 %v5953_v7, %v5954_v29 }
 0x3cb   : > { %v6534_v46 = vsel %vm6508_vm1, %v6467_v40, %v6533_v49  ;;  %v5498_v16 = vrot.slane %v5484_v41, %v9973_v35  ;;  %v5499_v8 = vcombine.high %v5491_v10, %v5491_v10  ;;  %v5876_v15 = vsel %vm5735_vm14, %v5491_v10, -inf }
 0x3cc   : > { %v5936_v23 = vmax.f32 %v5934_v32, %v5935_v0  ;;  %v5942_v57 = vrot.slane %v5941_v61, 2  ;;  %v5950_v51 = vmax.f32 %v5948_v34, %v5949_v37  ;;  %v5956_v44 = vrot.slane %v5955_v6, 2 }
 0x3cd   : > { %v5500_v22 = vcombine.high %v5498_v16, %v5498_v16  ;;  %v5877_v36 = vrot.slane %v5876_v15, 4  ;;  %v5883_v47 = vsel %vm5735_vm14, %v5499_v8, -inf  ;;  %v5890_v27 = vsel %vm5735_vm14, %v5498_v16, -inf }
 0x3ce   : > { %v5937_v60 = vrot.slane %v5936_v23, 1  ;;  %v5943_v42 = vmax.f32 %v5941_v61, %v5942_v57  ;;  %v5951_v30 = vrot.slane %v5950_v51, 1  ;;  %v5957_v20 = vmax.f32 %v5955_v6, %v5956_v44 }
 0x3cf   : > { %v5878_v28 = vmax.f32 %v5876_v15, %v5877_v36  ;;  %v5884_v54 = vrot.slane %v5883_v47, 4  ;;  %v5891_v62 = vrot.slane %v5890_v27, 4  ;;  %v5897_v48 = vsel %vm5735_vm14, %v5500_v22, -inf }
 0x3d0   : > { %v5938_v43 = vmax.f32 %v5936_v23, %v5937_v60  ;;  %v5944_v59 = vrot.slane %v5943_v42, 1  ;;  %v5952_v13 = vmax.f32 %v5950_v51, %v5951_v30  ;;  %v5958_v25 = vrot.slane %v5957_v20, 1 }
 0x3d1   : > { %v5879_v14 = vrot.slane %v5878_v28, 2  ;;  %v5885_v40 = vmax.f32 %v5883_v47, %v5884_v54  ;;  %v5892_v49 = vmax.f32 %v5890_v27, %v5891_v62  ;;  %v5898_v21 = vrot.slane %v5897_v48, 4 }
 0x3d2   : > { %v5945_v7 = vmax.f32 %v5943_v42, %v5944_v59  ;;  %v5959_v32 = vmax.f32 %v5957_v20, %v5958_v25  ;;  %v6967_v2 = vpack.c.bf16 %v5938_v43, %v5938_v43  ;;  %v6969_v34 = vpack.c.bf16 %v5952_v13, %v5952_v13 }
 0x3d3   : > { %v5880_v29 = vmax.f32 %v5878_v28, %v5879_v14  ;;  %v5886_v41 = vrot.slane %v5885_v40, 2  ;;  %v5893_v10 = vrot.slane %v5892_v49, 2  ;;  %v5899_v0 = vmax.f32 %v5897_v48, %v5898_v21 }
 0x3d4   : > { %v6968_v61 = vpack.c.bf16 %v5945_v7, %v5945_v7  ;;  %v6970_v37 = vpack.c.bf16 %v5959_v32, %v5959_v32  ;;  %v6468_v6 = vunpack.c.l.b16 %v6967_v2  ;;  %v6527_v16 = vsel %vm6508_vm1, %v6459_v5, %v6526_v31 }
 0x3d5   : > { %v5881_v8 = vrot.slane %v5880_v29, 1  ;;  %v5887_v15 = vmax.f32 %v5885_v40, %v5886_v41  ;;  %v5894_v23 = vmax.f32 %v5892_v49, %v5893_v10  ;;  %v5900_v57 = vrot.slane %v5899_v0, 2  ;;  %v10540_v10 = vld [vmem:[#allocation25_spill] sm:$0xff] }
 0x3d6   : > { %v6469_v51 = vunpack.c.l.b16 %v6968_v61  ;;  %v6470_v44 = vunpack.c.l.b16 %v6969_v34  ;;  %v6535_v22 = vsel %vm6510_vm2, %v6468_v6, %v6534_v46  ;;  %v5353_v36 = vmax.f32 %v10181_v24, 0.0 }
 0x3d7   : > { %v5882_v47 = vmax.f32 %v5880_v29, %v5881_v8  ;;  %v5888_v27 = vrot.slane %v5887_v15, 1  ;;  %v5895_v60 = vrot.slane %v5894_v23, 1  ;;  %v5901_v42 = vmax.f32 %v5899_v0, %v5900_v57 }
 0x3d8   : > { %v6471_v30 = vunpack.c.l.b16 %v6970_v37  ;;  %v6536_v20 = vsel %vm6512_vm3, %v6469_v51, %v6535_v22  ;;  %v7687_v5 = vadd.f32 %v10023_v58, %v10027_v55  ;;  %v7688_v31 = vadd.f32 %v10037_v11, %v10040_v19 }
 0x3d9   : > { %v6537_v28 = vsel %vm6514_vm4, %v6470_v44, %v6536_v20  ;;  %v5889_v54 = vmax.f32 %v5887_v15, %v5888_v27  ;;  %v5896_v46 = vmax.f32 %v5894_v23, %v5895_v60  ;;  %v5902_v62 = vrot.slane %v5901_v42, 1  ;;  %v10541_v15 = vld [vmem:[#allocation18_spill] sm:$0xff] }
 0x3da   : > { %v6538_v24 = vsel %vm6516_vm5, %v6471_v30, %v6537_v28  ;;  %v6959_v48 = vpack.c.bf16 %v5882_v47, %v5882_v47  ;;  %v5319_v43 = vadd.f32 %v10140_v18, %v9965_v56  ;;  %v5322_v59 = vadd.f32 %v10145_v9, %v9965_v56 }
 0x3db   : > { %v6570_v13 = vpack.c.b16 %v6538_v24, %v6538_v24  ;;  %v5903_v58 = vmax.f32 %v5901_v42, %v5902_v62  ;;  %v6960_v55 = vpack.c.bf16 %v5889_v54, %v5889_v54  ;;  %v6961_v25 = vpack.c.bf16 %v5896_v46, %v5896_v46 }
 0x3dc   : > { %v6460_v11 = vunpack.c.l.b16 %v6959_v48  ;;  %v10209_v19 = vadd.f32 %v7687_v5, %v9965_v56  ;;  %v5325_v14 = vadd.f32 %v7688_v31, %v9965_v56  ;;  %v7689_v40 = vadd.f32 %v10042_v50, %v10046_v38  ;;  %v10539_v38 = vld [vmem:[#allocation17_spill] sm:$0xff] }
 0x3dd   : > { %6586 = vst [vmem:[%s8579_s11 + $0xc] sm:$0xf] %v6570_v13  ;;  %v6962_v49 = vpack.c.bf16 %v5903_v58, %v5903_v58  ;;  %v6461_v21 = vunpack.c.l.b16 %v6960_v55  ;;  %v6462_v18 = vunpack.c.l.b16 %v6961_v25  ;;  %v7690_v9 = vadd.f32 %v10048_v63, %v10052_v12 }
 0x3de   : > { %v6528_v7 = vsel %vm6510_vm2, %v6460_v11, %v6527_v16  ;;  %v5357_v32 = vmax.f32 %v5325_v14, 0.0  ;;  %v5323_v2 = vadd.f32 %v7689_v40, %v9965_v56  ;;  %v7691_v34 = vadd.f32 %v10054_v39, %v10063_v1  ;;  %v10542_v39 = vld [vmem:[#allocation26_spill] sm:$0xff] }
 0x3df   : > { %v6463_v29 = vunpack.c.l.b16 %v6962_v49  ;;  %v6529_v41 = vsel %vm6512_vm3, %v6461_v21, %v6528_v7  ;;  %v5326_v50 = vadd.f32 %v7690_v9, %v9965_v56  ;;  %v7692_v0 = vadd.f32 %v10540_v10, %v10539_v38 }
 0x3e0   : > { %v6530_v61 = vsel %vm6514_vm4, %v6462_v18, %v6529_v41  ;;  %v5351_v63 = vmax.f32 %v5319_v43, 0.0  ;;  %v5377_v12 = vmax.f32 %v5353_v36, %v5357_v32  ;;  %v5355_v37 = vmax.f32 %v5323_v2, 0.0 }
 0x3e1   : > { %v6531_v6 = vsel %vm6516_vm5, %v6463_v29, %v6530_v61  ;;  %v5354_v16 = vmax.f32 %v5322_v59, 0.0  ;;  %v5358_v8 = vmax.f32 %v5326_v50, 0.0  ;;  %v10229_v1 = vadd.f32 %v10542_v39, %v10541_v15 }
 0x3e2   : > { %v6569_v23 = vpack.c.b16 %v6531_v6, %v6531_v6  ;;  %v5569_v57 = vcombine.high %v5377_v12, %v5377_v12  ;;  %v5576_v51 = vrot.slane %v5377_v12, %v9973_v35  ;;  %v5375_v44 = vmax.f32 %v5351_v63, %v5355_v37 }
 0x3e3   : > { %v5352_v22 = vmax.f32 %v10209_v19, 0.0  ;;  %v10233_v47 = vmax.f32 %v5354_v16, %v5358_v8  ;;  %v10236_v36 = vadd.f32 %v7691_v34, %v9965_v56  ;;  %v10239_v27 = vadd.f32 %v7692_v0, %v9965_v56 }
 0x3e4   : > { %6585 = vst [vmem:[%s8579_s11 + $0x8] sm:$0xf] %v6569_v23  ;;  %v5583_v60 = vrot.slane %v5569_v57, %v9973_v35  ;;  %v5584_v42 = vcombine.high %v5576_v51, %v5576_v51  ;;  %v6016_v30 = vsel %vm5735_vm14, %v5576_v51, -inf  ;;  %v5535_v20 = vcombine.high %v5375_v44, %v5375_v44 }
 0x3e5   : > { %v6017_v5 = vrot.slane %v6016_v30, 4  ;;  %v5542_v31 = vrot.slane %v5375_v44, %v9973_v35  ;;  %v5586_v28 = vcombine.high %v10233_v47, %v10233_v47  ;;  %v10249_v54 = vrot.slane %v10233_v47, %v9973_v35 }
 0x3e6   : > { %v5585_v46 = vcombine.high %v5583_v60, %v5583_v60  ;;  %v6023_v56 = vsel %vm5735_vm14, %v5584_v42, -inf  ;;  %v6030_v62 = vsel %vm5735_vm14, %v5583_v60, -inf  ;;  %v5549_v24 = vrot.slane %v5535_v20, %v9973_v35 }
 0x3e7   : > { %v6018_v48 = vmax.f32 %v6016_v30, %v6017_v5  ;;  %v6024_v43 = vrot.slane %v6023_v56, 4  ;;  %v6031_v59 = vrot.slane %v6030_v62, 4  ;;  %v5550_v13 = vcombine.high %v5542_v31, %v5542_v31 }
 0x3e8   : > { %v6037_v58 = vsel %vm5735_vm14, %v5585_v46, -inf  ;;  %v5551_v55 = vcombine.high %v5549_v24, %v5549_v24  ;;  %v5960_v25 = vsel %vm5735_vm14, %v5542_v31, -inf  ;;  %v5974_v11 = vsel %vm5735_vm14, %v5549_v24, -inf }
 0x3e9   : > { %v6019_v14 = vrot.slane %v6018_v48, 2  ;;  %v6025_v40 = vmax.f32 %v6023_v56, %v6024_v43  ;;  %v6032_v49 = vmax.f32 %v6030_v62, %v6031_v59  ;;  %v6038_v21 = vrot.slane %v6037_v58, 4 }
 0x3ea   : > { %v5961_v18 = vrot.slane %v5960_v25, 4  ;;  %v5967_v9 = vsel %vm5735_vm14, %v5550_v13, -inf  ;;  %v5975_v7 = vrot.slane %v5974_v11, 4  ;;  %v5981_v32 = vsel %vm5735_vm14, %v5551_v55, -inf }
 0x3eb   : > { %v6020_v2 = vmax.f32 %v6018_v48, %v6019_v14  ;;  %v6026_v34 = vrot.slane %v6025_v40, 2  ;;  %v6033_v29 = vrot.slane %v6032_v49, 2  ;;  %v6039_v41 = vmax.f32 %v6037_v58, %v6038_v21 }
 0x3ec   : > { %v5962_v50 = vmax.f32 %v5960_v25, %v5961_v18  ;;  %v5968_v38 = vrot.slane %v5967_v9, 4  ;;  %v5976_v10 = vmax.f32 %v5974_v11, %v5975_v7  ;;  %v5982_v0 = vrot.slane %v5981_v32, 4 }
 0x3ed   : > { %v6021_v61 = vrot.slane %v6020_v2, 1  ;;  %v6027_v63 = vmax.f32 %v6025_v40, %v6026_v34  ;;  %v6034_v12 = vmax.f32 %v6032_v49, %v6033_v29  ;;  %v6040_v37 = vrot.slane %v6039_v41, 2 }
 0x3ee   : > { %v5963_v6 = vrot.slane %v5962_v50, 2  ;;  %v5969_v16 = vmax.f32 %v5967_v9, %v5968_v38  ;;  %v5977_v8 = vrot.slane %v5976_v10, 2  ;;  %v5983_v15 = vmax.f32 %v5981_v32, %v5982_v0 }
 0x3ef   : > { %v6022_v39 = vmax.f32 %v6020_v2, %v6021_v61  ;;  %v6028_v23 = vrot.slane %v6027_v63, 1  ;;  %v6035_v57 = vrot.slane %v6034_v12, 1  ;;  %v6041_v51 = vmax.f32 %v6039_v41, %v6040_v37 }
 0x3f0   : > { %v5964_v44 = vmax.f32 %v5962_v50, %v5963_v6  ;;  %v5970_v60 = vrot.slane %v5969_v16, 2  ;;  %v5978_v42 = vmax.f32 %v5976_v10, %v5977_v8  ;;  %v5984_v30 = vrot.slane %v5983_v15, 2 }
 0x3f1   : > { %v6029_v20 = vmax.f32 %v6027_v63, %v6028_v23  ;;  %v6036_v5 = vmax.f32 %v6034_v12, %v6035_v57  ;;  %v6042_v31 = vrot.slane %v6041_v51, 1  ;;  %v6979_v46 = vpack.c.bf16 %v6022_v39, %v6022_v39 }
 0x3f2   : > { %v5965_v56 = vrot.slane %v5964_v44, 1  ;;  %v5971_v62 = vmax.f32 %v5969_v16, %v5970_v60  ;;  %v5979_v24 = vrot.slane %v5978_v42, 1  ;;  %v5985_v48 = vmax.f32 %v5983_v15, %v5984_v30 }
 0x3f3   : > { %v6043_v43 = vmax.f32 %v6041_v51, %v6042_v31  ;;  %v6980_v59 = vpack.c.bf16 %v6029_v20, %v6029_v20  ;;  %v6981_v13 = vpack.c.bf16 %v6036_v5, %v6036_v5  ;;  %v6480_v58 = vunpack.c.l.b16 %v6979_v46 }
 0x3f4   : > { %v5966_v55 = vmax.f32 %v5964_v44, %v5965_v56  ;;  %v5972_v25 = vrot.slane %v5971_v62, 1  ;;  %v5980_v11 = vmax.f32 %v5978_v42, %v5979_v24  ;;  %v5986_v14 = vrot.slane %v5985_v48, 1 }
 0x3f5   : > { %v6982_v40 = vpack.c.bf16 %v6043_v43, %v6043_v43  ;;  %v6481_v49 = vunpack.c.l.b16 %v6980_v59  ;;  %v6482_v21 = vunpack.c.l.b16 %v6981_v13  ;;  %v5600_v18 = vrot.slane %v5586_v28, %v9973_v35 }
 0x3f6   : > { %v5973_v9 = vmax.f32 %v5971_v62, %v5972_v25  ;;  %v5987_v7 = vmax.f32 %v5985_v48, %v5986_v14  ;;  %v6971_v32 = vpack.c.bf16 %v5966_v55, %v5966_v55  ;;  %v6973_v2 = vpack.c.bf16 %v5980_v11, %v5980_v11 }
 0x3f7   : > { %v6546_v34 = vsel %vm6504_vm15, %v6481_v49, %v6480_v58  ;;  %v5601_v29 = vcombine.high %v10249_v54, %v10249_v54  ;;  %v5602_v41 = vcombine.high %v5600_v18, %v5600_v18  ;;  %v5356_v50 = vmax.f32 %v10236_v36, 0.0 }
 0x3f8   : > { %v6483_v38 = vunpack.c.l.b16 %v6982_v40  ;;  %v6547_v10 = vsel %vm6506_vm0, %v6482_v21, %v6546_v34  ;;  %v6972_v0 = vpack.c.bf16 %v5973_v9, %v5973_v9  ;;  %v6974_v61 = vpack.c.bf16 %v5987_v7, %v5987_v7 }
 0x3f9   : > { %v6472_v63 = vunpack.c.l.b16 %v6971_v32  ;;  %v6044_v47 = vsel %vm5735_vm14, %v10249_v54, -inf  ;;  %v6051_v28 = vsel %vm5735_vm14, %v5601_v29, -inf  ;;  %v6058_v12 = vsel %vm5735_vm14, %v5600_v18, -inf }
 0x3fa   : > { %v6473_v37 = vunpack.c.l.b16 %v6972_v0  ;;  %v6474_v6 = vunpack.c.l.b16 %v6973_v2  ;;  %v6045_v16 = vrot.slane %v6044_v47, 4  ;;  %v6052_v8 = vrot.slane %v6051_v28, 4 }
 0x3fb   : > { %v6475_v15 = vunpack.c.l.b16 %v6974_v61  ;;  %v6059_v39 = vrot.slane %v6058_v12, 4  ;;  %v6065_v36 = vsel %vm5735_vm14, %v5602_v41, -inf  ;;  %v5376_v23 = vmax.f32 %v5352_v22, %v5356_v50 }
 0x3fc   : > { %v6539_v57 = vsel %vm6504_vm15, %v6473_v37, %v6472_v63  ;;  %v6046_v51 = vmax.f32 %v6044_v47, %v6045_v16  ;;  %v6053_v44 = vmax.f32 %v6051_v28, %v6052_v8  ;;  %v6066_v54 = vrot.slane %v6065_v36, 4 }
 0x3fd   : > { %v6060_v60 = vmax.f32 %v6058_v12, %v6059_v39  ;;  %v6548_v42 = vsel %vm6508_vm1, %v6483_v38, %v6547_v10  ;;  %v5552_v30 = vcombine.high %v5376_v23, %v5376_v23  ;;  %v5559_v20 = vrot.slane %v5376_v23, %v9973_v35 }
 0x3fe   : > { %v6540_v5 = vsel %vm6506_vm0, %v6474_v6, %v6539_v57  ;;  %v6047_v31 = vrot.slane %v6046_v51, 2  ;;  %v6054_v46 = vrot.slane %v6053_v44, 2  ;;  %v6067_v56 = vmax.f32 %v6065_v36, %v6066_v54 }
 0x3ff   : > { %v6061_v62 = vrot.slane %v6060_v60, 2  ;;  %v5566_v19 = vrot.slane %v5552_v30, %v9973_v35  ;;  %v5567_v22 = vcombine.high %v5559_v20, %v5559_v20  ;;  %v5988_v24 = vsel %vm5735_vm14, %v5559_v20, -inf }
 0x400   : > { %v6048_v48 = vmax.f32 %v6046_v51, %v6047_v31  ;;  %v6055_v43 = vmax.f32 %v6053_v44, %v6054_v46  ;;  %v6068_v59 = vrot.slane %v6067_v56, 2  ;;  %v5989_v13 = vrot.slane %v5988_v24, 4 }
 0x401   : > { %v6062_v58 = vmax.f32 %v6060_v60, %v6061_v62  ;;  %v5568_v55 = vcombine.high %v5566_v19, %v5566_v19  ;;  %v5995_v25 = vsel %vm5735_vm14, %v5567_v22, -inf  ;;  %v6002_v11 = vsel %vm5735_vm14, %v5566_v19, -inf }
 0x402   : > { %v6049_v14 = vrot.slane %v6048_v48, 1  ;;  %v6056_v40 = vrot.slane %v6055_v43, 1  ;;  %v6069_v49 = vmax.f32 %v6067_v56, %v6068_v59  ;;  %v5990_v21 = vmax.f32 %v5988_v24, %v5989_v13  ;;  %v10546_v59 = vld [vmem:[#allocation23_spill] sm:$0xff] }
 0x403   : > { %v6063_v18 = vrot.slane %v6062_v58, 1  ;;  %v5996_v9 = vrot.slane %v5995_v25, 4  ;;  %v6003_v7 = vrot.slane %v6002_v11, 4  ;;  %v6009_v32 = vsel %vm5735_vm14, %v5568_v55, -inf }
 0x404   : > { %v6050_v2 = vmax.f32 %v6048_v48, %v6049_v14  ;;  %v6057_v34 = vmax.f32 %v6055_v43, %v6056_v40  ;;  %v6070_v29 = vrot.slane %v6069_v49, 1  ;;  %v5991_v41 = vrot.slane %v5990_v21, 2  ;;  %v10543_v48 = vld [vmem:[#allocation19_spill] sm:$0xff]  ;;  %v10545_v43 = vld [vmem:[#allocation20_spill] sm:$0xff] }
 0x405   : > { %v6064_v50 = vmax.f32 %v6062_v58, %v6063_v18  ;;  %v5997_v38 = vmax.f32 %v5995_v25, %v5996_v9  ;;  %v6004_v10 = vmax.f32 %v6002_v11, %v6003_v7  ;;  %v6010_v0 = vrot.slane %v6009_v32, 4  ;;  %v8159_v40 = vld [vmem:[%s10441_s2] ss:$0 sm:$0xff] }
 0x406   : > { %v6071_v61 = vmax.f32 %v6069_v49, %v6070_v29  ;;  %v6983_v63 = vpack.c.bf16 %v6050_v2, %v6050_v2  ;;  %v6984_v47 = vpack.c.bf16 %v6057_v34, %v6057_v34  ;;  %v5992_v28 = vmax.f32 %v5990_v21, %v5991_v41 }
 0x407   : > { %v6985_v12 = vpack.c.bf16 %v6064_v50, %v6064_v50  ;;  %v5998_v37 = vrot.slane %v5997_v38, 2  ;;  %v6005_v6 = vrot.slane %v6004_v10, 2  ;;  %v6011_v16 = vmax.f32 %v6009_v32, %v6010_v0 }
 0x408   : > { %v6986_v8 = vpack.c.bf16 %v6071_v61, %v6071_v61  ;;  %v6484_v39 = vunpack.c.l.b16 %v6983_v63  ;;  %v5993_v36 = vrot.slane %v5992_v28, 1  ;;  %v6541_v23 = vsel %vm6508_vm1, %v6475_v15, %v6540_v5  ;;  %v10544_v15 = vld [vmem:[#allocation27_spill] sm:$0xff] }
 0x409   : > { %v6485_v57 = vunpack.c.l.b16 %v6984_v47  ;;  %v5999_v51 = vmax.f32 %v5997_v38, %v5998_v37  ;;  %v6006_v44 = vmax.f32 %v6004_v10, %v6005_v6  ;;  %v6012_v54 = vrot.slane %v6011_v16, 2 }
 0x40a   : > { %v6486_v60 = vunpack.c.l.b16 %v6985_v12  ;;  %v6487_v30 = vunpack.c.l.b16 %v6986_v8  ;;  %v6549_v20 = vsel %vm6510_vm2, %v6484_v39, %v6548_v42  ;;  %v5994_v31 = vmax.f32 %v5992_v28, %v5993_v36 }
 0x40b   : > { %v6550_v46 = vsel %vm6512_vm3, %v6485_v57, %v6549_v20  ;;  %v6000_v56 = vrot.slane %v5999_v51, 1  ;;  %v6007_v62 = vrot.slane %v6006_v44, 1  ;;  %v6013_v19 = vmax.f32 %v6011_v16, %v6012_v54 }
 0x40c   : > { %v6551_v22 = vsel %vm6514_vm4, %v6486_v60, %v6550_v46  ;;  %v6975_v24 = vpack.c.bf16 %v5994_v31, %v5994_v31  ;;  %v7694_v5 = vadd.f32 %v10544_v15, %v10543_v48  ;;  %v7695_v13 = vadd.f32 %v10546_v59, %v10545_v43 }
 0x40d   : > { %v6552_v58 = vsel %vm6516_vm5, %v6487_v30, %v6551_v22  ;;  %v6001_v55 = vmax.f32 %v5999_v51, %v6000_v56  ;;  %v6008_v42 = vmax.f32 %v6006_v44, %v6007_v62  ;;  %v6014_v25 = vrot.slane %v6013_v19, 1 }
 0x40e   : > { %v6572_v11 = vpack.c.b16 %v6552_v58, %v6552_v58  ;;  %v6476_v14 = vunpack.c.l.b16 %v6975_v24  ;;  %v5327_v49 = vadd.f32 %v8159_v40, %v10229_v1  ;;  %v7696_v7 = vadd.f32 %v10088_v26, %v10094_v4 }
 0x40f   : > { %v6015_v21 = vmax.f32 %v6013_v19, %v6014_v25  ;;  %v6976_v18 = vpack.c.bf16 %v6001_v55, %v6001_v55  ;;  %v6977_v9 = vpack.c.bf16 %v6008_v42, %v6008_v42  ;;  %v5361_v2 = vmax.f32 %v10239_v27, 0.0 }
 0x410   : > { %6588 = vst [vmem:[%s8579_s11 + $0x14] sm:$0xf] %v6572_v11  ;;  %v6542_v32 = vsel %vm6510_vm2, %v6476_v14, %v6541_v23  ;;  %v5330_v34 = vadd.f32 %v8159_v40, %v7694_v5  ;;  %v7697_v29 = vadd.f32 %v10096_v33, %v10099_v52  ;;  %v5328_v38 = vadd.f32 %v8159_v40, %v7695_v13 }
 0x411   : > { %v6978_v41 = vpack.c.bf16 %v6015_v21, %v6015_v21  ;;  %v6477_v50 = vunpack.c.l.b16 %v6976_v18  ;;  %v5333_v10 = vadd.f32 %v8159_v40, %v7696_v7  ;;  %v6478_v1 = vunpack.c.l.b16 %v6977_v9 }
 0x412   : > { %v5331_v0 = vadd.f32 %v8159_v40, %v7697_v29  ;;  %v7698_v61 = vadd.f32 %v10101_v45, %v10108_v3  ;;  %v7699_v26 = vadd.f32 %v10110_v53, %v10112_v17  ;;  %v5359_v27 = vmax.f32 %v5327_v49, 0.0 }
 0x413   : > { %v6479_v4 = vunpack.c.l.b16 %v6978_v41  ;;  %v6543_v63 = vsel %vm6512_vm3, %v6477_v50, %v6542_v32  ;;  %v5365_v47 = vmax.f32 %v5333_v10, 0.0  ;;  %v5362_v6 = vmax.f32 %v5330_v34, 0.0 }
 0x414   : > { %v6544_v33 = vsel %vm6514_vm4, %v6478_v1, %v6543_v63  ;;  %v5363_v52 = vmax.f32 %v5331_v0, 0.0  ;;  %v5334_v28 = vadd.f32 %v8159_v40, %v7698_v61  ;;  %v5332_v12 = vadd.f32 %v8159_v40, %v7699_v26 }
 0x415   : > { %v6545_v37 = vsel %vm6516_vm5, %v6479_v4, %v6544_v33  ;;  %v5360_v16 = vmax.f32 %v5328_v38, 0.0  ;;  %v5381_v8 = vmax.f32 %v5361_v2, %v5365_v47 }
 0x416   : > { %v6571_v45 = vpack.c.b16 %v6545_v37, %v6545_v37  ;;  %v5379_v3 = vmax.f32 %v5359_v27, %v5363_v52  ;;  %v5366_v39 = vmax.f32 %v5334_v28, 0.0  ;;  %v5364_v53 = vmax.f32 %v5332_v12, 0.0 }
 0x417   : > { %v5637_v17 = vcombine.high %v5381_v8, %v5381_v8  ;;  %v5644_v36 = vrot.slane %v5381_v8, %v9973_v35 }
 0x418   : > { %6587 = vst [vmem:[%s8579_s11 + $0x10] sm:$0xf] %v6571_v45  ;;  %v5603_v23 = vcombine.high %v5379_v3, %v5379_v3  ;;  %v5610_v57 = vrot.slane %v5379_v3, %v9973_v35  ;;  %v10314_v51 = vmax.f32 %v5362_v6, %v5366_v39  ;;  %v10316_v44 = vmax.f32 %v5360_v16, %v5364_v53 }
 0x419   : > { %v5651_v54 = vrot.slane %v5637_v17, %v9973_v35  ;;  %v5652_v60 = vcombine.high %v5644_v36, %v5644_v36  ;;  %v6128_v30 = vsel %vm5735_vm14, %v5644_v36, -inf }
 0x41a   : > { %v6129_v20 = vrot.slane %v6128_v30, 4  ;;  %v5617_v31 = vrot.slane %v5603_v23, %v9973_v35  ;;  %v5618_v46 = vcombine.high %v5610_v57, %v5610_v57  ;;  %v6072_v56 = vsel %vm5735_vm14, %v5610_v57, -inf }
 0x41b   : > { %v5653_v62 = vcombine.high %v5651_v54, %v5651_v54  ;;  %v6135_v19 = vsel %vm5735_vm14, %v5652_v60, -inf  ;;  %v6142_v22 = vsel %vm5735_vm14, %v5651_v54, -inf  ;;  %v6073_v24 = vrot.slane %v6072_v56, 4 }
 0x41c   : > { %v6130_v48 = vmax.f32 %v6128_v30, %v6129_v20  ;;  %v6136_v15 = vrot.slane %v6135_v19, 4  ;;  %v6143_v5 = vrot.slane %v6142_v22, 4  ;;  %v5619_v43 = vcombine.high %v5617_v31, %v5617_v31 }
 0x41d   : > { %v6149_v59 = vsel %vm5735_vm14, %v5653_v62, -inf  ;;  %v6074_v13 = vmax.f32 %v6072_v56, %v6073_v24  ;;  %v6079_v58 = vsel %vm5735_vm14, %v5618_v46, -inf  ;;  %v6086_v55 = vsel %vm5735_vm14, %v5617_v31, -inf }
 0x41e   : > { %v6131_v42 = vrot.slane %v6130_v48, 2  ;;  %v6137_v25 = vmax.f32 %v6135_v19, %v6136_v15  ;;  %v6144_v11 = vmax.f32 %v6142_v22, %v6143_v5  ;;  %v6150_v14 = vrot.slane %v6149_v59, 4 }
 0x41f   : > { %v6075_v40 = vrot.slane %v6074_v13, 2  ;;  %v6080_v49 = vrot.slane %v6079_v58, 4  ;;  %v6087_v21 = vrot.slane %v6086_v55, 4  ;;  %v6093_v18 = vsel %vm5735_vm14, %v5619_v43, -inf }
 0x420   : > { %v6132_v9 = vmax.f32 %v6130_v48, %v6131_v42  ;;  %v6138_v7 = vrot.slane %v6137_v25, 2  ;;  %v6145_v32 = vrot.slane %v6144_v11, 2  ;;  %v6151_v2 = vmax.f32 %v6149_v59, %v6150_v14 }
 0x421   : > { %v6076_v34 = vmax.f32 %v6074_v13, %v6075_v40  ;;  %v6081_v29 = vmax.f32 %v6079_v58, %v6080_v49  ;;  %v6088_v41 = vmax.f32 %v6086_v55, %v6087_v21  ;;  %v6094_v50 = vrot.slane %v6093_v18, 4 }
 0x422   : > { %v6133_v38 = vrot.slane %v6132_v9, 1  ;;  %v6139_v10 = vmax.f32 %v6137_v25, %v6138_v7  ;;  %v6146_v1 = vmax.f32 %v6144_v11, %v6145_v32  ;;  %v6152_v0 = vrot.slane %v6151_v2, 2 }
 0x423   : > { %v6077_v61 = vrot.slane %v6076_v34, 1  ;;  %v6082_v26 = vrot.slane %v6081_v29, 2  ;;  %v6089_v4 = vrot.slane %v6088_v41, 2  ;;  %v6095_v63 = vmax.f32 %v6093_v18, %v6094_v50 }
 0x424   : > { %v6134_v27 = vmax.f32 %v6132_v9, %v6133_v38  ;;  %v6140_v47 = vrot.slane %v6139_v10, 1  ;;  %v6147_v33 = vrot.slane %v6146_v1, 1  ;;  %v6153_v52 = vmax.f32 %v6151_v2, %v6152_v0 }
 0x425   : > { %v6083_v28 = vmax.f32 %v6081_v29, %v6082_v26  ;;  %v6090_v12 = vmax.f32 %v6088_v41, %v6089_v4  ;;  %v6096_v37 = vrot.slane %v6095_v63, 2  ;;  %v6078_v3 = vmax.f32 %v6076_v34, %v6077_v61 }
 0x426   : > { %v6141_v6 = vmax.f32 %v6139_v10, %v6140_v47  ;;  %v6148_v16 = vmax.f32 %v6146_v1, %v6147_v33  ;;  %v6154_v8 = vrot.slane %v6153_v52, 1  ;;  %v6995_v45 = vpack.c.bf16 %v6134_v27, %v6134_v27 }
 0x427   : > { %v6084_v39 = vrot.slane %v6083_v28, 1  ;;  %v6091_v53 = vrot.slane %v6090_v12, 1  ;;  %v6097_v17 = vmax.f32 %v6095_v63, %v6096_v37  ;;  %v5654_v56 = vcombine.high %v10314_v51, %v10314_v51 }
 0x428   : > { %v6155_v36 = vmax.f32 %v6153_v52, %v6154_v8  ;;  %v6996_v23 = vpack.c.bf16 %v6141_v6, %v6141_v6  ;;  %v6997_v57 = vpack.c.bf16 %v6148_v16, %v6148_v16  ;;  %v6496_v31 = vunpack.c.l.b16 %v6995_v45 }
 0x429   : > { %v6085_v54 = vmax.f32 %v6083_v28, %v6084_v39  ;;  %v6092_v60 = vmax.f32 %v6090_v12, %v6091_v53  ;;  %v6098_v30 = vrot.slane %v6097_v17, 1  ;;  %v6987_v19 = vpack.c.bf16 %v6078_v3, %v6078_v3 }
 0x42a   : > { %v6998_v20 = vpack.c.bf16 %v6155_v36, %v6155_v36  ;;  %v6497_v46 = vunpack.c.l.b16 %v6996_v23  ;;  %v6498_v62 = vunpack.c.l.b16 %v6997_v57  ;;  %v5661_v24 = vrot.slane %v10314_v51, %v9973_v35 }
 0x42b   : > { %v6988_v22 = vpack.c.bf16 %v6085_v54, %v6085_v54  ;;  %v10333_v15 = vmax.f32 %v6097_v17, %v6098_v30  ;;  %v6989_v5 = vpack.c.bf16 %v6092_v60, %v6092_v60  ;;  %v5668_v43 = vrot.slane %v5654_v56, %v9973_v35 }
 0x42c   : > { %v6560_v48 = vsel %vm6504_vm15, %v6497_v46, %v6496_v31  ;;  %v6499_v59 = vunpack.c.l.b16 %v6998_v20  ;;  %v5620_v58 = vcombine.high %v10316_v44, %v10316_v44  ;;  %v5669_v55 = vcombine.high %v5661_v24, %v5661_v24 }
 0x42d   : > { %v6489_v13 = vunpack.c.l.b16 %v6988_v22  ;;  %v5670_v42 = vcombine.high %v5668_v43, %v5668_v43  ;;  %v6156_v25 = vsel %vm5735_vm14, %v5661_v24, -inf  ;;  %v6170_v11 = vsel %vm5735_vm14, %v5668_v43, -inf }
 0x42e   : > { %v6561_v51 = vsel %vm6506_vm0, %v6498_v62, %v6560_v48  ;;  %v6488_v14 = vunpack.c.l.b16 %v6987_v19  ;;  %v6157_v40 = vrot.slane %v6156_v25, 4  ;;  %v6171_v49 = vrot.slane %v6170_v11, 4 }
 0x42f   : > { %v6990_v21 = vpack.c.bf16 %v10333_v15, %v10333_v15  ;;  %v6490_v18 = vunpack.c.l.b16 %v6989_v5  ;;  %v6163_v9 = vsel %vm5735_vm14, %v5669_v55, -inf  ;;  %v6177_v7 = vsel %vm5735_vm14, %v5670_v42, -inf }
 0x430   : > { %v6158_v32 = vmax.f32 %v6156_v25, %v6157_v40  ;;  %v6164_v2 = vrot.slane %v6163_v9, 4  ;;  %v6172_v34 = vmax.f32 %v6170_v11, %v6171_v49  ;;  %v6178_v29 = vrot.slane %v6177_v7, 4 }
 0x431   : > { %v6553_v41 = vsel %vm6504_vm15, %v6489_v13, %v6488_v14  ;;  %v6562_v50 = vsel %vm6508_vm1, %v6499_v59, %v6561_v51  ;;  %v5627_v38 = vrot.slane %v10316_v44, %v9973_v35  ;;  %v5634_v10 = vrot.slane %v5620_v58, %v9973_v35 }
 0x432   : > { %v6159_v1 = vrot.slane %v6158_v32, 2  ;;  %v6165_v0 = vmax.f32 %v6163_v9, %v6164_v2  ;;  %v6173_v61 = vrot.slane %v6172_v34, 2  ;;  %v6179_v26 = vmax.f32 %v6177_v7, %v6178_v29 }
 0x433   : > { %v5635_v4 = vcombine.high %v5627_v38, %v5627_v38  ;;  %v5636_v63 = vcombine.high %v5634_v10, %v5634_v10  ;;  %v6100_v27 = vsel %vm5735_vm14, %v5627_v38, -inf  ;;  %v6114_v47 = vsel %vm5735_vm14, %v5634_v10, -inf }
 0x434   : > { %v6160_v33 = vmax.f32 %v6158_v32, %v6159_v1  ;;  %v6166_v52 = vrot.slane %v6165_v0, 2  ;;  %v6174_v28 = vmax.f32 %v6172_v34, %v6173_v61  ;;  %v6180_v12 = vrot.slane %v6179_v26, 2 }
 0x435   : > { %v6101_v37 = vrot.slane %v6100_v27, 4  ;;  %v6107_v6 = vsel %vm5735_vm14, %v5635_v4, -inf  ;;  %v6115_v44 = vrot.slane %v6114_v47, 4  ;;  %v6121_v35 = vsel %vm5735_vm14, %v5636_v63, -inf }
 0x436   : > { %v6161_v16 = vrot.slane %v6160_v33, 1  ;;  %v6167_v8 = vmax.f32 %v6165_v0, %v6166_v52  ;;  %v6175_v45 = vrot.slane %v6174_v28, 1  ;;  %v6181_v3 = vmax.f32 %v6179_v26, %v6180_v12 }
 0x437   : > { %v6102_v39 = vmax.f32 %v6100_v27, %v6101_v37  ;;  %v6108_v53 = vrot.slane %v6107_v6, 4  ;;  %v6116_v17 = vmax.f32 %v6114_v47, %v6115_v44  ;;  %v6122_v36 = vrot.slane %v6121_v35, 4 }
 0x438   : > { %v6162_v23 = vmax.f32 %v6160_v33, %v6161_v16  ;;  %v6168_v57 = vrot.slane %v6167_v8, 1  ;;  %v6176_v54 = vmax.f32 %v6174_v28, %v6175_v45  ;;  %v6182_v60 = vrot.slane %v6181_v3, 1 }
 0x439   : > { %v6103_v30 = vrot.slane %v6102_v39, 2  ;;  %v6109_v20 = vmax.f32 %v6107_v6, %v6108_v53  ;;  %v6117_v31 = vrot.slane %v6116_v17, 2  ;;  %v6123_v46 = vmax.f32 %v6121_v35, %v6122_v36 }
 0x43a   : > { %v6169_v56 = vmax.f32 %v6167_v8, %v6168_v57  ;;  %v6183_v62 = vmax.f32 %v6181_v3, %v6182_v60  ;;  %v6999_v19 = vpack.c.bf16 %v6162_v23, %v6162_v23  ;;  %v7001_v22 = vpack.c.bf16 %v6176_v54, %v6176_v54 }
 0x43b   : > { %v6104_v24 = vmax.f32 %v6102_v39, %v6103_v30  ;;  %v6110_v48 = vrot.slane %v6109_v20, 2  ;;  %v6118_v15 = vmax.f32 %v6116_v17, %v6117_v31  ;;  %v6124_v5 = vrot.slane %v6123_v46, 2 }
 0x43c   : > { %v6491_v43 = vunpack.c.l.b16 %v6990_v21  ;;  %v7000_v59 = vpack.c.bf16 %v6169_v56, %v6169_v56  ;;  %v7002_v13 = vpack.c.bf16 %v6183_v62, %v6183_v62  ;;  %v6500_v58 = vunpack.c.l.b16 %v6999_v19 }
 0x43d   : > { %v6105_v55 = vrot.slane %v6104_v24, 1  ;;  %v6111_v42 = vmax.f32 %v6109_v20, %v6110_v48  ;;  %v6119_v25 = vrot.slane %v6118_v15, 1  ;;  %v6125_v11 = vmax.f32 %v6123_v46, %v6124_v5 }
 0x43e   : > { %v6554_v51 = vsel %vm6506_vm0, %v6490_v18, %v6553_v41  ;;  %v6501_v14 = vunpack.c.l.b16 %v7000_v59  ;;  %v6502_v40 = vunpack.c.l.b16 %v7001_v22  ;;  %v6563_v49 = vsel %vm6510_vm2, %v6500_v58, %v6562_v50 }
 0x43f   : > { %v6106_v9 = vmax.f32 %v6104_v24, %v6105_v55  ;;  %v6112_v7 = vrot.slane %v6111_v42, 1  ;;  %v6120_v32 = vmax.f32 %v6118_v15, %v6119_v25  ;;  %v6126_v2 = vrot.slane %v6125_v11, 1 }
 0x440   : > { %v6503_v21 = vunpack.c.l.b16 %v7002_v13  ;;  %v6564_v34 = vsel %vm6512_vm3, %v6501_v14, %v6563_v49  ;;  %v6555_v50 = vsel %vm6508_vm1, %v6491_v43, %v6554_v51 }
 0x441   : > { %v6565_v29 = vsel %vm6514_vm4, %v6502_v40, %v6564_v34  ;;  %v6113_v38 = vmax.f32 %v6111_v42, %v6112_v7  ;;  %v6127_v10 = vmax.f32 %v6125_v11, %v6126_v2  ;;  %v6991_v18 = vpack.c.bf16 %v6106_v9, %v6106_v9 }
 0x442   : > { %v6566_v41 = vsel %vm6516_vm5, %v6503_v21, %v6565_v29  ;;  %v6993_v1 = vpack.c.bf16 %v6120_v32, %v6120_v32 }
 0x443   : > { %v6574_v0 = vpack.c.b16 %v6566_v41, %v6566_v41  ;;  %v6992_v61 = vpack.c.bf16 %v6113_v38, %v6113_v38  ;;  %v6994_v26 = vpack.c.bf16 %v6127_v10, %v6127_v10  ;;  %v6492_v4 = vunpack.c.l.b16 %v6991_v18 }
 0x444   : > { %v6494_v47 = vunpack.c.l.b16 %v6993_v1 }
 0x445   : > { %6590 = vst [vmem:[%s8579_s11 + $0x1c] sm:$0xf] %v6574_v0  ;;  %v6493_v63 = vunpack.c.l.b16 %v6992_v61  ;;  %v6556_v27 = vsel %vm6510_vm2, %v6492_v4, %v6555_v50  ;;  %v6495_v33 = vunpack.c.l.b16 %v6994_v26 }
 0x447   : > { %v6557_v52 = vsel %vm6512_vm3, %v6493_v63, %v6556_v27 }
 0x448   : > { %v6558_v28 = vsel %vm6514_vm4, %v6494_v47, %v6557_v52 }
 0x449   : > { %v6559_v12 = vsel %vm6516_vm5, %v6495_v33, %v6558_v28 }
 0x44a   : > { %v6573_v37 = vpack.c.b16 %v6559_v12, %v6559_v12 }
 0x44c   : > { %6589 = vst [vmem:[%s8579_s11 + $0x18] sm:$0xf] %v6573_v37 }
 0x44d   : > { %8231 = shalt.err (!%p8228_p8)
}
 0x44e   : > { %s8232_s29 = scalar_lea.hbm %s10371_s10, 512  ;;  %s8236_s26 = scalar_lea.hbm %s10442_s3, 4096 }
 0x44f   : > { %p8233_p12 = scmp.ne.s32.totalorder %s10371_s10, %s8232_s29  ;;  %p8237_p10 = scmp.lt.u32.totalorder %s10371_s10, %s10442_s3 }
 0x450   : > { %p8238_p3 = scmp.lt.u32.totalorder %s8236_s26, %s8232_s29  ;;  %p8240_p7 = scmp.lt.u32.totalorder %s8232_s29, %s10371_s10 }
 0x451   : > { %p8234_p1 = pnand %p8233_p12, %p10547_p9 }
 0x452   : > { %p8239_p4 = por %p8238_p3, %p8237_p10 }
 0x453   : > { %p8235_p6 = pneg %p8234_p1 }
 0x454   : > { %p8241_p11 = por %p8240_p7, %p8239_p4 }
 0x456   : > { %p8242_p13 = pnand %p8241_p11, %p8235_p6 }
 0x458   : > { %8245 = shalt.err (!%p8242_p13)
}
 0x459   : > { %s8353_s8 = smov 64   ;;  %s8354_s9 = smov 4  }
 0x45a   : > { %7930 = dma.vmem_to_hbm [thread:$0]  (%p10547_p9), %s10373_s19, 512, %s10371_s10, %s10378_s6, %s8353_s8, %s8353_s8, %s8354_s9  }
 0x45b PF: > { %s10548_s20 = sld [smem:[#allocation12_spill]]  ;;  %s10549_s18 = sld [smem:[#allocation14_spill]] }
 0x45c   : > { %p7947_p0 = scmp.ge.s32.totalorder %s8344_s22, 2 }
 0x461   : > { %s6623_s12 = sand.u32 1, %s10548_s20   ;;  %p10550_p2 = scmp.ne.s32.totalorder %s10549_s18, 0 }
 0x462   : > { %s6624_s4 = scalar_lea.sflag [#allocation5], %s6623_s12 }
 0x463   : > { %p7941_p5 = pnand %p7947_p0, %p10550_p2 }
 0x465   : > { %8299 = dma.done.wait (!%p7941_p5), %s6624_s4, 512  }
 0x466   : > { %8301 = vsyncadd (!%p7941_p5), %s6624_s4, 4294966784  ;;  %s20_s22 = sadd.s32 1, %s8344_s22   ;;  %s10551_s18 = sld [smem:[#allocation13_spill]] }
 0x467   : > { %p17_p8 = scmp.ge.s32.totalorder %s20_s22, 10   ;;  %s10552_s20 = sld [smem:[#allocation15_spill]] }
 0x468   : > { %s10553_s28 = sld [smem:[#allocation16_spill]]  ;;  %s10554_s12 = smov %s8308_s13 }
 0x469   : > { %s10555_s13 = smov %s8312_s14  ;;  %s10556_s14 = smov %s8515_s1 }
 0x46a   : > { %s10557_s15 = smov %s8320_s16  ;;  %s10558_s16 = smov %s8324_s17 }
 0x46b   : > { %s10559_s17 = smov %s8510_s7  ;;  %s10560_s19 = smov %s8340_s21 }
 0x46c   :  { %19 = sbr.rel (!%p17_p8) target bundleno = 12 (0xc), region = 95 }
 0x46e   : > { %s10561_s21 = smov %s10553_s28 }
 0x473   :  { %6629 = vsyncpa [#allocation4], 1 }
 0x474   :  { %6631 = vsyncpa [#allocation4 + $0x1], 1 }
 0x475   :  { %6632 = vsyncpa [#allocation7], 1 }
 0x476   :  { %6633 = vsyncpa [#allocation5], 1 }
 0x477   :  { %6635 = vsyncpa [#allocation5 + $0x1], 1 }

</bundles_post_ra>
